<compile_context>
chip_gen: v7x
topology: tpu7x:2x2x1
jax: 0.10.0
libtpu: 0.0.40
codegen_flags: <defaults>
</compile_context>

<pallas_src>
import functools

import jax
import jax.numpy as jnp
from jax.experimental import pallas as pl
from jax.experimental.pallas import tpu as pltpu

GATE_BLK = 128  # lane-aligned block appended to the layer-0 projection that
                # carries the fused gate-network (softmax router) logits.


def _round_up(n, m):
    return ((n + m - 1) // m) * m


# ----------------------------------------------------------------------------
# Fused Pallas kernel: 2-layer GRU + FC + sigmoid + gate softmax + expert mix
# ----------------------------------------------------------------------------
def _moe_kernel(*refs, num_layers, hp, tb, t_len, mm_dtype):
    """Fused forward for one batch tile of TB rows.

    refs = (x, rf, gate_b, fc_w, fc_b, [wih, bih, whh, bhn] * num_layers,
            out, gi_scratch, seq_scratch)

    x_ref:   (T, TB, F)            time-major batch tile
    rf_ref:  (TB, 1)               RF expert probability (external sklearn model)
    gate_b:  (1, 2)
    fc_w:    (1, Hp)               zero-padded beyond the true hidden size
    fc_b:    (1, 1)
    wih_0:   (F, 3*Hp + GATE_BLK)  gate-padded, pre-transposed; r/z recurrent
                                   biases folded into bih_0; gate-network
                                   weights fused into the trailing lane block
    wih_l:   (Hp, 3*Hp)            l >= 1
    bih_l:   (1, 3*Hp [+GATE_BLK for l==0])
    whh_l:   (Hp, 3*Hp)
    bhn_l:   (1, Hp)               n-gate recurrent bias (only one needed in-loop)
    out:     (TB, 1)
    gi_scr:  (T*TB, 3*Hp)  VMEM scratch: hoisted input projection
    seq_scr: (T*TB, Hp)    VMEM scratch: inter-layer sequence
    """
    x_ref, rf_ref, gate_b_ref, fc_w_ref, fc_b_ref = refs[:5]
    layer_refs = refs[5:5 + 4 * num_layers]
    out_ref = refs[5 + 4 * num_layers]
    gi_scr, seq_scr = refs[6 + 4 * num_layers:]

    T, TB, Hp = t_len, tb, hp
    G = 3 * Hp

    h = None
    gate_acc = jnp.zeros((TB, GATE_BLK), jnp.float32)

    for l in range(num_layers):
        wih_ref, bih_ref, whh_ref, bhn_ref = layer_refs[4 * l:4 * (l + 1)]
        first = l == 0
        last = l == num_layers - 1

        # ---- Input projection, hoisted off the serial h-chain, into scratch ----
        wih_v = wih_ref[...]
        bih_v = bih_ref[...]
        if first:
            # Per-timestep (TB, F) @ (F, 3Hp+GATE_BLK).  The fused gate-network
            # contribution rides on the same MXU op and is accumulated here.
            for t in range(T):
                x_t = x_ref[t].astype(mm_dtype)
                gi_t = jnp.dot(x_t, wih_v,
                               preferred_element_type=jnp.float32) + bih_v
                gi_scr[pl.ds(t * TB, TB), :] = gi_t[:, :G]
                gate_acc = gate_acc + gi_t[:, G:]
        else:
            gi = jnp.dot(seq_scr[...].astype(mm_dtype), wih_v,
                         preferred_element_type=jnp.float32) + bih_v
            gi_scr[...] = gi

        # ---- Serial GRU recurrence (latency-critical) ----
        whh_v = whh_ref[...]                              # hoisted recurrent RHS
        bhn_b = jnp.broadcast_to(bhn_ref[...], (TB, Hp))  # hoisted pre-broadcast
        h = jnp.zeros((TB, Hp), jnp.float32)
        for t in range(T):                                # fully unrolled
            b0 = t * TB
            gh = jnp.dot(h.astype(mm_dtype), whh_v,
                         preferred_element_type=jnp.float32)
            r = jax.nn.sigmoid(gi_scr[pl.ds(b0, TB), 0:Hp] + gh[:, 0:Hp])
            z = jax.nn.sigmoid(gi_scr[pl.ds(b0, TB), Hp:2 * Hp]
                               + gh[:, Hp:2 * Hp])
            n = jnp.tanh(gi_scr[pl.ds(b0, TB), 2 * Hp:3 * Hp]
                         + r * (gh[:, 2 * Hp:3 * Hp] + bhn_b))
            h = (1.0 - z) * n + z * h
            if not last:
                seq_scr[pl.ds(b0, TB), :] = h

    # ---- FC + sigmoid on the final hidden state (VPU reduce, no MXU) ----
    logit = jnp.sum(h * fc_w_ref[...], axis=-1, keepdims=True) + fc_b_ref[...]
    p_gru = jax.nn.sigmoid(logit)                          # (TB, 1)

    # ---- Gate network: time-mean -> linear -> softmax over 2 experts ----
    g = gate_acc * (1.0 / T)                               # cols 0,1 = x_avg @ W_g.T
    g0 = g[:, 0:1] + gate_b_ref[:, 0:1]
    g1 = g[:, 1:2] + gate_b_ref[:, 1:2]
    m = jnp.maximum(g0, g1)
    e0 = jnp.exp(g0 - m)
    e1 = jnp.exp(g1 - m)
    denom = e0 + e1

    # ---- Expert mixing ----
    out_ref[...] = (e0 * p_gru + e1 * rf_ref[...]) / denom


# ----------------------------------------------------------------------------
# One-time parameter preparation (transpose, 128-lane gate padding, bias fold,
# gate-network fusion, bf16 cast of matmul weights)
# ----------------------------------------------------------------------------
def prepare_params(params, input_size, hidden_size, num_layers,
                   mm_dtype=jnp.bfloat16):
    H = hidden_size
    Hp = _round_up(H, 128)                        # lane-aligned per-gate width
    G = 3 * Hp
    prepped = {"hp": Hp, "mm_dtype": mm_dtype}
    gate_w = params["gate_w"].astype(jnp.float32)             # (2, F)

    # Padded-lane invariant: every pad row/col of wih/whh/bih/bhn/fc_w below is
    # zero, so h[:, H:Hp] provably stays 0 through the whole recurrence (and the
    # FC reduce / next-layer input cannot pick up garbage).
    for l in range(num_layers):
        p = params[f"l{l}"]
        f_in = input_size if l == 0 else H
        f_in_p = input_size if l == 0 else Hp
        w_cols = G + GATE_BLK if l == 0 else G
        wih = jnp.zeros((f_in_p, w_cols), jnp.float32)
        whh = jnp.zeros((Hp, G), jnp.float32)
        bih = jnp.zeros((1, w_cols), jnp.float32)
        bhn = jnp.zeros((1, Hp), jnp.float32)
        for g in range(3):                                     # gate order r, z, n
            wih = wih.at[:f_in, g * Hp:g * Hp + H].set(
                p["w_ih"][g * H:(g + 1) * H, :].T.astype(jnp.float32))
            whh = whh.at[:H, g * Hp:g * Hp + H].set(
                p["w_hh"][g * H:(g + 1) * H, :].T.astype(jnp.float32))
            b = p["b_ih"][g * H:(g + 1) * H].astype(jnp.float32)
            if g < 2:   # fold r/z recurrent biases into the input projection
                b = b + p["b_hh"][g * H:(g + 1) * H].astype(jnp.float32)
            bih = bih.at[0, g * Hp:g * Hp + H].set(b)
        bhn = bhn.at[0, :H].set(p["b_hh"][2 * H:3 * H].astype(jnp.float32))
        if l == 0:
            # Fuse the gate network's Linear into the layer-0 input projection.
            wih = wih.at[:input_size, G:G + 2].set(gate_w.T)
        prepped[f"l{l}"] = {"wih": wih.astype(mm_dtype), "bih": bih,
                            "whh": whh.astype(mm_dtype), "bhn": bhn}

    fc_w = jnp.zeros((1, Hp), jnp.float32).at[0, :H].set(
        params["fc_w"][0].astype(jnp.float32))
    prepped["fc_w"] = fc_w
    prepped["fc_b"] = params["fc_b"].reshape(1, 1).astype(jnp.float32)
    prepped["gate_b"] = params["gate_b"].reshape(1, 2).astype(jnp.float32)
    return prepped


# ----------------------------------------------------------------------------
# Forward wrapper: single fused pallas_call with a parallel batch grid
# ----------------------------------------------------------------------------
def moe_forward(x, rf_proba, prepped, *, hidden_size, num_layers, block_b=256):
    """x: (B, T, F) batch-first (PyTorch convention). rf_proba: (B, 1)."""
    B, T, F = x.shape
    Hp = prepped["hp"]
    mm_dtype = prepped["mm_dtype"]
    G = 3 * Hp

    # Batch tile: multiple of 16 sublanes (bf16-safe); 256 by default so the
    # held RHS fully utilizes the 2x256 MXU on v6e/v7x and the per-tile scratch
    # (~4 MiB) stays far under v7x's 32 MiB scoped VMEM.
    TB = min(block_b, _round_up(B, 16))
    Bp = _round_up(B, TB)
    grid = (Bp // TB,)

    x_tm = jnp.transpose(x, (1, 0, 2)).astype(jnp.float32)      # (T, B, F)
    x_tm = jnp.pad(x_tm, ((0, 0), (0, Bp - B), (0, 0)))
    rf_p = jnp.pad(rf_proba.astype(jnp.float32), ((0, Bp - B), (0, 0)))

    args = [x_tm, rf_p, prepped["gate_b"], prepped["fc_w"], prepped["fc_b"]]
    in_specs = [
        pl.BlockSpec((T, TB, F), lambda i: (0, i, 0)),
        pl.BlockSpec((TB, 1), lambda i: (i, 0)),
        pl.BlockSpec((1, 2), lambda i: (0, 0)),
        pl.BlockSpec((1, Hp), lambda i: (0, 0)),
        pl.BlockSpec((1, 1), lambda i: (0, 0)),
    ]
    for l in range(num_layers):
        p = prepped[f"l{l}"]
        args += [p["wih"], p["bih"], p["whh"], p["bhn"]]
        in_specs += [pl.BlockSpec(p["wih"].shape, lambda i: (0, 0)),
                     pl.BlockSpec(p["bih"].shape, lambda i: (0, 0)),
                     pl.BlockSpec(p["whh"].shape, lambda i: (0, 0)),
                     pl.BlockSpec(p["bhn"].shape, lambda i: (0, 0))]

    kernel = functools.partial(_moe_kernel, num_layers=num_layers, hp=Hp,
                               tb=TB, t_len=T, mm_dtype=mm_dtype)

    # Advisory cost estimate (matmuls dominate).
    flops = (2 * T * Bp * F * (G + GATE_BLK)
             + 2 * T * Bp * Hp * G * (num_layers - 1)
             + 2 * T * Bp * Hp * G * num_layers)
    transcendentals = num_layers * T * Bp * 3 * Hp + 4 * Bp
    bytes_accessed = ((x_tm.size + rf_p.size + Bp) * 4
                      + sum(int(a.size) * a.dtype.itemsize for a in args[2:]))

    out = pl.pallas_call(
        kernel,
        out_shape=jax.ShapeDtypeStruct((Bp, 1), jnp.float32),
        grid=grid,
        in_specs=in_specs,
        out_specs=pl.BlockSpec((TB, 1), lambda i: (i, 0)),
        scratch_shapes=[pltpu.VMEM((T * TB, G), jnp.float32),
                        pltpu.VMEM((T * TB, Hp), jnp.float32)],
        compiler_params=pltpu.CompilerParams(
            dimension_semantics=("parallel",),
            vmem_limit_bytes=32 * 1024 * 1024),
        cost_estimate=pl.CostEstimate(flops=flops,
                                      transcendentals=transcendentals,
                                      bytes_accessed=bytes_accessed),
    )(*args)
    return out[:B]


# ----------------------------------------------------------------------------
# Deterministic parameter init (matches nn.GRU / nn.Linear shapes)
# ----------------------------------------------------------------------------
def init_params(key, input_size, hidden_size, num_layers):
    params = {}
    k = 1.0 / jnp.sqrt(hidden_size)
    for layer in range(num_layers):
        in_sz = input_size if layer == 0 else hidden_size
        key, k1, k2, k3, k4 = jax.random.split(key, 5)
        params[f"l{layer}"] = {
            "w_ih": jax.random.uniform(k1, (3 * hidden_size, in_sz), jnp.float32, -k, k),
            "w_hh": jax.random.uniform(k2, (3 * hidden_size, hidden_size), jnp.float32, -k, k),
            "b_ih": jax.random.uniform(k3, (3 * hidden_size,), jnp.float32, -k, k),
            "b_hh": jax.random.uniform(k4, (3 * hidden_size,), jnp.float32, -k, k),
        }
    key, k5, k6 = jax.random.split(key, 3)
    params["fc_w"] = jax.random.uniform(k5, (1, hidden_size), jnp.float32, -k, k)
    params["fc_b"] = jax.random.uniform(k6, (1,), jnp.float32, -k, k)
    kg = 1.0 / jnp.sqrt(input_size)
    key, k7, k8 = jax.random.split(key, 3)
    params["gate_w"] = jax.random.uniform(k7, (2, input_size), jnp.float32, -kg, kg)
    params["gate_b"] = jax.random.uniform(k8, (2,), jnp.float32, -kg, kg)
    return params


# ----------------------------------------------------------------------------
# Pure-JAX reference (same math as the PyTorch MOEModel forward)
# ----------------------------------------------------------------------------
def reference_forward(x, rf_proba, params, hidden_size, num_layers):
    H = hidden_size
    seq = x                                            # (B, T, F)
    for layer in range(num_layers):
        p = params[f"l{layer}"]
        B, T, _ = seq.shape
        h = jnp.zeros((B, H), jnp.float32)
        outs = []
        for t in range(T):
            x_t = seq[:, t, :]
            gi = x_t @ p["w_ih"].T + p["b_ih"]
            gh = h @ p["w_hh"].T + p["b_hh"]
            r = jax.nn.sigmoid(gi[:, :H] + gh[:, :H])
            z = jax.nn.sigmoid(gi[:, H:2 * H] + gh[:, H:2 * H])
            n = jnp.tanh(gi[:, 2 * H:] + r * gh[:, 2 * H:])
            h = (1.0 - z) * n + z * h
            outs.append(h)
        seq = jnp.stack(outs, axis=1)
    p_gru = jax.nn.sigmoid(seq[:, -1, :] @ params["fc_w"].T + params["fc_b"])
    x_avg = jnp.mean(x, axis=1)
    gate_logits = x_avg @ params["gate_w"].T + params["gate_b"]
    gate_weights = jax.nn.softmax(gate_logits, axis=1)
    experts = jnp.concatenate([p_gru, rf_proba], axis=1)
    return jnp.sum(gate_weights * experts, axis=1, keepdims=True)


if __name__ == "__main__":
    B, T, input_size, hidden_size, num_layers = 2, 8, 8, 64, 2

    key = jax.random.PRNGKey(0)
    key, kx, krf = jax.random.split(key, 3)
    x = jax.random.normal(kx, (B, T, input_size), jnp.float32)
    # Stand-in for RandomForestExpert.predict_proba output (external sklearn model).
    rf_proba = jax.random.uniform(krf, (B, 1), jnp.float32)

    params = init_params(key, input_size, hidden_size, num_layers)
    ref = reference_forward(x, rf_proba, params, hidden_size, num_layers)

    # f32 matmul path: tight check against the f32 reference.
    prepped_f32 = prepare_params(params, input_size, hidden_size, num_layers,
                                 mm_dtype=jnp.float32)
    out_f32 = jax.block_until_ready(
        moe_forward(x, rf_proba, prepped_f32,
                    hidden_size=hidden_size, num_layers=num_layers))
    assert out_f32.shape == (B, 1)
    assert jnp.allclose(out_f32, ref, rtol=1e-3, atol=1e-3), (out_f32, ref)

    # bf16 matmul path (MXU-native on v5e/v6e/v7x); elementwise math stays f32.
    prepped_bf16 = prepare_params(params, input_size, hidden_size, num_layers,
                                  mm_dtype=jnp.bfloat16)
    out_bf16 = jax.block_until_ready(
        moe_forward(x, rf_proba, prepped_bf16,
                    hidden_size=hidden_size, num_layers=num_layers))
    assert out_bf16.shape == (B, 1)
    assert jnp.allclose(out_bf16, ref, rtol=2e-2, atol=2e-2), (out_bf16, ref)

    print("KERNEL_OK")
</pallas_src>

<mosaic_0001>
module attributes {stable_mosaic.version = 11 : i64} {
  func.func @_moe_kernel(%arg0: i32, %arg1: memref<8x16x8xf32, #tpu.memory_space<vmem>>, %arg2: memref<16x1xf32, #tpu.memory_space<vmem>>, %arg3: memref<1x2xf32, #tpu.memory_space<vmem>>, %arg4: memref<1x128xf32, #tpu.memory_space<vmem>>, %arg5: memref<1x1xf32, #tpu.memory_space<vmem>>, %arg6: memref<8x512xf32, #tpu.memory_space<vmem>>, %arg7: memref<1x512xf32, #tpu.memory_space<vmem>>, %arg8: memref<128x384xf32, #tpu.memory_space<vmem>>, %arg9: memref<1x128xf32, #tpu.memory_space<vmem>>, %arg10: memref<128x384xf32, #tpu.memory_space<vmem>>, %arg11: memref<1x384xf32, #tpu.memory_space<vmem>>, %arg12: memref<128x384xf32, #tpu.memory_space<vmem>>, %arg13: memref<1x128xf32, #tpu.memory_space<vmem>>, %arg14: memref<16x1xf32, #tpu.memory_space<vmem>>, %arg15: memref<128x384xf32, #tpu.memory_space<vmem>>, %arg16: memref<128x128xf32, #tpu.memory_space<vmem>>) attributes {dimension_semantics = [#tpu.dimension_semantics<parallel>], iteration_bounds = array<i64: 1>, scalar_prefetch = 0 : i64, scratch_operands = 2 : i64, tpu.core_type = #tpu.core_type<tc>, window_params = [{transform_indices = @transform_0, window_bounds = array<i64: 8, 16, 8>}, {transform_indices = @transform_1, window_bounds = array<i64: 16, 1>}, {pipeline_mode = #tpu.pipeline_mode<synchronous>, transform_indices = @transform_2, window_bounds = array<i64: 1, 2>}, {pipeline_mode = #tpu.pipeline_mode<synchronous>, transform_indices = @transform_3, window_bounds = array<i64: 1, 128>}, {pipeline_mode = #tpu.pipeline_mode<synchronous>, transform_indices = @transform_4, window_bounds = array<i64: 1, 1>}, {pipeline_mode = #tpu.pipeline_mode<synchronous>, transform_indices = @transform_5, window_bounds = array<i64: 8, 512>}, {pipeline_mode = #tpu.pipeline_mode<synchronous>, transform_indices = @transform_6, window_bounds = array<i64: 1, 512>}, {pipeline_mode = #tpu.pipeline_mode<synchronous>, transform_indices = @transform_7, window_bounds = array<i64: 128, 384>}, {pipeline_mode = #tpu.pipeline_mode<synchronous>, transform_indices = @transform_8, window_bounds = array<i64: 1, 128>}, {pipeline_mode = #tpu.pipeline_mode<synchronous>, transform_indices = @transform_9, window_bounds = array<i64: 128, 384>}, {pipeline_mode = #tpu.pipeline_mode<synchronous>, transform_indices = @transform_10, window_bounds = array<i64: 1, 384>}, {pipeline_mode = #tpu.pipeline_mode<synchronous>, transform_indices = @transform_11, window_bounds = array<i64: 128, 384>}, {pipeline_mode = #tpu.pipeline_mode<synchronous>, transform_indices = @transform_12, window_bounds = array<i64: 1, 128>}, {transform_indices = @transform_13, window_bounds = array<i64: 16, 1>}]} {
    %cst = arith.constant 0.000000e+00 : f32
    %0 = vector.broadcast %cst : f32 to vector<16x128xf32>
    %c0 = arith.constant 0 : index
    %c0_0 = arith.constant 0 : index
    %1 = vector.load %arg6[%c0, %c0_0] : memref<8x512xf32, #tpu.memory_space<vmem>>, vector<8x512xf32>
    %c0_1 = arith.constant 0 : index
    %c0_2 = arith.constant 0 : index
    %2 = vector.load %arg7[%c0_1, %c0_2] : memref<1x512xf32, #tpu.memory_space<vmem>>, vector<1x512xf32>
    %c0_3 = arith.constant 0 : index
    %c0_4 = arith.constant 0 : index
    %c0_5 = arith.constant 0 : index
    %3 = vector.load %arg1[%c0_3, %c0_4, %c0_5] : memref<8x16x8xf32, #tpu.memory_space<vmem>>, vector<1x16x8xf32>
    %4 = vector.shape_cast %3 : vector<1x16x8xf32> to vector<16x8xf32>
    %cst_6 = arith.constant dense<0.000000e+00> : vector<16x512xf32>
    %5 = tpu.matmul %4, %1, %cst_6 {dimension_numbers = #tpu.dot_dimension_numbers<[1], [0], [0], [1], [0, 0, 1, 1], [], []>} : vector<16x8xf32>, vector<8x512xf32>, vector<16x512xf32> -> vector<16x512xf32>
    %6 = vector.broadcast %2 : vector<1x512xf32> to vector<16x512xf32>
    %7 = arith.addf %5, %6 : vector<16x512xf32>
    %8 = vector.extract_strided_slice %7 {offsets = [0, 0], sizes = [16, 384], strides = [1, 1]} : vector<16x512xf32> to vector<16x384xf32>
    %c0_7 = arith.constant 0 : index
    %c0_8 = arith.constant 0 : index
    %9 = vector.load %arg15[%c0_7, %c0_8] : memref<128x384xf32, #tpu.memory_space<vmem>>, vector<16x384xf32>
    tpu.vector_store %arg15[%c0_7, %c0_8], %8 {strides = array<i32>} : memref<128x384xf32, #tpu.memory_space<vmem>>, vector<16x384xf32>,
    %10 = vector.extract_strided_slice %7 {offsets = [0, 384], sizes = [16, 128], strides = [1, 1]} : vector<16x512xf32> to vector<16x128xf32>
    %11 = arith.addf %0, %10 : vector<16x128xf32>
    %c1 = arith.constant 1 : index
    %c0_9 = arith.constant 0 : index
    %c0_10 = arith.constant 0 : index
    %12 = vector.load %arg1[%c1, %c0_9, %c0_10] : memref<8x16x8xf32, #tpu.memory_space<vmem>>, vector<1x16x8xf32>
    %13 = vector.shape_cast %12 : vector<1x16x8xf32> to vector<16x8xf32>
    %cst_11 = arith.constant dense<0.000000e+00> : vector<16x512xf32>
    %14 = tpu.matmul %13, %1, %cst_11 {dimension_numbers = #tpu.dot_dimension_numbers<[1], [0], [0], [1], [0, 0, 1, 1], [], []>} : vector<16x8xf32>, vector<8x512xf32>, vector<16x512xf32> -> vector<16x512xf32>
    %15 = vector.broadcast %2 : vector<1x512xf32> to vector<16x512xf32>
    %16 = arith.addf %14, %15 : vector<16x512xf32>
    %17 = vector.extract_strided_slice %16 {offsets = [0, 0], sizes = [16, 384], strides = [1, 1]} : vector<16x512xf32> to vector<16x384xf32>
    %c16 = arith.constant 16 : index
    %c0_12 = arith.constant 0 : index
    %18 = vector.load %arg15[%c16, %c0_12] : memref<128x384xf32, #tpu.memory_space<vmem>>, vector<16x384xf32>
    tpu.vector_store %arg15[%c16, %c0_12], %17 {strides = array<i32>} : memref<128x384xf32, #tpu.memory_space<vmem>>, vector<16x384xf32>,
    %19 = vector.extract_strided_slice %16 {offsets = [0, 384], sizes = [16, 128], strides = [1, 1]} : vector<16x512xf32> to vector<16x128xf32>
    %20 = arith.addf %11, %19 : vector<16x128xf32>
    %c2 = arith.constant 2 : index
    %c0_13 = arith.constant 0 : index
    %c0_14 = arith.constant 0 : index
    %21 = vector.load %arg1[%c2, %c0_13, %c0_14] : memref<8x16x8xf32, #tpu.memory_space<vmem>>, vector<1x16x8xf32>
    %22 = vector.shape_cast %21 : vector<1x16x8xf32> to vector<16x8xf32>
    %cst_15 = arith.constant dense<0.000000e+00> : vector<16x512xf32>
    %23 = tpu.matmul %22, %1, %cst_15 {dimension_numbers = #tpu.dot_dimension_numbers<[1], [0], [0], [1], [0, 0, 1, 1], [], []>} : vector<16x8xf32>, vector<8x512xf32>, vector<16x512xf32> -> vector<16x512xf32>
    %24 = vector.broadcast %2 : vector<1x512xf32> to vector<16x512xf32>
    %25 = arith.addf %23, %24 : vector<16x512xf32>
    %26 = vector.extract_strided_slice %25 {offsets = [0, 0], sizes = [16, 384], strides = [1, 1]} : vector<16x512xf32> to vector<16x384xf32>
    %c32 = arith.constant 32 : index
    %c0_16 = arith.constant 0 : index
    %27 = vector.load %arg15[%c32, %c0_16] : memref<128x384xf32, #tpu.memory_space<vmem>>, vector<16x384xf32>
    tpu.vector_store %arg15[%c32, %c0_16], %26 {strides = array<i32>} : memref<128x384xf32, #tpu.memory_space<vmem>>, vector<16x384xf32>,
    %28 = vector.extract_strided_slice %25 {offsets = [0, 384], sizes = [16, 128], strides = [1, 1]} : vector<16x512xf32> to vector<16x128xf32>
    %29 = arith.addf %20, %28 : vector<16x128xf32>
    %c3 = arith.constant 3 : index
    %c0_17 = arith.constant 0 : index
    %c0_18 = arith.constant 0 : index
    %30 = vector.load %arg1[%c3, %c0_17, %c0_18] : memref<8x16x8xf32, #tpu.memory_space<vmem>>, vector<1x16x8xf32>
    %31 = vector.shape_cast %30 : vector<1x16x8xf32> to vector<16x8xf32>
    %cst_19 = arith.constant dense<0.000000e+00> : vector<16x512xf32>
    %32 = tpu.matmul %31, %1, %cst_19 {dimension_numbers = #tpu.dot_dimension_numbers<[1], [0], [0], [1], [0, 0, 1, 1], [], []>} : vector<16x8xf32>, vector<8x512xf32>, vector<16x512xf32> -> vector<16x512xf32>
    %33 = vector.broadcast %2 : vector<1x512xf32> to vector<16x512xf32>
    %34 = arith.addf %32, %33 : vector<16x512xf32>
    %35 = vector.extract_strided_slice %34 {offsets = [0, 0], sizes = [16, 384], strides = [1, 1]} : vector<16x512xf32> to vector<16x384xf32>
    %c48 = arith.constant 48 : index
    %c0_20 = arith.constant 0 : index
    %36 = vector.load %arg15[%c48, %c0_20] : memref<128x384xf32, #tpu.memory_space<vmem>>, vector<16x384xf32>
    tpu.vector_store %arg15[%c48, %c0_20], %35 {strides = array<i32>} : memref<128x384xf32, #tpu.memory_space<vmem>>, vector<16x384xf32>,
    %37 = vector.extract_strided_slice %34 {offsets = [0, 384], sizes = [16, 128], strides = [1, 1]} : vector<16x512xf32> to vector<16x128xf32>
    %38 = arith.addf %29, %37 : vector<16x128xf32>
    %c4 = arith.constant 4 : index
    %c0_21 = arith.constant 0 : index
    %c0_22 = arith.constant 0 : index
    %39 = vector.load %arg1[%c4, %c0_21, %c0_22] : memref<8x16x8xf32, #tpu.memory_space<vmem>>, vector<1x16x8xf32>
    %40 = vector.shape_cast %39 : vector<1x16x8xf32> to vector<16x8xf32>
    %cst_23 = arith.constant dense<0.000000e+00> : vector<16x512xf32>
    %41 = tpu.matmul %40, %1, %cst_23 {dimension_numbers = #tpu.dot_dimension_numbers<[1], [0], [0], [1], [0, 0, 1, 1], [], []>} : vector<16x8xf32>, vector<8x512xf32>, vector<16x512xf32> -> vector<16x512xf32>
    %42 = vector.broadcast %2 : vector<1x512xf32> to vector<16x512xf32>
    %43 = arith.addf %41, %42 : vector<16x512xf32>
    %44 = vector.extract_strided_slice %43 {offsets = [0, 0], sizes = [16, 384], strides = [1, 1]} : vector<16x512xf32> to vector<16x384xf32>
    %c64 = arith.constant 64 : index
    %c0_24 = arith.constant 0 : index
    %45 = vector.load %arg15[%c64, %c0_24] : memref<128x384xf32, #tpu.memory_space<vmem>>, vector<16x384xf32>
    tpu.vector_store %arg15[%c64, %c0_24], %44 {strides = array<i32>} : memref<128x384xf32, #tpu.memory_space<vmem>>, vector<16x384xf32>,
    %46 = vector.extract_strided_slice %43 {offsets = [0, 384], sizes = [16, 128], strides = [1, 1]} : vector<16x512xf32> to vector<16x128xf32>
    %47 = arith.addf %38, %46 : vector<16x128xf32>
    %c5 = arith.constant 5 : index
    %c0_25 = arith.constant 0 : index
    %c0_26 = arith.constant 0 : index
    %48 = vector.load %arg1[%c5, %c0_25, %c0_26] : memref<8x16x8xf32, #tpu.memory_space<vmem>>, vector<1x16x8xf32>
    %49 = vector.shape_cast %48 : vector<1x16x8xf32> to vector<16x8xf32>
    %cst_27 = arith.constant dense<0.000000e+00> : vector<16x512xf32>
    %50 = tpu.matmul %49, %1, %cst_27 {dimension_numbers = #tpu.dot_dimension_numbers<[1], [0], [0], [1], [0, 0, 1, 1], [], []>} : vector<16x8xf32>, vector<8x512xf32>, vector<16x512xf32> -> vector<16x512xf32>
    %51 = vector.broadcast %2 : vector<1x512xf32> to vector<16x512xf32>
    %52 = arith.addf %50, %51 : vector<16x512xf32>
    %53 = vector.extract_strided_slice %52 {offsets = [0, 0], sizes = [16, 384], strides = [1, 1]} : vector<16x512xf32> to vector<16x384xf32>
    %c80 = arith.constant 80 : index
    %c0_28 = arith.constant 0 : index
    %54 = vector.load %arg15[%c80, %c0_28] : memref<128x384xf32, #tpu.memory_space<vmem>>, vector<16x384xf32>
    tpu.vector_store %arg15[%c80, %c0_28], %53 {strides = array<i32>} : memref<128x384xf32, #tpu.memory_space<vmem>>, vector<16x384xf32>,
    %55 = vector.extract_strided_slice %52 {offsets = [0, 384], sizes = [16, 128], strides = [1, 1]} : vector<16x512xf32> to vector<16x128xf32>
    %56 = arith.addf %47, %55 : vector<16x128xf32>
    %c6 = arith.constant 6 : index
    %c0_29 = arith.constant 0 : index
    %c0_30 = arith.constant 0 : index
    %57 = vector.load %arg1[%c6, %c0_29, %c0_30] : memref<8x16x8xf32, #tpu.memory_space<vmem>>, vector<1x16x8xf32>
    %58 = vector.shape_cast %57 : vector<1x16x8xf32> to vector<16x8xf32>
    %cst_31 = arith.constant dense<0.000000e+00> : vector<16x512xf32>
    %59 = tpu.matmul %58, %1, %cst_31 {dimension_numbers = #tpu.dot_dimension_numbers<[1], [0], [0], [1], [0, 0, 1, 1], [], []>} : vector<16x8xf32>, vector<8x512xf32>, vector<16x512xf32> -> vector<16x512xf32>
    %60 = vector.broadcast %2 : vector<1x512xf32> to vector<16x512xf32>
    %61 = arith.addf %59, %60 : vector<16x512xf32>
    %62 = vector.extract_strided_slice %61 {offsets = [0, 0], sizes = [16, 384], strides = [1, 1]} : vector<16x512xf32> to vector<16x384xf32>
    %c96 = arith.constant 96 : index
    %c0_32 = arith.constant 0 : index
    %63 = vector.load %arg15[%c96, %c0_32] : memref<128x384xf32, #tpu.memory_space<vmem>>, vector<16x384xf32>
    tpu.vector_store %arg15[%c96, %c0_32], %62 {strides = array<i32>} : memref<128x384xf32, #tpu.memory_space<vmem>>, vector<16x384xf32>,
    %64 = vector.extract_strided_slice %61 {offsets = [0, 384], sizes = [16, 128], strides = [1, 1]} : vector<16x512xf32> to vector<16x128xf32>
    %65 = arith.addf %56, %64 : vector<16x128xf32>
    %c7 = arith.constant 7 : index
    %c0_33 = arith.constant 0 : index
    %c0_34 = arith.constant 0 : index
    %66 = vector.load %arg1[%c7, %c0_33, %c0_34] : memref<8x16x8xf32, #tpu.memory_space<vmem>>, vector<1x16x8xf32>
    %67 = vector.shape_cast %66 : vector<1x16x8xf32> to vector<16x8xf32>
    %cst_35 = arith.constant dense<0.000000e+00> : vector<16x512xf32>
    %68 = tpu.matmul %67, %1, %cst_35 {dimension_numbers = #tpu.dot_dimension_numbers<[1], [0], [0], [1], [0, 0, 1, 1], [], []>} : vector<16x8xf32>, vector<8x512xf32>, vector<16x512xf32> -> vector<16x512xf32>
    %69 = vector.broadcast %2 : vector<1x512xf32> to vector<16x512xf32>
    %70 = arith.addf %68, %69 : vector<16x512xf32>
    %71 = vector.extract_strided_slice %70 {offsets = [0, 0], sizes = [16, 384], strides = [1, 1]} : vector<16x512xf32> to vector<16x384xf32>
    %c112 = arith.constant 112 : index
    %c0_36 = arith.constant 0 : index
    %72 = vector.load %arg15[%c112, %c0_36] : memref<128x384xf32, #tpu.memory_space<vmem>>, vector<16x384xf32>
    tpu.vector_store %arg15[%c112, %c0_36], %71 {strides = array<i32>} : memref<128x384xf32, #tpu.memory_space<vmem>>, vector<16x384xf32>,
    %73 = vector.extract_strided_slice %70 {offsets = [0, 384], sizes = [16, 128], strides = [1, 1]} : vector<16x512xf32> to vector<16x128xf32>
    %74 = arith.addf %65, %73 : vector<16x128xf32>
    %c0_37 = arith.constant 0 : index
    %c0_38 = arith.constant 0 : index
    %75 = vector.load %arg8[%c0_37, %c0_38] : memref<128x384xf32, #tpu.memory_space<vmem>>, vector<128x384xf32>
    %c0_39 = arith.constant 0 : index
    %c0_40 = arith.constant 0 : index
    %76 = vector.load %arg9[%c0_39, %c0_40] : memref<1x128xf32, #tpu.memory_space<vmem>>, vector<1x128xf32>
    %77 = vector.shape_cast %76 : vector<1x128xf32> to vector<1x128xf32>
    %78 = vector.broadcast %77 : vector<1x128xf32> to vector<16x128xf32>
    %cst_41 = arith.constant 0.000000e+00 : f32
    %79 = vector.broadcast %cst_41 : f32 to vector<16x128xf32>
    %cst_42 = arith.constant dense<0.000000e+00> : vector<16x384xf32>
    %80 = tpu.matmul %79, %75, %cst_42 {dimension_numbers = #tpu.dot_dimension_numbers<[1], [0], [0], [1], [0, 0, 1, 1], [], []>} : vector<16x128xf32>, vector<128x384xf32>, vector<16x384xf32> -> vector<16x384xf32>
    %c0_43 = arith.constant 0 : index
    %c0_44 = arith.constant 0 : index
    %81 = vector.load %arg15[%c0_43, %c0_44] : memref<128x384xf32, #tpu.memory_space<vmem>>, vector<16x128xf32>
    %82 = vector.extract_strided_slice %80 {offsets = [0, 0], sizes = [16, 128], strides = [1, 1]} : vector<16x384xf32> to vector<16x128xf32>
    %83 = arith.addf %81, %82 : vector<16x128xf32>
    %84 = arith.negf %83 : vector<16x128xf32>
    %85 = math.exp %84 : vector<16x128xf32>
    %cst_45 = arith.constant 1.000000e+00 : f32
    %86 = vector.broadcast %cst_45 : f32 to vector<16x128xf32>
    %87 = arith.addf %86, %85 : vector<16x128xf32>
    %88 = arith.divf %86, %87 : vector<16x128xf32>
    %c0_46 = arith.constant 0 : index
    %c128 = arith.constant 128 : index
    %89 = vector.load %arg15[%c0_46, %c128] : memref<128x384xf32, #tpu.memory_space<vmem>>, vector<16x128xf32>
    %90 = vector.extract_strided_slice %80 {offsets = [0, 128], sizes = [16, 128], strides = [1, 1]} : vector<16x384xf32> to vector<16x128xf32>
    %91 = arith.addf %89, %90 : vector<16x128xf32>
    %92 = arith.negf %91 : vector<16x128xf32>
    %93 = math.exp %92 : vector<16x128xf32>
    %cst_47 = arith.constant 1.000000e+00 : f32
    %94 = vector.broadcast %cst_47 : f32 to vector<16x128xf32>
    %95 = arith.addf %94, %93 : vector<16x128xf32>
    %96 = arith.divf %94, %95 : vector<16x128xf32>
    %c0_48 = arith.constant 0 : index
    %c256 = arith.constant 256 : index
    %97 = vector.load %arg15[%c0_48, %c256] : memref<128x384xf32, #tpu.memory_space<vmem>>, vector<16x128xf32>
    %98 = vector.extract_strided_slice %80 {offsets = [0, 256], sizes = [16, 128], strides = [1, 1]} : vector<16x384xf32> to vector<16x128xf32>
    %99 = arith.addf %98, %78 : vector<16x128xf32>
    %100 = arith.mulf %88, %99 : vector<16x128xf32>
    %101 = arith.addf %97, %100 : vector<16x128xf32>
    %102 = math.tanh %101 : vector<16x128xf32>
    %cst_49 = arith.constant 1.000000e+00 : f32
    %103 = vector.broadcast %cst_49 : f32 to vector<16x128xf32>
    %104 = arith.subf %103, %96 : vector<16x128xf32>
    %105 = arith.mulf %104, %102 : vector<16x128xf32>
    %106 = arith.mulf %96, %79 : vector<16x128xf32>
    %107 = arith.addf %105, %106 : vector<16x128xf32>
    %c0_50 = arith.constant 0 : index
    %c0_51 = arith.constant 0 : index
    %108 = vector.load %arg16[%c0_50, %c0_51] : memref<128x128xf32, #tpu.memory_space<vmem>>, vector<16x128xf32>
    tpu.vector_store %arg16[%c0_50, %c0_51], %107 {strides = array<i32>} : memref<128x128xf32, #tpu.memory_space<vmem>>, vector<16x128xf32>,
    %cst_52 = arith.constant dense<0.000000e+00> : vector<16x384xf32>
    %109 = tpu.matmul %107, %75, %cst_52 {dimension_numbers = #tpu.dot_dimension_numbers<[1], [0], [0], [1], [0, 0, 1, 1], [], []>} : vector<16x128xf32>, vector<128x384xf32>, vector<16x384xf32> -> vector<16x384xf32>
    %c16_53 = arith.constant 16 : index
    %c0_54 = arith.constant 0 : index
    %110 = vector.load %arg15[%c16_53, %c0_54] : memref<128x384xf32, #tpu.memory_space<vmem>>, vector<16x128xf32>
    %111 = vector.extract_strided_slice %109 {offsets = [0, 0], sizes = [16, 128], strides = [1, 1]} : vector<16x384xf32> to vector<16x128xf32>
    %112 = arith.addf %110, %111 : vector<16x128xf32>
    %113 = arith.negf %112 : vector<16x128xf32>
    %114 = math.exp %113 : vector<16x128xf32>
    %cst_55 = arith.constant 1.000000e+00 : f32
    %115 = vector.broadcast %cst_55 : f32 to vector<16x128xf32>
    %116 = arith.addf %115, %114 : vector<16x128xf32>
    %117 = arith.divf %115, %116 : vector<16x128xf32>
    %c16_56 = arith.constant 16 : index
    %c128_57 = arith.constant 128 : index
    %118 = vector.load %arg15[%c16_56, %c128_57] : memref<128x384xf32, #tpu.memory_space<vmem>>, vector<16x128xf32>
    %119 = vector.extract_strided_slice %109 {offsets = [0, 128], sizes = [16, 128], strides = [1, 1]} : vector<16x384xf32> to vector<16x128xf32>
    %120 = arith.addf %118, %119 : vector<16x128xf32>
    %121 = arith.negf %120 : vector<16x128xf32>
    %122 = math.exp %121 : vector<16x128xf32>
    %cst_58 = arith.constant 1.000000e+00 : f32
    %123 = vector.broadcast %cst_58 : f32 to vector<16x128xf32>
    %124 = arith.addf %123, %122 : vector<16x128xf32>
    %125 = arith.divf %123, %124 : vector<16x128xf32>
    %c16_59 = arith.constant 16 : index
    %c256_60 = arith.constant 256 : index
    %126 = vector.load %arg15[%c16_59, %c256_60] : memref<128x384xf32, #tpu.memory_space<vmem>>, vector<16x128xf32>
    %127 = vector.extract_strided_slice %109 {offsets = [0, 256], sizes = [16, 128], strides = [1, 1]} : vector<16x384xf32> to vector<16x128xf32>
    %128 = arith.addf %127, %78 : vector<16x128xf32>
    %129 = arith.mulf %117, %128 : vector<16x128xf32>
    %130 = arith.addf %126, %129 : vector<16x128xf32>
    %131 = math.tanh %130 : vector<16x128xf32>
    %cst_61 = arith.constant 1.000000e+00 : f32
    %132 = vector.broadcast %cst_61 : f32 to vector<16x128xf32>
    %133 = arith.subf %132, %125 : vector<16x128xf32>
    %134 = arith.mulf %133, %131 : vector<16x128xf32>
    %135 = arith.mulf %125, %107 : vector<16x128xf32>
    %136 = arith.addf %134, %135 : vector<16x128xf32>
    %c16_62 = arith.constant 16 : index
    %c0_63 = arith.constant 0 : index
    %137 = vector.load %arg16[%c16_62, %c0_63] : memref<128x128xf32, #tpu.memory_space<vmem>>, vector<16x128xf32>
    tpu.vector_store %arg16[%c16_62, %c0_63], %136 {strides = array<i32>} : memref<128x128xf32, #tpu.memory_space<vmem>>, vector<16x128xf32>,
    %cst_64 = arith.constant dense<0.000000e+00> : vector<16x384xf32>
    %138 = tpu.matmul %136, %75, %cst_64 {dimension_numbers = #tpu.dot_dimension_numbers<[1], [0], [0], [1], [0, 0, 1, 1], [], []>} : vector<16x128xf32>, vector<128x384xf32>, vector<16x384xf32> -> vector<16x384xf32>
    %c32_65 = arith.constant 32 : index
    %c0_66 = arith.constant 0 : index
    %139 = vector.load %arg15[%c32_65, %c0_66] : memref<128x384xf32, #tpu.memory_space<vmem>>, vector<16x128xf32>
    %140 = vector.extract_strided_slice %138 {offsets = [0, 0], sizes = [16, 128], strides = [1, 1]} : vector<16x384xf32> to vector<16x128xf32>
    %141 = arith.addf %139, %140 : vector<16x128xf32>
    %142 = arith.negf %141 : vector<16x128xf32>
    %143 = math.exp %142 : vector<16x128xf32>
    %cst_67 = arith.constant 1.000000e+00 : f32
    %144 = vector.broadcast %cst_67 : f32 to vector<16x128xf32>
    %145 = arith.addf %144, %143 : vector<16x128xf32>
    %146 = arith.divf %144, %145 : vector<16x128xf32>
    %c32_68 = arith.constant 32 : index
    %c128_69 = arith.constant 128 : index
    %147 = vector.load %arg15[%c32_68, %c128_69] : memref<128x384xf32, #tpu.memory_space<vmem>>, vector<16x128xf32>
    %148 = vector.extract_strided_slice %138 {offsets = [0, 128], sizes = [16, 128], strides = [1, 1]} : vector<16x384xf32> to vector<16x128xf32>
    %149 = arith.addf %147, %148 : vector<16x128xf32>
    %150 = arith.negf %149 : vector<16x128xf32>
    %151 = math.exp %150 : vector<16x128xf32>
    %cst_70 = arith.constant 1.000000e+00 : f32
    %152 = vector.broadcast %cst_70 : f32 to vector<16x128xf32>
    %153 = arith.addf %152, %151 : vector<16x128xf32>
    %154 = arith.divf %152, %153 : vector<16x128xf32>
    %c32_71 = arith.constant 32 : index
    %c256_72 = arith.constant 256 : index
    %155 = vector.load %arg15[%c32_71, %c256_72] : memref<128x384xf32, #tpu.memory_space<vmem>>, vector<16x128xf32>
    %156 = vector.extract_strided_slice %138 {offsets = [0, 256], sizes = [16, 128], strides = [1, 1]} : vector<16x384xf32> to vector<16x128xf32>
    %157 = arith.addf %156, %78 : vector<16x128xf32>
    %158 = arith.mulf %146, %157 : vector<16x128xf32>
    %159 = arith.addf %155, %158 : vector<16x128xf32>
    %160 = math.tanh %159 : vector<16x128xf32>
    %cst_73 = arith.constant 1.000000e+00 : f32
    %161 = vector.broadcast %cst_73 : f32 to vector<16x128xf32>
    %162 = arith.subf %161, %154 : vector<16x128xf32>
    %163 = arith.mulf %162, %160 : vector<16x128xf32>
    %164 = arith.mulf %154, %136 : vector<16x128xf32>
    %165 = arith.addf %163, %164 : vector<16x128xf32>
    %c32_74 = arith.constant 32 : index
    %c0_75 = arith.constant 0 : index
    %166 = vector.load %arg16[%c32_74, %c0_75] : memref<128x128xf32, #tpu.memory_space<vmem>>, vector<16x128xf32>
    tpu.vector_store %arg16[%c32_74, %c0_75], %165 {strides = array<i32>} : memref<128x128xf32, #tpu.memory_space<vmem>>, vector<16x128xf32>,
    %cst_76 = arith.constant dense<0.000000e+00> : vector<16x384xf32>
    %167 = tpu.matmul %165, %75, %cst_76 {dimension_numbers = #tpu.dot_dimension_numbers<[1], [0], [0], [1], [0, 0, 1, 1], [], []>} : vector<16x128xf32>, vector<128x384xf32>, vector<16x384xf32> -> vector<16x384xf32>
    %c48_77 = arith.constant 48 : index
    %c0_78 = arith.constant 0 : index
    %168 = vector.load %arg15[%c48_77, %c0_78] : memref<128x384xf32, #tpu.memory_space<vmem>>, vector<16x128xf32>
    %169 = vector.extract_strided_slice %167 {offsets = [0, 0], sizes = [16, 128], strides = [1, 1]} : vector<16x384xf32> to vector<16x128xf32>
    %170 = arith.addf %168, %169 : vector<16x128xf32>
    %171 = arith.negf %170 : vector<16x128xf32>
    %172 = math.exp %171 : vector<16x128xf32>
    %cst_79 = arith.constant 1.000000e+00 : f32
    %173 = vector.broadcast %cst_79 : f32 to vector<16x128xf32>
    %174 = arith.addf %173, %172 : vector<16x128xf32>
    %175 = arith.divf %173, %174 : vector<16x128xf32>
    %c48_80 = arith.constant 48 : index
    %c128_81 = arith.constant 128 : index
    %176 = vector.load %arg15[%c48_80, %c128_81] : memref<128x384xf32, #tpu.memory_space<vmem>>, vector<16x128xf32>
    %177 = vector.extract_strided_slice %167 {offsets = [0, 128], sizes = [16, 128], strides = [1, 1]} : vector<16x384xf32> to vector<16x128xf32>
    %178 = arith.addf %176, %177 : vector<16x128xf32>
    %179 = arith.negf %178 : vector<16x128xf32>
    %180 = math.exp %179 : vector<16x128xf32>
    %cst_82 = arith.constant 1.000000e+00 : f32
    %181 = vector.broadcast %cst_82 : f32 to vector<16x128xf32>
    %182 = arith.addf %181, %180 : vector<16x128xf32>
    %183 = arith.divf %181, %182 : vector<16x128xf32>
    %c48_83 = arith.constant 48 : index
    %c256_84 = arith.constant 256 : index
    %184 = vector.load %arg15[%c48_83, %c256_84] : memref<128x384xf32, #tpu.memory_space<vmem>>, vector<16x128xf32>
    %185 = vector.extract_strided_slice %167 {offsets = [0, 256], sizes = [16, 128], strides = [1, 1]} : vector<16x384xf32> to vector<16x128xf32>
    %186 = arith.addf %185, %78 : vector<16x128xf32>
    %187 = arith.mulf %175, %186 : vector<16x128xf32>
    %188 = arith.addf %184, %187 : vector<16x128xf32>
    %189 = math.tanh %188 : vector<16x128xf32>
    %cst_85 = arith.constant 1.000000e+00 : f32
    %190 = vector.broadcast %cst_85 : f32 to vector<16x128xf32>
    %191 = arith.subf %190, %183 : vector<16x128xf32>
    %192 = arith.mulf %191, %189 : vector<16x128xf32>
    %193 = arith.mulf %183, %165 : vector<16x128xf32>
    %194 = arith.addf %192, %193 : vector<16x128xf32>
    %c48_86 = arith.constant 48 : index
    %c0_87 = arith.constant 0 : index
    %195 = vector.load %arg16[%c48_86, %c0_87] : memref<128x128xf32, #tpu.memory_space<vmem>>, vector<16x128xf32>
    tpu.vector_store %arg16[%c48_86, %c0_87], %194 {strides = array<i32>} : memref<128x128xf32, #tpu.memory_space<vmem>>, vector<16x128xf32>,
    %cst_88 = arith.constant dense<0.000000e+00> : vector<16x384xf32>
    %196 = tpu.matmul %194, %75, %cst_88 {dimension_numbers = #tpu.dot_dimension_numbers<[1], [0], [0], [1], [0, 0, 1, 1], [], []>} : vector<16x128xf32>, vector<128x384xf32>, vector<16x384xf32> -> vector<16x384xf32>
    %c64_89 = arith.constant 64 : index
    %c0_90 = arith.constant 0 : index
    %197 = vector.load %arg15[%c64_89, %c0_90] : memref<128x384xf32, #tpu.memory_space<vmem>>, vector<16x128xf32>
    %198 = vector.extract_strided_slice %196 {offsets = [0, 0], sizes = [16, 128], strides = [1, 1]} : vector<16x384xf32> to vector<16x128xf32>
    %199 = arith.addf %197, %198 : vector<16x128xf32>
    %200 = arith.negf %199 : vector<16x128xf32>
    %201 = math.exp %200 : vector<16x128xf32>
    %cst_91 = arith.constant 1.000000e+00 : f32
    %202 = vector.broadcast %cst_91 : f32 to vector<16x128xf32>
    %203 = arith.addf %202, %201 : vector<16x128xf32>
    %204 = arith.divf %202, %203 : vector<16x128xf32>
    %c64_92 = arith.constant 64 : index
    %c128_93 = arith.constant 128 : index
    %205 = vector.load %arg15[%c64_92, %c128_93] : memref<128x384xf32, #tpu.memory_space<vmem>>, vector<16x128xf32>
    %206 = vector.extract_strided_slice %196 {offsets = [0, 128], sizes = [16, 128], strides = [1, 1]} : vector<16x384xf32> to vector<16x128xf32>
    %207 = arith.addf %205, %206 : vector<16x128xf32>
    %208 = arith.negf %207 : vector<16x128xf32>
    %209 = math.exp %208 : vector<16x128xf32>
    %cst_94 = arith.constant 1.000000e+00 : f32
    %210 = vector.broadcast %cst_94 : f32 to vector<16x128xf32>
    %211 = arith.addf %210, %209 : vector<16x128xf32>
    %212 = arith.divf %210, %211 : vector<16x128xf32>
    %c64_95 = arith.constant 64 : index
    %c256_96 = arith.constant 256 : index
    %213 = vector.load %arg15[%c64_95, %c256_96] : memref<128x384xf32, #tpu.memory_space<vmem>>, vector<16x128xf32>
    %214 = vector.extract_strided_slice %196 {offsets = [0, 256], sizes = [16, 128], strides = [1, 1]} : vector<16x384xf32> to vector<16x128xf32>
    %215 = arith.addf %214, %78 : vector<16x128xf32>
    %216 = arith.mulf %204, %215 : vector<16x128xf32>
    %217 = arith.addf %213, %216 : vector<16x128xf32>
    %218 = math.tanh %217 : vector<16x128xf32>
    %cst_97 = arith.constant 1.000000e+00 : f32
    %219 = vector.broadcast %cst_97 : f32 to vector<16x128xf32>
    %220 = arith.subf %219, %212 : vector<16x128xf32>
    %221 = arith.mulf %220, %218 : vector<16x128xf32>
    %222 = arith.mulf %212, %194 : vector<16x128xf32>
    %223 = arith.addf %221, %222 : vector<16x128xf32>
    %c64_98 = arith.constant 64 : index
    %c0_99 = arith.constant 0 : index
    %224 = vector.load %arg16[%c64_98, %c0_99] : memref<128x128xf32, #tpu.memory_space<vmem>>, vector<16x128xf32>
    tpu.vector_store %arg16[%c64_98, %c0_99], %223 {strides = array<i32>} : memref<128x128xf32, #tpu.memory_space<vmem>>, vector<16x128xf32>,
    %cst_100 = arith.constant dense<0.000000e+00> : vector<16x384xf32>
    %225 = tpu.matmul %223, %75, %cst_100 {dimension_numbers = #tpu.dot_dimension_numbers<[1], [0], [0], [1], [0, 0, 1, 1], [], []>} : vector<16x128xf32>, vector<128x384xf32>, vector<16x384xf32> -> vector<16x384xf32>
    %c80_101 = arith.constant 80 : index
    %c0_102 = arith.constant 0 : index
    %226 = vector.load %arg15[%c80_101, %c0_102] : memref<128x384xf32, #tpu.memory_space<vmem>>, vector<16x128xf32>
    %227 = vector.extract_strided_slice %225 {offsets = [0, 0], sizes = [16, 128], strides = [1, 1]} : vector<16x384xf32> to vector<16x128xf32>
    %228 = arith.addf %226, %227 : vector<16x128xf32>
    %229 = arith.negf %228 : vector<16x128xf32>
    %230 = math.exp %229 : vector<16x128xf32>
    %cst_103 = arith.constant 1.000000e+00 : f32
    %231 = vector.broadcast %cst_103 : f32 to vector<16x128xf32>
    %232 = arith.addf %231, %230 : vector<16x128xf32>
    %233 = arith.divf %231, %232 : vector<16x128xf32>
    %c80_104 = arith.constant 80 : index
    %c128_105 = arith.constant 128 : index
    %234 = vector.load %arg15[%c80_104, %c128_105] : memref<128x384xf32, #tpu.memory_space<vmem>>, vector<16x128xf32>
    %235 = vector.extract_strided_slice %225 {offsets = [0, 128], sizes = [16, 128], strides = [1, 1]} : vector<16x384xf32> to vector<16x128xf32>
    %236 = arith.addf %234, %235 : vector<16x128xf32>
    %237 = arith.negf %236 : vector<16x128xf32>
    %238 = math.exp %237 : vector<16x128xf32>
    %cst_106 = arith.constant 1.000000e+00 : f32
    %239 = vector.broadcast %cst_106 : f32 to vector<16x128xf32>
    %240 = arith.addf %239, %238 : vector<16x128xf32>
    %241 = arith.divf %239, %240 : vector<16x128xf32>
    %c80_107 = arith.constant 80 : index
    %c256_108 = arith.constant 256 : index
    %242 = vector.load %arg15[%c80_107, %c256_108] : memref<128x384xf32, #tpu.memory_space<vmem>>, vector<16x128xf32>
    %243 = vector.extract_strided_slice %225 {offsets = [0, 256], sizes = [16, 128], strides = [1, 1]} : vector<16x384xf32> to vector<16x128xf32>
    %244 = arith.addf %243, %78 : vector<16x128xf32>
    %245 = arith.mulf %233, %244 : vector<16x128xf32>
    %246 = arith.addf %242, %245 : vector<16x128xf32>
    %247 = math.tanh %246 : vector<16x128xf32>
    %cst_109 = arith.constant 1.000000e+00 : f32
    %248 = vector.broadcast %cst_109 : f32 to vector<16x128xf32>
    %249 = arith.subf %248, %241 : vector<16x128xf32>
    %250 = arith.mulf %249, %247 : vector<16x128xf32>
    %251 = arith.mulf %241, %223 : vector<16x128xf32>
    %252 = arith.addf %250, %251 : vector<16x128xf32>
    %c80_110 = arith.constant 80 : index
    %c0_111 = arith.constant 0 : index
    %253 = vector.load %arg16[%c80_110, %c0_111] : memref<128x128xf32, #tpu.memory_space<vmem>>, vector<16x128xf32>
    tpu.vector_store %arg16[%c80_110, %c0_111], %252 {strides = array<i32>} : memref<128x128xf32, #tpu.memory_space<vmem>>, vector<16x128xf32>,
    %cst_112 = arith.constant dense<0.000000e+00> : vector<16x384xf32>
    %254 = tpu.matmul %252, %75, %cst_112 {dimension_numbers = #tpu.dot_dimension_numbers<[1], [0], [0], [1], [0, 0, 1, 1], [], []>} : vector<16x128xf32>, vector<128x384xf32>, vector<16x384xf32> -> vector<16x384xf32>
    %c96_113 = arith.constant 96 : index
    %c0_114 = arith.constant 0 : index
    %255 = vector.load %arg15[%c96_113, %c0_114] : memref<128x384xf32, #tpu.memory_space<vmem>>, vector<16x128xf32>
    %256 = vector.extract_strided_slice %254 {offsets = [0, 0], sizes = [16, 128], strides = [1, 1]} : vector<16x384xf32> to vector<16x128xf32>
    %257 = arith.addf %255, %256 : vector<16x128xf32>
    %258 = arith.negf %257 : vector<16x128xf32>
    %259 = math.exp %258 : vector<16x128xf32>
    %cst_115 = arith.constant 1.000000e+00 : f32
    %260 = vector.broadcast %cst_115 : f32 to vector<16x128xf32>
    %261 = arith.addf %260, %259 : vector<16x128xf32>
    %262 = arith.divf %260, %261 : vector<16x128xf32>
    %c96_116 = arith.constant 96 : index
    %c128_117 = arith.constant 128 : index
    %263 = vector.load %arg15[%c96_116, %c128_117] : memref<128x384xf32, #tpu.memory_space<vmem>>, vector<16x128xf32>
    %264 = vector.extract_strided_slice %254 {offsets = [0, 128], sizes = [16, 128], strides = [1, 1]} : vector<16x384xf32> to vector<16x128xf32>
    %265 = arith.addf %263, %264 : vector<16x128xf32>
    %266 = arith.negf %265 : vector<16x128xf32>
    %267 = math.exp %266 : vector<16x128xf32>
    %cst_118 = arith.constant 1.000000e+00 : f32
    %268 = vector.broadcast %cst_118 : f32 to vector<16x128xf32>
    %269 = arith.addf %268, %267 : vector<16x128xf32>
    %270 = arith.divf %268, %269 : vector<16x128xf32>
    %c96_119 = arith.constant 96 : index
    %c256_120 = arith.constant 256 : index
    %271 = vector.load %arg15[%c96_119, %c256_120] : memref<128x384xf32, #tpu.memory_space<vmem>>, vector<16x128xf32>
    %272 = vector.extract_strided_slice %254 {offsets = [0, 256], sizes = [16, 128], strides = [1, 1]} : vector<16x384xf32> to vector<16x128xf32>
    %273 = arith.addf %272, %78 : vector<16x128xf32>
    %274 = arith.mulf %262, %273 : vector<16x128xf32>
    %275 = arith.addf %271, %274 : vector<16x128xf32>
    %276 = math.tanh %275 : vector<16x128xf32>
    %cst_121 = arith.constant 1.000000e+00 : f32
    %277 = vector.broadcast %cst_121 : f32 to vector<16x128xf32>
    %278 = arith.subf %277, %270 : vector<16x128xf32>
    %279 = arith.mulf %278, %276 : vector<16x128xf32>
    %280 = arith.mulf %270, %252 : vector<16x128xf32>
    %281 = arith.addf %279, %280 : vector<16x128xf32>
    %c96_122 = arith.constant 96 : index
    %c0_123 = arith.constant 0 : index
    %282 = vector.load %arg16[%c96_122, %c0_123] : memref<128x128xf32, #tpu.memory_space<vmem>>, vector<16x128xf32>
    tpu.vector_store %arg16[%c96_122, %c0_123], %281 {strides = array<i32>} : memref<128x128xf32, #tpu.memory_space<vmem>>, vector<16x128xf32>,
    %cst_124 = arith.constant dense<0.000000e+00> : vector<16x384xf32>
    %283 = tpu.matmul %281, %75, %cst_124 {dimension_numbers = #tpu.dot_dimension_numbers<[1], [0], [0], [1], [0, 0, 1, 1], [], []>} : vector<16x128xf32>, vector<128x384xf32>, vector<16x384xf32> -> vector<16x384xf32>
    %c112_125 = arith.constant 112 : index
    %c0_126 = arith.constant 0 : index
    %284 = vector.load %arg15[%c112_125, %c0_126] : memref<128x384xf32, #tpu.memory_space<vmem>>, vector<16x128xf32>
    %285 = vector.extract_strided_slice %283 {offsets = [0, 0], sizes = [16, 128], strides = [1, 1]} : vector<16x384xf32> to vector<16x128xf32>
    %286 = arith.addf %284, %285 : vector<16x128xf32>
    %287 = arith.negf %286 : vector<16x128xf32>
    %288 = math.exp %287 : vector<16x128xf32>
    %cst_127 = arith.constant 1.000000e+00 : f32
    %289 = vector.broadcast %cst_127 : f32 to vector<16x128xf32>
    %290 = arith.addf %289, %288 : vector<16x128xf32>
    %291 = arith.divf %289, %290 : vector<16x128xf32>
    %c112_128 = arith.constant 112 : index
    %c128_129 = arith.constant 128 : index
    %292 = vector.load %arg15[%c112_128, %c128_129] : memref<128x384xf32, #tpu.memory_space<vmem>>, vector<16x128xf32>
    %293 = vector.extract_strided_slice %283 {offsets = [0, 128], sizes = [16, 128], strides = [1, 1]} : vector<16x384xf32> to vector<16x128xf32>
    %294 = arith.addf %292, %293 : vector<16x128xf32>
    %295 = arith.negf %294 : vector<16x128xf32>
    %296 = math.exp %295 : vector<16x128xf32>
    %cst_130 = arith.constant 1.000000e+00 : f32
    %297 = vector.broadcast %cst_130 : f32 to vector<16x128xf32>
    %298 = arith.addf %297, %296 : vector<16x128xf32>
    %299 = arith.divf %297, %298 : vector<16x128xf32>
    %c112_131 = arith.constant 112 : index
    %c256_132 = arith.constant 256 : index
    %300 = vector.load %arg15[%c112_131, %c256_132] : memref<128x384xf32, #tpu.memory_space<vmem>>, vector<16x128xf32>
    %301 = vector.extract_strided_slice %283 {offsets = [0, 256], sizes = [16, 128], strides = [1, 1]} : vector<16x384xf32> to vector<16x128xf32>
    %302 = arith.addf %301, %78 : vector<16x128xf32>
    %303 = arith.mulf %291, %302 : vector<16x128xf32>
    %304 = arith.addf %300, %303 : vector<16x128xf32>
    %305 = math.tanh %304 : vector<16x128xf32>
    %cst_133 = arith.constant 1.000000e+00 : f32
    %306 = vector.broadcast %cst_133 : f32 to vector<16x128xf32>
    %307 = arith.subf %306, %299 : vector<16x128xf32>
    %308 = arith.mulf %307, %305 : vector<16x128xf32>
    %309 = arith.mulf %299, %281 : vector<16x128xf32>
    %310 = arith.addf %308, %309 : vector<16x128xf32>
    %c112_134 = arith.constant 112 : index
    %c0_135 = arith.constant 0 : index
    %311 = vector.load %arg16[%c112_134, %c0_135] : memref<128x128xf32, #tpu.memory_space<vmem>>, vector<16x128xf32>
    tpu.vector_store %arg16[%c112_134, %c0_135], %310 {strides = array<i32>} : memref<128x128xf32, #tpu.memory_space<vmem>>, vector<16x128xf32>,
    %c0_136 = arith.constant 0 : index
    %c0_137 = arith.constant 0 : index
    %312 = vector.load %arg10[%c0_136, %c0_137] : memref<128x384xf32, #tpu.memory_space<vmem>>, vector<128x384xf32>
    %c0_138 = arith.constant 0 : index
    %c0_139 = arith.constant 0 : index
    %313 = vector.load %arg11[%c0_138, %c0_139] : memref<1x384xf32, #tpu.memory_space<vmem>>, vector<1x384xf32>
    %c0_140 = arith.constant 0 : index
    %c0_141 = arith.constant 0 : index
    %314 = vector.load %arg16[%c0_140, %c0_141] : memref<128x128xf32, #tpu.memory_space<vmem>>, vector<128x128xf32>
    %cst_142 = arith.constant dense<0.000000e+00> : vector<128x384xf32>
    %315 = tpu.matmul %314, %312, %cst_142 {dimension_numbers = #tpu.dot_dimension_numbers<[1], [0], [0], [1], [0, 0, 1, 1], [], []>} : vector<128x128xf32>, vector<128x384xf32>, vector<128x384xf32> -> vector<128x384xf32>
    %316 = vector.broadcast %313 : vector<1x384xf32> to vector<128x384xf32>
    %317 = arith.addf %315, %316 : vector<128x384xf32>
    %c0_143 = arith.constant 0 : index
    %c0_144 = arith.constant 0 : index
    %318 = vector.load %arg15[%c0_143, %c0_144] : memref<128x384xf32, #tpu.memory_space<vmem>>, vector<128x384xf32>
    tpu.vector_store %arg15[%c0_143, %c0_144], %317 {strides = array<i32>} : memref<128x384xf32, #tpu.memory_space<vmem>>, vector<128x384xf32>,
    %c0_145 = arith.constant 0 : index
    %c0_146 = arith.constant 0 : index
    %319 = vector.load %arg12[%c0_145, %c0_146] : memref<128x384xf32, #tpu.memory_space<vmem>>, vector<128x384xf32>
    %c0_147 = arith.constant 0 : index
    %c0_148 = arith.constant 0 : index
    %320 = vector.load %arg13[%c0_147, %c0_148] : memref<1x128xf32, #tpu.memory_space<vmem>>, vector<1x128xf32>
    %321 = vector.shape_cast %320 : vector<1x128xf32> to vector<1x128xf32>
    %322 = vector.broadcast %321 : vector<1x128xf32> to vector<16x128xf32>
    %cst_149 = arith.constant 0.000000e+00 : f32
    %323 = vector.broadcast %cst_149 : f32 to vector<16x128xf32>
    %cst_150 = arith.constant dense<0.000000e+00> : vector<16x384xf32>
    %324 = tpu.matmul %323, %319, %cst_150 {dimension_numbers = #tpu.dot_dimension_numbers<[1], [0], [0], [1], [0, 0, 1, 1], [], []>} : vector<16x128xf32>, vector<128x384xf32>, vector<16x384xf32> -> vector<16x384xf32>
    %c0_151 = arith.constant 0 : index
    %c0_152 = arith.constant 0 : index
    %325 = vector.load %arg15[%c0_151, %c0_152] : memref<128x384xf32, #tpu.memory_space<vmem>>, vector<16x128xf32>
    %326 = vector.extract_strided_slice %324 {offsets = [0, 0], sizes = [16, 128], strides = [1, 1]} : vector<16x384xf32> to vector<16x128xf32>
    %327 = arith.addf %325, %326 : vector<16x128xf32>
    %328 = arith.negf %327 : vector<16x128xf32>
    %329 = math.exp %328 : vector<16x128xf32>
    %cst_153 = arith.constant 1.000000e+00 : f32
    %330 = vector.broadcast %cst_153 : f32 to vector<16x128xf32>
    %331 = arith.addf %330, %329 : vector<16x128xf32>
    %332 = arith.divf %330, %331 : vector<16x128xf32>
    %c0_154 = arith.constant 0 : index
    %c128_155 = arith.constant 128 : index
    %333 = vector.load %arg15[%c0_154, %c128_155] : memref<128x384xf32, #tpu.memory_space<vmem>>, vector<16x128xf32>
    %334 = vector.extract_strided_slice %324 {offsets = [0, 128], sizes = [16, 128], strides = [1, 1]} : vector<16x384xf32> to vector<16x128xf32>
    %335 = arith.addf %333, %334 : vector<16x128xf32>
    %336 = arith.negf %335 : vector<16x128xf32>
    %337 = math.exp %336 : vector<16x128xf32>
    %cst_156 = arith.constant 1.000000e+00 : f32
    %338 = vector.broadcast %cst_156 : f32 to vector<16x128xf32>
    %339 = arith.addf %338, %337 : vector<16x128xf32>
    %340 = arith.divf %338, %339 : vector<16x128xf32>
    %c0_157 = arith.constant 0 : index
    %c256_158 = arith.constant 256 : index
    %341 = vector.load %arg15[%c0_157, %c256_158] : memref<128x384xf32, #tpu.memory_space<vmem>>, vector<16x128xf32>
    %342 = vector.extract_strided_slice %324 {offsets = [0, 256], sizes = [16, 128], strides = [1, 1]} : vector<16x384xf32> to vector<16x128xf32>
    %343 = arith.addf %342, %322 : vector<16x128xf32>
    %344 = arith.mulf %332, %343 : vector<16x128xf32>
    %345 = arith.addf %341, %344 : vector<16x128xf32>
    %346 = math.tanh %345 : vector<16x128xf32>
    %cst_159 = arith.constant 1.000000e+00 : f32
    %347 = vector.broadcast %cst_159 : f32 to vector<16x128xf32>
    %348 = arith.subf %347, %340 : vector<16x128xf32>
    %349 = arith.mulf %348, %346 : vector<16x128xf32>
    %350 = arith.mulf %340, %323 : vector<16x128xf32>
    %351 = arith.addf %349, %350 : vector<16x128xf32>
    %cst_160 = arith.constant dense<0.000000e+00> : vector<16x384xf32>
    %352 = tpu.matmul %351, %319, %cst_160 {dimension_numbers = #tpu.dot_dimension_numbers<[1], [0], [0], [1], [0, 0, 1, 1], [], []>} : vector<16x128xf32>, vector<128x384xf32>, vector<16x384xf32> -> vector<16x384xf32>
    %c16_161 = arith.constant 16 : index
    %c0_162 = arith.constant 0 : index
    %353 = vector.load %arg15[%c16_161, %c0_162] : memref<128x384xf32, #tpu.memory_space<vmem>>, vector<16x128xf32>
    %354 = vector.extract_strided_slice %352 {offsets = [0, 0], sizes = [16, 128], strides = [1, 1]} : vector<16x384xf32> to vector<16x128xf32>
    %355 = arith.addf %353, %354 : vector<16x128xf32>
    %356 = arith.negf %355 : vector<16x128xf32>
    %357 = math.exp %356 : vector<16x128xf32>
    %cst_163 = arith.constant 1.000000e+00 : f32
    %358 = vector.broadcast %cst_163 : f32 to vector<16x128xf32>
    %359 = arith.addf %358, %357 : vector<16x128xf32>
    %360 = arith.divf %358, %359 : vector<16x128xf32>
    %c16_164 = arith.constant 16 : index
    %c128_165 = arith.constant 128 : index
    %361 = vector.load %arg15[%c16_164, %c128_165] : memref<128x384xf32, #tpu.memory_space<vmem>>, vector<16x128xf32>
    %362 = vector.extract_strided_slice %352 {offsets = [0, 128], sizes = [16, 128], strides = [1, 1]} : vector<16x384xf32> to vector<16x128xf32>
    %363 = arith.addf %361, %362 : vector<16x128xf32>
    %364 = arith.negf %363 : vector<16x128xf32>
    %365 = math.exp %364 : vector<16x128xf32>
    %cst_166 = arith.constant 1.000000e+00 : f32
    %366 = vector.broadcast %cst_166 : f32 to vector<16x128xf32>
    %367 = arith.addf %366, %365 : vector<16x128xf32>
    %368 = arith.divf %366, %367 : vector<16x128xf32>
    %c16_167 = arith.constant 16 : index
    %c256_168 = arith.constant 256 : index
    %369 = vector.load %arg15[%c16_167, %c256_168] : memref<128x384xf32, #tpu.memory_space<vmem>>, vector<16x128xf32>
    %370 = vector.extract_strided_slice %352 {offsets = [0, 256], sizes = [16, 128], strides = [1, 1]} : vector<16x384xf32> to vector<16x128xf32>
    %371 = arith.addf %370, %322 : vector<16x128xf32>
    %372 = arith.mulf %360, %371 : vector<16x128xf32>
    %373 = arith.addf %369, %372 : vector<16x128xf32>
    %374 = math.tanh %373 : vector<16x128xf32>
    %cst_169 = arith.constant 1.000000e+00 : f32
    %375 = vector.broadcast %cst_169 : f32 to vector<16x128xf32>
    %376 = arith.subf %375, %368 : vector<16x128xf32>
    %377 = arith.mulf %376, %374 : vector<16x128xf32>
    %378 = arith.mulf %368, %351 : vector<16x128xf32>
    %379 = arith.addf %377, %378 : vector<16x128xf32>
    %cst_170 = arith.constant dense<0.000000e+00> : vector<16x384xf32>
    %380 = tpu.matmul %379, %319, %cst_170 {dimension_numbers = #tpu.dot_dimension_numbers<[1], [0], [0], [1], [0, 0, 1, 1], [], []>} : vector<16x128xf32>, vector<128x384xf32>, vector<16x384xf32> -> vector<16x384xf32>
    %c32_171 = arith.constant 32 : index
    %c0_172 = arith.constant 0 : index
    %381 = vector.load %arg15[%c32_171, %c0_172] : memref<128x384xf32, #tpu.memory_space<vmem>>, vector<16x128xf32>
    %382 = vector.extract_strided_slice %380 {offsets = [0, 0], sizes = [16, 128], strides = [1, 1]} : vector<16x384xf32> to vector<16x128xf32>
    %383 = arith.addf %381, %382 : vector<16x128xf32>
    %384 = arith.negf %383 : vector<16x128xf32>
    %385 = math.exp %384 : vector<16x128xf32>
    %cst_173 = arith.constant 1.000000e+00 : f32
    %386 = vector.broadcast %cst_173 : f32 to vector<16x128xf32>
    %387 = arith.addf %386, %385 : vector<16x128xf32>
    %388 = arith.divf %386, %387 : vector<16x128xf32>
    %c32_174 = arith.constant 32 : index
    %c128_175 = arith.constant 128 : index
    %389 = vector.load %arg15[%c32_174, %c128_175] : memref<128x384xf32, #tpu.memory_space<vmem>>, vector<16x128xf32>
    %390 = vector.extract_strided_slice %380 {offsets = [0, 128], sizes = [16, 128], strides = [1, 1]} : vector<16x384xf32> to vector<16x128xf32>
    %391 = arith.addf %389, %390 : vector<16x128xf32>
    %392 = arith.negf %391 : vector<16x128xf32>
    %393 = math.exp %392 : vector<16x128xf32>
    %cst_176 = arith.constant 1.000000e+00 : f32
    %394 = vector.broadcast %cst_176 : f32 to vector<16x128xf32>
    %395 = arith.addf %394, %393 : vector<16x128xf32>
    %396 = arith.divf %394, %395 : vector<16x128xf32>
    %c32_177 = arith.constant 32 : index
    %c256_178 = arith.constant 256 : index
    %397 = vector.load %arg15[%c32_177, %c256_178] : memref<128x384xf32, #tpu.memory_space<vmem>>, vector<16x128xf32>
    %398 = vector.extract_strided_slice %380 {offsets = [0, 256], sizes = [16, 128], strides = [1, 1]} : vector<16x384xf32> to vector<16x128xf32>
    %399 = arith.addf %398, %322 : vector<16x128xf32>
    %400 = arith.mulf %388, %399 : vector<16x128xf32>
    %401 = arith.addf %397, %400 : vector<16x128xf32>
    %402 = math.tanh %401 : vector<16x128xf32>
    %cst_179 = arith.constant 1.000000e+00 : f32
    %403 = vector.broadcast %cst_179 : f32 to vector<16x128xf32>
    %404 = arith.subf %403, %396 : vector<16x128xf32>
    %405 = arith.mulf %404, %402 : vector<16x128xf32>
    %406 = arith.mulf %396, %379 : vector<16x128xf32>
    %407 = arith.addf %405, %406 : vector<16x128xf32>
    %cst_180 = arith.constant dense<0.000000e+00> : vector<16x384xf32>
    %408 = tpu.matmul %407, %319, %cst_180 {dimension_numbers = #tpu.dot_dimension_numbers<[1], [0], [0], [1], [0, 0, 1, 1], [], []>} : vector<16x128xf32>, vector<128x384xf32>, vector<16x384xf32> -> vector<16x384xf32>
    %c48_181 = arith.constant 48 : index
    %c0_182 = arith.constant 0 : index
    %409 = vector.load %arg15[%c48_181, %c0_182] : memref<128x384xf32, #tpu.memory_space<vmem>>, vector<16x128xf32>
    %410 = vector.extract_strided_slice %408 {offsets = [0, 0], sizes = [16, 128], strides = [1, 1]} : vector<16x384xf32> to vector<16x128xf32>
    %411 = arith.addf %409, %410 : vector<16x128xf32>
    %412 = arith.negf %411 : vector<16x128xf32>
    %413 = math.exp %412 : vector<16x128xf32>
    %cst_183 = arith.constant 1.000000e+00 : f32
    %414 = vector.broadcast %cst_183 : f32 to vector<16x128xf32>
    %415 = arith.addf %414, %413 : vector<16x128xf32>
    %416 = arith.divf %414, %415 : vector<16x128xf32>
    %c48_184 = arith.constant 48 : index
    %c128_185 = arith.constant 128 : index
    %417 = vector.load %arg15[%c48_184, %c128_185] : memref<128x384xf32, #tpu.memory_space<vmem>>, vector<16x128xf32>
    %418 = vector.extract_strided_slice %408 {offsets = [0, 128], sizes = [16, 128], strides = [1, 1]} : vector<16x384xf32> to vector<16x128xf32>
    %419 = arith.addf %417, %418 : vector<16x128xf32>
    %420 = arith.negf %419 : vector<16x128xf32>
    %421 = math.exp %420 : vector<16x128xf32>
    %cst_186 = arith.constant 1.000000e+00 : f32
    %422 = vector.broadcast %cst_186 : f32 to vector<16x128xf32>
    %423 = arith.addf %422, %421 : vector<16x128xf32>
    %424 = arith.divf %422, %423 : vector<16x128xf32>
    %c48_187 = arith.constant 48 : index
    %c256_188 = arith.constant 256 : index
    %425 = vector.load %arg15[%c48_187, %c256_188] : memref<128x384xf32, #tpu.memory_space<vmem>>, vector<16x128xf32>
    %426 = vector.extract_strided_slice %408 {offsets = [0, 256], sizes = [16, 128], strides = [1, 1]} : vector<16x384xf32> to vector<16x128xf32>
    %427 = arith.addf %426, %322 : vector<16x128xf32>
    %428 = arith.mulf %416, %427 : vector<16x128xf32>
    %429 = arith.addf %425, %428 : vector<16x128xf32>
    %430 = math.tanh %429 : vector<16x128xf32>
    %cst_189 = arith.constant 1.000000e+00 : f32
    %431 = vector.broadcast %cst_189 : f32 to vector<16x128xf32>
    %432 = arith.subf %431, %424 : vector<16x128xf32>
    %433 = arith.mulf %432, %430 : vector<16x128xf32>
    %434 = arith.mulf %424, %407 : vector<16x128xf32>
    %435 = arith.addf %433, %434 : vector<16x128xf32>
    %cst_190 = arith.constant dense<0.000000e+00> : vector<16x384xf32>
    %436 = tpu.matmul %435, %319, %cst_190 {dimension_numbers = #tpu.dot_dimension_numbers<[1], [0], [0], [1], [0, 0, 1, 1], [], []>} : vector<16x128xf32>, vector<128x384xf32>, vector<16x384xf32> -> vector<16x384xf32>
    %c64_191 = arith.constant 64 : index
    %c0_192 = arith.constant 0 : index
    %437 = vector.load %arg15[%c64_191, %c0_192] : memref<128x384xf32, #tpu.memory_space<vmem>>, vector<16x128xf32>
    %438 = vector.extract_strided_slice %436 {offsets = [0, 0], sizes = [16, 128], strides = [1, 1]} : vector<16x384xf32> to vector<16x128xf32>
    %439 = arith.addf %437, %438 : vector<16x128xf32>
    %440 = arith.negf %439 : vector<16x128xf32>
    %441 = math.exp %440 : vector<16x128xf32>
    %cst_193 = arith.constant 1.000000e+00 : f32
    %442 = vector.broadcast %cst_193 : f32 to vector<16x128xf32>
    %443 = arith.addf %442, %441 : vector<16x128xf32>
    %444 = arith.divf %442, %443 : vector<16x128xf32>
    %c64_194 = arith.constant 64 : index
    %c128_195 = arith.constant 128 : index
    %445 = vector.load %arg15[%c64_194, %c128_195] : memref<128x384xf32, #tpu.memory_space<vmem>>, vector<16x128xf32>
    %446 = vector.extract_strided_slice %436 {offsets = [0, 128], sizes = [16, 128], strides = [1, 1]} : vector<16x384xf32> to vector<16x128xf32>
    %447 = arith.addf %445, %446 : vector<16x128xf32>
    %448 = arith.negf %447 : vector<16x128xf32>
    %449 = math.exp %448 : vector<16x128xf32>
    %cst_196 = arith.constant 1.000000e+00 : f32
    %450 = vector.broadcast %cst_196 : f32 to vector<16x128xf32>
    %451 = arith.addf %450, %449 : vector<16x128xf32>
    %452 = arith.divf %450, %451 : vector<16x128xf32>
    %c64_197 = arith.constant 64 : index
    %c256_198 = arith.constant 256 : index
    %453 = vector.load %arg15[%c64_197, %c256_198] : memref<128x384xf32, #tpu.memory_space<vmem>>, vector<16x128xf32>
    %454 = vector.extract_strided_slice %436 {offsets = [0, 256], sizes = [16, 128], strides = [1, 1]} : vector<16x384xf32> to vector<16x128xf32>
    %455 = arith.addf %454, %322 : vector<16x128xf32>
    %456 = arith.mulf %444, %455 : vector<16x128xf32>
    %457 = arith.addf %453, %456 : vector<16x128xf32>
    %458 = math.tanh %457 : vector<16x128xf32>
    %cst_199 = arith.constant 1.000000e+00 : f32
    %459 = vector.broadcast %cst_199 : f32 to vector<16x128xf32>
    %460 = arith.subf %459, %452 : vector<16x128xf32>
    %461 = arith.mulf %460, %458 : vector<16x128xf32>
    %462 = arith.mulf %452, %435 : vector<16x128xf32>
    %463 = arith.addf %461, %462 : vector<16x128xf32>
    %cst_200 = arith.constant dense<0.000000e+00> : vector<16x384xf32>
    %464 = tpu.matmul %463, %319, %cst_200 {dimension_numbers = #tpu.dot_dimension_numbers<[1], [0], [0], [1], [0, 0, 1, 1], [], []>} : vector<16x128xf32>, vector<128x384xf32>, vector<16x384xf32> -> vector<16x384xf32>
    %c80_201 = arith.constant 80 : index
    %c0_202 = arith.constant 0 : index
    %465 = vector.load %arg15[%c80_201, %c0_202] : memref<128x384xf32, #tpu.memory_space<vmem>>, vector<16x128xf32>
    %466 = vector.extract_strided_slice %464 {offsets = [0, 0], sizes = [16, 128], strides = [1, 1]} : vector<16x384xf32> to vector<16x128xf32>
    %467 = arith.addf %465, %466 : vector<16x128xf32>
    %468 = arith.negf %467 : vector<16x128xf32>
    %469 = math.exp %468 : vector<16x128xf32>
    %cst_203 = arith.constant 1.000000e+00 : f32
    %470 = vector.broadcast %cst_203 : f32 to vector<16x128xf32>
    %471 = arith.addf %470, %469 : vector<16x128xf32>
    %472 = arith.divf %470, %471 : vector<16x128xf32>
    %c80_204 = arith.constant 80 : index
    %c128_205 = arith.constant 128 : index
    %473 = vector.load %arg15[%c80_204, %c128_205] : memref<128x384xf32, #tpu.memory_space<vmem>>, vector<16x128xf32>
    %474 = vector.extract_strided_slice %464 {offsets = [0, 128], sizes = [16, 128], strides = [1, 1]} : vector<16x384xf32> to vector<16x128xf32>
    %475 = arith.addf %473, %474 : vector<16x128xf32>
    %476 = arith.negf %475 : vector<16x128xf32>
    %477 = math.exp %476 : vector<16x128xf32>
    %cst_206 = arith.constant 1.000000e+00 : f32
    %478 = vector.broadcast %cst_206 : f32 to vector<16x128xf32>
    %479 = arith.addf %478, %477 : vector<16x128xf32>
    %480 = arith.divf %478, %479 : vector<16x128xf32>
    %c80_207 = arith.constant 80 : index
    %c256_208 = arith.constant 256 : index
    %481 = vector.load %arg15[%c80_207, %c256_208] : memref<128x384xf32, #tpu.memory_space<vmem>>, vector<16x128xf32>
    %482 = vector.extract_strided_slice %464 {offsets = [0, 256], sizes = [16, 128], strides = [1, 1]} : vector<16x384xf32> to vector<16x128xf32>
    %483 = arith.addf %482, %322 : vector<16x128xf32>
    %484 = arith.mulf %472, %483 : vector<16x128xf32>
    %485 = arith.addf %481, %484 : vector<16x128xf32>
    %486 = math.tanh %485 : vector<16x128xf32>
    %cst_209 = arith.constant 1.000000e+00 : f32
    %487 = vector.broadcast %cst_209 : f32 to vector<16x128xf32>
    %488 = arith.subf %487, %480 : vector<16x128xf32>
    %489 = arith.mulf %488, %486 : vector<16x128xf32>
    %490 = arith.mulf %480, %463 : vector<16x128xf32>
    %491 = arith.addf %489, %490 : vector<16x128xf32>
    %cst_210 = arith.constant dense<0.000000e+00> : vector<16x384xf32>
    %492 = tpu.matmul %491, %319, %cst_210 {dimension_numbers = #tpu.dot_dimension_numbers<[1], [0], [0], [1], [0, 0, 1, 1], [], []>} : vector<16x128xf32>, vector<128x384xf32>, vector<16x384xf32> -> vector<16x384xf32>
    %c96_211 = arith.constant 96 : index
    %c0_212 = arith.constant 0 : index
    %493 = vector.load %arg15[%c96_211, %c0_212] : memref<128x384xf32, #tpu.memory_space<vmem>>, vector<16x128xf32>
    %494 = vector.extract_strided_slice %492 {offsets = [0, 0], sizes = [16, 128], strides = [1, 1]} : vector<16x384xf32> to vector<16x128xf32>
    %495 = arith.addf %493, %494 : vector<16x128xf32>
    %496 = arith.negf %495 : vector<16x128xf32>
    %497 = math.exp %496 : vector<16x128xf32>
    %cst_213 = arith.constant 1.000000e+00 : f32
    %498 = vector.broadcast %cst_213 : f32 to vector<16x128xf32>
    %499 = arith.addf %498, %497 : vector<16x128xf32>
    %500 = arith.divf %498, %499 : vector<16x128xf32>
    %c96_214 = arith.constant 96 : index
    %c128_215 = arith.constant 128 : index
    %501 = vector.load %arg15[%c96_214, %c128_215] : memref<128x384xf32, #tpu.memory_space<vmem>>, vector<16x128xf32>
    %502 = vector.extract_strided_slice %492 {offsets = [0, 128], sizes = [16, 128], strides = [1, 1]} : vector<16x384xf32> to vector<16x128xf32>
    %503 = arith.addf %501, %502 : vector<16x128xf32>
    %504 = arith.negf %503 : vector<16x128xf32>
    %505 = math.exp %504 : vector<16x128xf32>
    %cst_216 = arith.constant 1.000000e+00 : f32
    %506 = vector.broadcast %cst_216 : f32 to vector<16x128xf32>
    %507 = arith.addf %506, %505 : vector<16x128xf32>
    %508 = arith.divf %506, %507 : vector<16x128xf32>
    %c96_217 = arith.constant 96 : index
    %c256_218 = arith.constant 256 : index
    %509 = vector.load %arg15[%c96_217, %c256_218] : memref<128x384xf32, #tpu.memory_space<vmem>>, vector<16x128xf32>
    %510 = vector.extract_strided_slice %492 {offsets = [0, 256], sizes = [16, 128], strides = [1, 1]} : vector<16x384xf32> to vector<16x128xf32>
    %511 = arith.addf %510, %322 : vector<16x128xf32>
    %512 = arith.mulf %500, %511 : vector<16x128xf32>
    %513 = arith.addf %509, %512 : vector<16x128xf32>
    %514 = math.tanh %513 : vector<16x128xf32>
    %cst_219 = arith.constant 1.000000e+00 : f32
    %515 = vector.broadcast %cst_219 : f32 to vector<16x128xf32>
    %516 = arith.subf %515, %508 : vector<16x128xf32>
    %517 = arith.mulf %516, %514 : vector<16x128xf32>
    %518 = arith.mulf %508, %491 : vector<16x128xf32>
    %519 = arith.addf %517, %518 : vector<16x128xf32>
    %cst_220 = arith.constant dense<0.000000e+00> : vector<16x384xf32>
    %520 = tpu.matmul %519, %319, %cst_220 {dimension_numbers = #tpu.dot_dimension_numbers<[1], [0], [0], [1], [0, 0, 1, 1], [], []>} : vector<16x128xf32>, vector<128x384xf32>, vector<16x384xf32> -> vector<16x384xf32>
    %c112_221 = arith.constant 112 : index
    %c0_222 = arith.constant 0 : index
    %521 = vector.load %arg15[%c112_221, %c0_222] : memref<128x384xf32, #tpu.memory_space<vmem>>, vector<16x128xf32>
    %522 = vector.extract_strided_slice %520 {offsets = [0, 0], sizes = [16, 128], strides = [1, 1]} : vector<16x384xf32> to vector<16x128xf32>
    %523 = arith.addf %521, %522 : vector<16x128xf32>
    %524 = arith.negf %523 : vector<16x128xf32>
    %525 = math.exp %524 : vector<16x128xf32>
    %cst_223 = arith.constant 1.000000e+00 : f32
    %526 = vector.broadcast %cst_223 : f32 to vector<16x128xf32>
    %527 = arith.addf %526, %525 : vector<16x128xf32>
    %528 = arith.divf %526, %527 : vector<16x128xf32>
    %c112_224 = arith.constant 112 : index
    %c128_225 = arith.constant 128 : index
    %529 = vector.load %arg15[%c112_224, %c128_225] : memref<128x384xf32, #tpu.memory_space<vmem>>, vector<16x128xf32>
    %530 = vector.extract_strided_slice %520 {offsets = [0, 128], sizes = [16, 128], strides = [1, 1]} : vector<16x384xf32> to vector<16x128xf32>
    %531 = arith.addf %529, %530 : vector<16x128xf32>
    %532 = arith.negf %531 : vector<16x128xf32>
    %533 = math.exp %532 : vector<16x128xf32>
    %cst_226 = arith.constant 1.000000e+00 : f32
    %534 = vector.broadcast %cst_226 : f32 to vector<16x128xf32>
    %535 = arith.addf %534, %533 : vector<16x128xf32>
    %536 = arith.divf %534, %535 : vector<16x128xf32>
    %c112_227 = arith.constant 112 : index
    %c256_228 = arith.constant 256 : index
    %537 = vector.load %arg15[%c112_227, %c256_228] : memref<128x384xf32, #tpu.memory_space<vmem>>, vector<16x128xf32>
    %538 = vector.extract_strided_slice %520 {offsets = [0, 256], sizes = [16, 128], strides = [1, 1]} : vector<16x384xf32> to vector<16x128xf32>
    %539 = arith.addf %538, %322 : vector<16x128xf32>
    %540 = arith.mulf %528, %539 : vector<16x128xf32>
    %541 = arith.addf %537, %540 : vector<16x128xf32>
    %542 = math.tanh %541 : vector<16x128xf32>
    %cst_229 = arith.constant 1.000000e+00 : f32
    %543 = vector.broadcast %cst_229 : f32 to vector<16x128xf32>
    %544 = arith.subf %543, %536 : vector<16x128xf32>
    %545 = arith.mulf %544, %542 : vector<16x128xf32>
    %546 = arith.mulf %536, %519 : vector<16x128xf32>
    %547 = arith.addf %545, %546 : vector<16x128xf32>
    %c0_230 = arith.constant 0 : index
    %c0_231 = arith.constant 0 : index
    %548 = vector.load %arg4[%c0_230, %c0_231] : memref<1x128xf32, #tpu.memory_space<vmem>>, vector<1x128xf32>
    %549 = vector.broadcast %548 : vector<1x128xf32> to vector<16x128xf32>
    %550 = arith.mulf %547, %549 : vector<16x128xf32>
    %cst_232 = arith.constant dense<0.000000e+00> : vector<16xf32>
    %551 = vector.multi_reduction <add>, %550, %cst_232 [1] : vector<16x128xf32> to vector<16xf32>
    %552 = vector.shape_cast %551 : vector<16xf32> to vector<16x1xf32>
    %c0_233 = arith.constant 0 : index
    %c0_234 = arith.constant 0 : index
    %553 = vector.load %arg5[%c0_233, %c0_234] : memref<1x1xf32, #tpu.memory_space<vmem>>, vector<1x1xf32>
    %554 = vector.broadcast %553 : vector<1x1xf32> to vector<16x1xf32>
    %555 = arith.addf %552, %554 : vector<16x1xf32>
    %556 = arith.negf %555 : vector<16x1xf32>
    %557 = math.exp %556 : vector<16x1xf32>
    %cst_235 = arith.constant 1.000000e+00 : f32
    %558 = vector.broadcast %cst_235 : f32 to vector<16x1xf32>
    %559 = arith.addf %558, %557 : vector<16x1xf32>
    %560 = arith.divf %558, %559 : vector<16x1xf32>
    %cst_236 = arith.constant 1.250000e-01 : f32
    %561 = vector.broadcast %cst_236 : f32 to vector<16x128xf32>
    %562 = arith.mulf %74, %561 : vector<16x128xf32>
    %563 = vector.extract_strided_slice %562 {offsets = [0, 0], sizes = [16, 1], strides = [1, 1]} : vector<16x128xf32> to vector<16x1xf32>
    %c0_237 = arith.constant 0 : index
    %c0_238 = arith.constant 0 : index
    %564 = vector.load %arg3[%c0_237, %c0_238] : memref<1x2xf32, #tpu.memory_space<vmem>>, vector<1x1xf32>
    %565 = vector.broadcast %564 : vector<1x1xf32> to vector<16x1xf32>
    %566 = arith.addf %563, %565 : vector<16x1xf32>
    %567 = vector.extract_strided_slice %562 {offsets = [0, 1], sizes = [16, 1], strides = [1, 1]} : vector<16x128xf32> to vector<16x1xf32>
    %c0_239 = arith.constant 0 : index
    %c1_240 = arith.constant 1 : index
    %568 = vector.load %arg3[%c0_239, %c1_240] : memref<1x2xf32, #tpu.memory_space<vmem>>, vector<1x1xf32>
    %569 = vector.broadcast %568 : vector<1x1xf32> to vector<16x1xf32>
    %570 = arith.addf %567, %569 : vector<16x1xf32>
    %571 = arith.maximumf %566, %570 : vector<16x1xf32>
    %572 = arith.subf %566, %571 : vector<16x1xf32>
    %573 = math.exp %572 : vector<16x1xf32>
    %574 = arith.subf %570, %571 : vector<16x1xf32>
    %575 = math.exp %574 : vector<16x1xf32>
    %576 = arith.addf %573, %575 : vector<16x1xf32>
    %577 = arith.mulf %573, %560 : vector<16x1xf32>
    %c0_241 = arith.constant 0 : index
    %c0_242 = arith.constant 0 : index
    %578 = vector.load %arg2[%c0_241, %c0_242] : memref<16x1xf32, #tpu.memory_space<vmem>>, vector<16x1xf32>
    %579 = arith.mulf %575, %578 : vector<16x1xf32>
    %580 = arith.addf %577, %579 : vector<16x1xf32>
    %581 = arith.divf %580, %576 : vector<16x1xf32>
    %c0_243 = arith.constant 0 : index
    %c0_244 = arith.constant 0 : index
    %582 = vector.load %arg14[%c0_243, %c0_244] : memref<16x1xf32, #tpu.memory_space<vmem>>, vector<16x1xf32>
    tpu.vector_store %arg14[%c0_243, %c0_244], %581 {strides = array<i32>} : memref<16x1xf32, #tpu.memory_space<vmem>>, vector<16x1xf32>,
    return
  }
  func.func @transform_0(%arg0: i32) -> (i32, i32, i32) {
    %c0_i32 = arith.constant 0 : i32
    %c0_i32_0 = arith.constant 0 : i32
    %c0_i32_1 = arith.constant 0 : i32
    return %c0_i32, %arg0, %c0_i32_0 : i32, i32, i32
  }
  func.func @transform_1(%arg0: i32) -> (i32, i32) {
    %c0_i32 = arith.constant 0 : i32
    %c0_i32_0 = arith.constant 0 : i32
    return %arg0, %c0_i32 : i32, i32
  }
  func.func @transform_2(%arg0: i32) -> (i32, i32) {
    %c0_i32 = arith.constant 0 : i32
    %c0_i32_0 = arith.constant 0 : i32
    %c0_i32_1 = arith.constant 0 : i32
    return %c0_i32, %c0_i32_0 : i32, i32
  }
  func.func @transform_3(%arg0: i32) -> (i32, i32) {
    %c0_i32 = arith.constant 0 : i32
    %c0_i32_0 = arith.constant 0 : i32
    %c0_i32_1 = arith.constant 0 : i32
    return %c0_i32, %c0_i32_0 : i32, i32
  }
  func.func @transform_4(%arg0: i32) -> (i32, i32) {
    %c0_i32 = arith.constant 0 : i32
    %c0_i32_0 = arith.constant 0 : i32
    %c0_i32_1 = arith.constant 0 : i32
    return %c0_i32, %c0_i32_0 : i32, i32
  }
  func.func @transform_5(%arg0: i32) -> (i32, i32) {
    %c0_i32 = arith.constant 0 : i32
    %c0_i32_0 = arith.constant 0 : i32
    %c0_i32_1 = arith.constant 0 : i32
    return %c0_i32, %c0_i32_0 : i32, i32
  }
  func.func @transform_6(%arg0: i32) -> (i32, i32) {
    %c0_i32 = arith.constant 0 : i32
    %c0_i32_0 = arith.constant 0 : i32
    %c0_i32_1 = arith.constant 0 : i32
    return %c0_i32, %c0_i32_0 : i32, i32
  }
  func.func @transform_7(%arg0: i32) -> (i32, i32) {
    %c0_i32 = arith.constant 0 : i32
    %c0_i32_0 = arith.constant 0 : i32
    %c0_i32_1 = arith.constant 0 : i32
    return %c0_i32, %c0_i32_0 : i32, i32
  }
  func.func @transform_8(%arg0: i32) -> (i32, i32) {
    %c0_i32 = arith.constant 0 : i32
    %c0_i32_0 = arith.constant 0 : i32
    %c0_i32_1 = arith.constant 0 : i32
    return %c0_i32, %c0_i32_0 : i32, i32
  }
  func.func @transform_9(%arg0: i32) -> (i32, i32) {
    %c0_i32 = arith.constant 0 : i32
    %c0_i32_0 = arith.constant 0 : i32
    %c0_i32_1 = arith.constant 0 : i32
    return %c0_i32, %c0_i32_0 : i32, i32
  }
  func.func @transform_10(%arg0: i32) -> (i32, i32) {
    %c0_i32 = arith.constant 0 : i32
    %c0_i32_0 = arith.constant 0 : i32
    %c0_i32_1 = arith.constant 0 : i32
    return %c0_i32, %c0_i32_0 : i32, i32
  }
  func.func @transform_11(%arg0: i32) -> (i32, i32) {
    %c0_i32 = arith.constant 0 : i32
    %c0_i32_0 = arith.constant 0 : i32
    %c0_i32_1 = arith.constant 0 : i32
    return %c0_i32, %c0_i32_0 : i32, i32
  }
  func.func @transform_12(%arg0: i32) -> (i32, i32) {
    %c0_i32 = arith.constant 0 : i32
    %c0_i32_0 = arith.constant 0 : i32
    %c0_i32_1 = arith.constant 0 : i32
    return %c0_i32, %c0_i32_0 : i32, i32
  }
  func.func @transform_13(%arg0: i32) -> (i32, i32) {
    %c0_i32 = arith.constant 0 : i32
    %c0_i32_0 = arith.constant 0 : i32
    return %arg0, %c0_i32 : i32, i32
  }
}

</mosaic_0001>

<bundles_post_ra>
// kernel: tpu_custom_call.1
= control target key start
LH: loop header
LB: loop body
LE: loop exit
PB: predicated region body
PF: predicated region fallthrough
CT: control target
= control target key end

     0   :  { %s9632_s0 = inlined_call_operand.vmem [shape: f32[8,16,8], index: 0, kind: input, shape index: {}]   ;;  %s9633_s1 = inlined_call_operand.vmem [shape: f32[16,1], index: 1, kind: input, shape index: {}]   ;;  %s9634_s2 = inlined_call_operand.vmem [shape: f32[1,2], index: 2, kind: input, shape index: {}]   ;;  %s9635_s3 = inlined_call_operand.vmem [shape: f32[1,128], index: 3, kind: input, shape index: {}]   ;;  %s9636_s4 = inlined_call_operand.<no memory space> [shape: f32[1,1], index: 4, kind: input, shape index: {}]   ;;  %s9637_s5 = inlined_call_operand.vmem [shape: f32[8,512], index: 5, kind: input, shape index: {}]   ;;  %s9638_s6 = inlined_call_operand.vmem [shape: f32[1,512], index: 6, kind: input, shape index: {}]   ;;  %s9639_s7 = inlined_call_operand.hbm [shape: f32[128,384], index: 7, kind: input, shape index: {}]   ;;  %s9640_s8 = inlined_call_operand.vmem [shape: f32[1,128], index: 8, kind: input, shape index: {}]   ;;  %s9641_s9 = inlined_call_operand.hbm [shape: f32[128,384], index: 9, kind: input, shape index: {}]   ;;  %s9642_s10 = inlined_call_operand.vmem [shape: f32[1,384], index: 10, kind: input, shape index: {}]   ;;  %s9643_s11 = inlined_call_operand.hbm [shape: f32[128,384], index: 11, kind: input, shape index: {}]   ;;  %s9644_s12 = inlined_call_operand.vmem [shape: f32[1,128], index: 12, kind: input, shape index: {}]   ;;  %s9645_s13 = inlined_call_operand.vmem [shape: f32[16,1], index: 13, kind: output, shape index: {}]  }
   0x1   :  { %v18_v0 = vstv %s9636_s4 }
   0x2   :  { %19 = vst [vmem:[#allocation4] sm:$0x1] %v18_v0 }
   0x3   :  { %20 = vsyncpa [#allocation6], 0 }
   0x4   :  { %21 = vsyncpa [#allocation8], 0  ;;  %s8085_s27 = smov [#allocation7]   ;;  %s8086_s29 = smov [#allocation5]  }
   0x5   :  { %s55_s28 = sshll.u32 %s8085_s27, 4  ;;  %s41_s30 = sshll.u32 %s8086_s29, 4  ;;  %s56_s28 = int_to_ptr.vmem [resolvable:$true] %s55_s28  ;;  %s8166_s30 = int_to_ptr.vmem [resolvable:$true] %s41_s30 }
   0x6   :  { %s8015_s16 = scalar_lea.hbm %s9641_s9, 6144 }
   0x7   :  { %p8016_p0 = scmp.ne.s32.totalorder %s9641_s9, %s8015_s16  ;;  %p8019_p1 = scmp.lt.u32.totalorder %s8015_s16, %s9641_s9 }
   0x9   :  { %p8021_p2 = pnand %p8019_p1, %p8016_p0 }
   0xb   :  { %8024 = shalt.err (!%p8021_p2)
}
   0xc   :  { %s8025_s20 = scalar_lea.vmem %s56_s28, 6144  ;;  %p8030_p4 = scmp.lt.s32.totalorder %s56_s28, %s56_s28 }
   0xd   :  { %p8026_p3 = scmp.ne.s32.totalorder %s56_s28, %s8025_s20  ;;  %p8031_p5 = scmp.lt.s32.totalorder %s8025_s20, %s8025_s20 }
   0xf   :  { %p8032_p6 = por %p8031_p5, %p8030_p4 }
  0x11   :  { %p8033_p7 = pnand %p8032_p6, %p8026_p3 }
  0x13   :  { %8036 = shalt.err (!%p8033_p7)
}
  0x14   :  { %s8087_s21 = smov 384   ;;  %s8088_s22 = smov 24  }
  0x15   :  { %61 = dma.hbm_to_vmem [thread:$0]  %s9641_s9, 6144, %s56_s28, [#allocation8], %s8087_s21, %s8087_s21, %s8088_s22  }
  0x16   :  { %s8037_s27 = scalar_lea.hbm %s9639_s7, 6144 }
  0x17   :  { %p8038_p8 = scmp.ne.s32.totalorder %s9639_s7, %s8037_s27  ;;  %p8041_p9 = scmp.lt.u32.totalorder %s8037_s27, %s9639_s7 }
  0x19   :  { %p8043_p10 = pnand %p8041_p9, %p8038_p8 }
  0x1b   :  { %8046 = shalt.err (!%p8043_p10)
}
  0x1c   :  { %s8047_s17 = scalar_lea.vmem %s8166_s30, 6144  ;;  %p8052_p12 = scmp.lt.s32.totalorder %s8166_s30, %s8166_s30 }
  0x1d   :  { %p8048_p11 = scmp.ne.s32.totalorder %s8166_s30, %s8047_s17  ;;  %p8053_p13 = scmp.lt.s32.totalorder %s8047_s17, %s8047_s17 }
  0x1f   :  { %p8054_p0 = por %p8053_p13, %p8052_p12 }
  0x21   :  { %p8055_p1 = pnand %p8054_p0, %p8048_p11 }
  0x23   :  { %8058 = shalt.err (!%p8055_p1)
}
  0x24   :  { %47 = dma.hbm_to_vmem [thread:$0]  %s9639_s7, 6144, %s8166_s30, [#allocation6], %s8087_s21, %s8087_s21, %s8088_s22  }
  0x25   :  { %s8089_s18 = smov [#allocation9]   ;;  %s8059_s23 = scalar_lea.hbm %s9643_s11, 6144 }
  0x26   :  { %s69_s19 = sshll.u32 %s8089_s18, 4  ;;  %p8060_p2 = scmp.ne.s32.totalorder %s9643_s11, %s8059_s23  ;;  %s70_s19 = int_to_ptr.vmem [resolvable:$true] %s69_s19 }
  0x27   :  { %p8063_p3 = scmp.lt.u32.totalorder %s8059_s23, %s9643_s11 }
  0x29   :  { %p8065_p4 = pnand %p8063_p3, %p8060_p2 }
  0x2b   :  { %8068 = shalt.err (!%p8065_p4)
}
  0x2c   :  { %s8069_s29 = scalar_lea.vmem %s70_s19, 6144  ;;  %p8074_p6 = scmp.lt.s32.totalorder %s70_s19, %s70_s19 }
  0x2d   :  { %p8070_p5 = scmp.ne.s32.totalorder %s70_s19, %s8069_s29  ;;  %p8075_p7 = scmp.lt.s32.totalorder %s8069_s29, %s8069_s29 }
  0x2f   :  { %p8076_p8 = por %p8075_p7, %p8074_p6 }
  0x31   :  { %p8077_p9 = pnand %p8076_p8, %p8070_p5 }
  0x33   :  { %8080 = shalt.err (!%p8077_p9)
}
  0x34   :  { %75 = dma.hbm_to_vmem [thread:$0]  %s9643_s11, 6144, %s70_s19, [#allocation8], %s8087_s21, %s8087_s21, %s8088_s22  }
  0x35   :  { %8081 = dma.done.wait [#allocation6], 6144  }
  0x36   :  { %8082 = vsyncadd [#allocation6], 4294961152 }
  0x37   :  { %8083 = dma.done.wait [#allocation8], 12288  }
  0x38   :  { %8084 = vsyncadd [#allocation8], 4294955008  ;;  %v9647_v1 = vmov 0.0   ;;  %v8223_v2 = vld [vmem:[%s9637_s5 + $0x8] sm:$0xff]  ;;  %v8228_v3 = vld [vmem:[%s9637_s5] sm:$0xff]  ;;  %vm115_vm0 = vcmask 64512  }
  0x39   :  { %186 = vmatprep.mubr.f32.mxu1 %v9647_v1  ;;  %528 = vmatprep.mubr.f32.mxu0 %v9647_v1  ;;  %v92_v4 = vld [vmem:[%s9632_s0] sm:$0xff]  ;;  %v8238_v5 = vld [vmem:[%s9637_s5 + $0x18] sm:$0xff]  ;;  %v8248_v7 = vld [vmem:[%s9637_s5 + $0x10] sm:$0xff]  ;;  %s8091_s7 = smov 127   ;;  %s8092_s14 = smov 1   ;;  %vm5387_vm1 = vcmask 7168  }
  0x3a   :  { %122 = vmatprep.subr.mxu1 %v8223_v2  ;;  %464 = vmatprep.subr.mxu0 %v8223_v2  ;;  %v8243_v6 = vld [vmem:[%s9632_s0 + $0x20] sm:$0xff]  ;;  %v93_v8 = vld [vmem:[%s9632_s0 + $0x8] sm:$0xff]  ;;  %v8278_v10 = vld [vmem:[%s9632_s0 + $0x30] sm:$0xff] }
  0x3b   :  { %123 = vmatpush1.msra.mxu1 %v8228_v3  ;;  %465 = vmatpush1.msra.mxu0 %v8228_v3  ;;  %v8265_v9 = vld [vmem:[%s9632_s0 + $0x28] sm:$0xff]  ;;  %v8290_v11 = vld [vmem:[%s9632_s0 + $0x38] sm:$0xff]  ;;  %v5400_v12 = vld [vmem:[%s9632_s0 + $0x10] sm:$0xff] }
  0x3c   :  { %5396 = vmatmul.mubr.msk.f32.vlgmr.msra.gmra.mrb[0].mxu1 %vm115_vm0, %v92_v4  ;;  %199 = vmatprep.subr.mxu1 %v8238_v5  ;;  %v8306_v13 = vld [vmem:[%s9632_s0 + $0x40] sm:$0xff]  ;;  %v5401_v14 = vld [vmem:[%s9632_s0 + $0x18] sm:$0xff]  ;;  %v8320_v15 = vld [vmem:[%s9632_s0 + $0x48] sm:$0xff] }
  0x3d   :  { %5408 = vmatmul.mubr.msk.f32.vlgmr.msra.gmra.mrb[0].mxu0 %vm115_vm0, %v8243_v6  ;;  %200 = vmatpush1.msra.mxu1 %v8248_v7  ;;  %v8333_v16 = vld [vmem:[%s9632_s0 + $0x50] sm:$0xff]  ;;  %v8344_v17 = vld [vmem:[%s9632_s0 + $0x58] sm:$0xff]  ;;  %v1485_v19 = vld [vmem:[#allocation5 + $0x20] sm:$0xff] }
  0x3e   :  { %192 = vmatprep.mubr.f32.mxu1 %v9647_v1  ;;  %534 = vmatprep.mubr.f32.mxu0 %v9647_v1  ;;  %v1482_v18 = vld [vmem:[#allocation5 + $0x8] sm:$0xff]  ;;  %v8357_v20 = vld [vmem:[%s9632_s0 + $0x60] sm:$0xff]  ;;  %v1491_v26 = vld [vmem:[#allocation5 + $0x50] sm:$0xff] }
  0x3f   :  { %635 = vmatprep.subr.mxu0 %v8223_v2  ;;  %293 = vmatprep.subr.mxu1 %v8223_v2  ;;  %v8361_v21 = vpack.c.bf16 %v1485_v19, %v1482_v18  ;;  %v8371_v22 = vld [vmem:[%s9632_s0 + $0x68] sm:$0xff]  ;;  %v1484_v24 = vld [vmem:[#allocation5 + $0x18] sm:$0xff]  ;;  %v8385_v27 = vld [vmem:[%s9632_s0 + $0x70] sm:$0xff] }
  0x40   :  { %5397 = vmatmul.mubr.msk.f32.gmra.mrb[2].mxu1 %vm115_vm0, %v93_v8  ;;  %636 = vmatpush1.msra.mxu0 %v8228_v3  ;;  %v1481_v23 = vld [vmem:[#allocation5] sm:$0xff]  ;;  %v1488_v25 = vld [vmem:[#allocation5 + $0x38] sm:$0xff]  ;;  %v1487_v30 = vld [vmem:[#allocation5 + $0x30] sm:$0xff] }
  0x41   :  { %5409 = vmatmul.mubr.msk.f32.gmra.mrb[2].mxu0 %vm115_vm0, %v8265_v9  ;;  %263 = vmatprep.mubr.f32.mxu1 %v9647_v1  ;;  %v8387_v28 = vpack.c.bf16 %v1484_v24, %v1481_v23  ;;  %v8389_v29 = vpack.c.bf16 %v1491_v26, %v1488_v25  ;;  %v1490_v31 = vld [vmem:[#allocation5 + $0x48] sm:$0xff]  ;;  %v1497_v33 = vld [vmem:[#allocation5 + $0x80] sm:$0xff]  ;;  %v8403_v35 = vld [vmem:[%s9632_s0 + $0x78] sm:$0xff] }
  0x42   :  { %699 = vmatprep.mubr.f32.mxu0 %v9647_v1  ;;  %806 = vmatprep.subr.mxu0 %v8223_v2  ;;  %v1494_v32 = vld [vmem:[#allocation5 + $0x68] sm:$0xff]  ;;  %v8398_v34 = vpack.c.bf16 %v1490_v31, %v1487_v30  ;;  %v1493_v37 = vld [vmem:[#allocation5 + $0x60] sm:$0xff]  ;;  %v1496_v38 = vld [vmem:[#allocation5 + $0x78] sm:$0xff] }
  0x43   :  { %v8406_v36 = vpack.c.bf16 %v1497_v33, %v1494_v32  ;;  %v1500_v39 = vld [vmem:[#allocation5 + $0x98] sm:$0xff]  ;;  %v1503_v40 = vld [vmem:[#allocation5 + $0xb0] sm:$0xff]  ;;  %v8416_v41 = vpack.c.bf16 %v1496_v38, %v1493_v37  ;;  %v1502_v44 = vld [vmem:[#allocation5 + $0xa8] sm:$0xff] }
  0x44   :  { %5398 = vmatmul.mubr.msk.f32.vlgmr.msra.gmra.mrb[4].mxu1 %vm115_vm0, %v92_v4  ;;  %v8420_v42 = vpack.c.bf16 %v1503_v40, %v1500_v39  ;;  %v1499_v43 = vld [vmem:[#allocation5 + $0x90] sm:$0xff]  ;;  %v1506_v45 = vld [vmem:[#allocation5 + $0xc8] sm:$0xff]  ;;  %v1509_v46 = vld [vmem:[#allocation5 + $0xe0] sm:$0xff] }
  0x45   :  { %5414 = vmatmul.mubr.msk.f32.vlgmr.msra.gmra.mrb[4].mxu0 %vm115_vm0, %v8278_v10  ;;  %294 = vmatpush1.msra.mxu1 %v8228_v3  ;;  %v8427_v47 = vpack.c.bf16 %v1502_v44, %v1499_v43  ;;  %v8431_v48 = vpack.c.bf16 %v1509_v46, %v1506_v45  ;;  %v1505_v49 = vld [vmem:[#allocation5 + $0xc0] sm:$0xff]  ;;  %v1508_v50 = vld [vmem:[#allocation5 + $0xd8] sm:$0xff]  ;;  %v1515_v52 = vld [vmem:[#allocation5 + $0x110] sm:$0xff]  ;;  %v95_v44 = vlaneseq }
  0x46   :  { %269 = vmatprep.mubr.f32.mxu1 %v9647_v1  ;;  %705 = vmatprep.mubr.f32.mxu0 %v9647_v1  ;;  %v1512_v51 = vld [vmem:[#allocation5 + $0xf8] sm:$0xff]  ;;  %v8437_v53 = vpack.c.bf16 %v1508_v50, %v1505_v49  ;;  %v1511_v55 = vld [vmem:[#allocation5 + $0xf0] sm:$0xff]  ;;  %v1514_v56 = vld [vmem:[#allocation5 + $0x108] sm:$0xff] }
  0x47   :  { %807 = vmatpush1.msra.mxu0 %v8228_v3  ;;  %370 = vmatprep.subr.mxu1 %v8238_v5  ;;  %v8440_v54 = vpack.c.bf16 %v1515_v52, %v1512_v51  ;;  %v1518_v57 = vld [vmem:[#allocation5 + $0x128] sm:$0xff]  ;;  %v1521_v58 = vld [vmem:[#allocation5 + $0x140] sm:$0xff]  ;;  %v8447_v59 = vpack.c.bf16 %v1514_v56, %v1511_v55  ;;  %v1520_v62 = vld [vmem:[#allocation5 + $0x138] sm:$0xff]  ;;  %v8563_v49 = vshrl.u32 %v95_v44, 7 }
  0x48   :  { %5399 = vmatmul.mubr.msk.f32.gmra.mrb[6].mxu1 %vm115_vm0, %v93_v8  ;;  %977 = vmatprep.subr.mxu0 %v8223_v2  ;;  %v1517_v60 = vld [vmem:[#allocation5 + $0x120] sm:$0xff]  ;;  %v8451_v61 = vpack.c.bf16 %v1521_v58, %v1518_v57  ;;  %v1483_v63 = vld [vmem:[#allocation5 + $0x10] sm:$0xff]  ;;  %v1486_v0 = vld [vmem:[#allocation5 + $0x28] sm:$0xff] }
  0x49   :  { %5415 = vmatmul.mubr.msk.f32.gmra.mrb[6].mxu0 %vm115_vm0, %v8290_v11  ;;  %357 = vmatprep.mubr.f32.mxu1 %v9647_v1  ;;  %v8457_v4 = vpack.c.bf16 %v1520_v62, %v1517_v60  ;;  %v1523_v8 = vld [vmem:[#allocation5 + $0x150] sm:$0xff]  ;;  %v1513_v23 = vld [vmem:[#allocation5 + $0x100] sm:$0xff]  ;;  %v1516_v24 = vld [vmem:[#allocation5 + $0x118] sm:$0xff]  ;;  %9657 = vst [vmem:[#allocation12_spill] sm:$0xff] %v8563_v49  ;;  %v109_v52 = vsub.s32 3, %v8563_v49 }
  0x4a   :  { %870 = vmatprep.mubr.f32.mxu0 %v9647_v1  ;;  %v1507_v19 = vld [vmem:[#allocation5 + $0xd0] sm:$0xff]  ;;  %v8510_v25 = vpack.c.bf16 %v1516_v24, %v1513_v23  ;;  %v1525_v31 = vld [vmem:[#allocation5 + $0x160] sm:$0xff]  ;;  %v1528_v32 = vld [vmem:[#allocation5 + $0x178] sm:$0xff] }
  0x4b   :  { %v1519_v26 = vld [vmem:[#allocation5 + $0x130] sm:$0xff]  ;;  %v8522_v33 = vpack.c.bf16 %v1528_v32, %v1525_v31  ;;  %v8575_v56 = vld [vmem:[%s9638_s6] sm:$0xf] }
  0x4c   :  { %5402 = vmatmul.mubr.msk.f32.vlgmr.msra.gmra.mrb[8].mxu1 %vm115_vm0, %v5400_v12  ;;  %v8580_v58 = vrot.slane %v8575_v56, %v109_v52 }
  0x4d   :  { %5420 = vmatmul.mubr.msk.f32.vlgmr.msra.gmra.mrb[8].mxu0 %vm115_vm0, %v8306_v13  ;;  %371 = vmatpush1.msra.mxu1 %v8248_v7 }
  0x4e   :  { %363 = vmatprep.mubr.f32.mxu1 %v9647_v1  ;;  %876 = vmatprep.mubr.f32.mxu0 %v9647_v1 }
  0x4f   :  { %978 = vmatpush1.msra.mxu0 %v8228_v3  ;;  %541 = vmatprep.subr.mxu1 %v8238_v5 }
  0x50   :  { %5403 = vmatmul.mubr.msk.f32.gmra.mrb[10].mxu1 %vm115_vm0, %v5401_v14  ;;  %1148 = vmatprep.subr.mxu0 %v8223_v2 }
  0x51   :  { %5421 = vmatmul.mubr.msk.f32.gmra.mrb[10].mxu0 %vm115_vm0, %v8320_v15  ;;  %434 = vmatprep.mubr.f32.mxu1 %v9647_v1 }
  0x52   :  { %1041 = vmatprep.mubr.f32.mxu0 %v9647_v1 }
  0x54   :  { %5404 = vmatmul.mubr.msk.f32.vlgmr.msra.gmra.mrb[12].mxu1 %vm115_vm0, %v5400_v12  ;;  %v1492_v12 = vld [vmem:[#allocation5 + $0x58] sm:$0xff] }
  0x55   :  { %5426 = vmatmul.mubr.msk.f32.vlgmr.msra.gmra.mrb[12].mxu0 %vm115_vm0, %v8333_v16  ;;  %542 = vmatpush1.msra.mxu1 %v8248_v7 }
  0x56   :  { %440 = vmatprep.mubr.f32.mxu1 %v9647_v1  ;;  %1047 = vmatprep.mubr.f32.mxu0 %v9647_v1 }
  0x57   :  { %1149 = vmatpush1.msra.mxu0 %v8228_v3  ;;  %712 = vmatprep.subr.mxu1 %v8238_v5 }
  0x58   :  { %5405 = vmatmul.mubr.msk.f32.gmra.mrb[14].mxu1 %vm115_vm0, %v5401_v14  ;;  %1319 = vmatprep.subr.mxu0 %v8223_v2  ;;  %v1524_v2 = vld [vmem:[#allocation5 + $0x158] sm:$0xff]  ;;  %v1498_v14 = vld [vmem:[#allocation5 + $0x88] sm:$0xff] }
  0x59   :  { %5427 = vmatmul.mubr.msk.f32.gmra.mrb[14].mxu0 %vm115_vm0, %v8344_v17  ;;  %605 = vmatprep.mubr.f32.mxu1 %v9647_v1 }
  0x5a   :  { %1212 = vmatprep.mubr.f32.mxu0 %v9647_v1 }
  0x5c   :  { %5410 = vmatmul.mubr.msk.f32.vlgmr.msra.gmra.mrb[16].mxu1 %vm115_vm0, %v8243_v6 }
  0x5d   :  { %5432 = vmatmul.mubr.msk.f32.vlgmr.msra.gmra.mrb[16].mxu0 %vm115_vm0, %v8357_v20  ;;  %713 = vmatpush1.msra.mxu1 %v8248_v7 }
  0x5e   :  { %611 = vmatprep.mubr.f32.mxu1 %v9647_v1  ;;  %1218 = vmatprep.mubr.f32.mxu0 %v9647_v1 }
  0x5f   :  { %1320 = vmatpush1.msra.mxu0 %v8228_v3  ;;  %883 = vmatprep.subr.mxu1 %v8238_v5  ;;  %v1527_v3 = vld [vmem:[#allocation5 + $0x170] sm:$0xff] }
  0x60   :  { %5411 = vmatmul.mubr.msk.f32.gmra.mrb[18].mxu1 %vm115_vm0, %v8265_v9  ;;  %6450 = vmatprep.subr.bf16.mxu0 %v8361_v21  ;;  %v8462_v6 = vpack.c.bf16 %v1527_v3, %v1524_v2  ;;  %v1526_v9 = vld [vmem:[#allocation5 + $0x168] sm:$0xff] }
  0x61   :  { %5433 = vmatmul.mubr.msk.f32.gmra.mrb[18].mxu0 %vm115_vm0, %v8371_v22  ;;  %776 = vmatprep.mubr.f32.mxu1 %v9647_v1 }
  0x62   :  { %1383 = vmatprep.mubr.f32.mxu0 %v9647_v1 }
  0x64   :  { %5416 = vmatmul.mubr.msk.f32.vlgmr.msra.gmra.mrb[20].mxu1 %vm115_vm0, %v8278_v10  ;;  %v8469_v10 = vpack.c.bf16 %v1526_v9, %v1523_v8 }
  0x65   :  { %5438 = vmatmul.mubr.msk.f32.vlgmr.msra.gmra.mrb[20].mxu0 %vm115_vm0, %v8385_v27  ;;  %884 = vmatpush1.msra.mxu1 %v8248_v7 }
  0x66   :  { %6452 = vmatpush1.bf16.msra.mxu0 %v8387_v28  ;;  %782 = vmatprep.mubr.f32.mxu1 %v9647_v1 }
  0x67   :  { %6454 = vmatprep.subr.bf16.mxu0 %v8389_v29  ;;  %1054 = vmatprep.subr.mxu1 %v8238_v5 }
  0x68   :  { %5417 = vmatmul.mubr.msk.f32.gmra.mrb[22].mxu1 %vm115_vm0, %v8290_v11  ;;  %1389 = vmatprep.mubr.f32.mxu0 %v9647_v1  ;;  %v1489_v11 = vld [vmem:[#allocation5 + $0x40] sm:$0xff] }
  0x69   :  { %947 = vmatprep.mubr.f32.mxu1 %v9647_v1  ;;  %5439 = vmatmul.mubr.msk.f32.gmra.mrb[22].mxu0 %vm115_vm0, %v8403_v35 }
  0x6a   :  { %6456 = vmatpush1.bf16.msra.mxu0 %v8398_v34  ;;  %1600 = vmatprep.mubr.f32.mxu0 %v9647_v1 }
  0x6b   :  { %6458 = vmatprep.subr.bf16.mxu0 %v8406_v36 }
  0x6c   :  { %5422 = vmatmul.mubr.msk.f32.vlgmr.msra.gmra.mrb[24].mxu1 %vm115_vm0, %v8306_v13  ;;  %v1495_v13 = vld [vmem:[#allocation5 + $0x70] sm:$0xff] }
  0x6d   :  { %1055 = vmatpush1.msra.mxu1 %v8248_v7  ;;  %953 = vmatprep.mubr.f32.mxu1 %v9647_v1 }
  0x6e   :  { %6460 = vmatpush1.bf16.msra.mxu0 %v8416_v41  ;;  %1225 = vmatprep.subr.mxu1 %v8238_v5 }
  0x6f   :  { %6462 = vmatprep.subr.bf16.mxu0 %v8420_v42 }
  0x70   :  { %5423 = vmatmul.mubr.msk.f32.gmra.mrb[26].mxu1 %vm115_vm0, %v8320_v15  ;;  %v8486_v15 = vpack.c.bf16 %v1498_v14, %v1495_v13 }
  0x71   :  { %1118 = vmatprep.mubr.f32.mxu1 %v9647_v1 }
  0x72   :  { %6464 = vmatpush1.bf16.msra.mxu0 %v8427_v47 }
  0x73   :  { %6466 = vmatprep.subr.bf16.mxu0 %v8431_v48 }
  0x74   :  { %5428 = vmatmul.mubr.msk.f32.vlgmr.msra.gmra.mrb[28].mxu1 %vm115_vm0, %v8333_v16  ;;  %v1501_v16 = vld [vmem:[#allocation5 + $0xa0] sm:$0xff] }
  0x75   :  { %1226 = vmatpush1.msra.mxu1 %v8248_v7  ;;  %1124 = vmatprep.mubr.f32.mxu1 %v9647_v1 }
  0x76   :  { %6468 = vmatpush1.bf16.msra.mxu0 %v8437_v53  ;;  %1396 = vmatprep.subr.mxu1 %v8238_v5  ;;  %v8459_v5 = vpack.c.bf16 %v1486_v0, %v1483_v63 }
  0x77   :  { %6470 = vmatprep.subr.bf16.mxu0 %v8440_v54 }
  0x78   :  { %5429 = vmatmul.mubr.msk.f32.gmra.mrb[30].mxu1 %vm115_vm0, %v8344_v17  ;;  %v1504_v17 = vld [vmem:[#allocation5 + $0xb8] sm:$0xff] }
  0x79   :  { %1289 = vmatprep.mubr.f32.mxu1 %v9647_v1  ;;  %v8496_v18 = vpack.c.bf16 %v1504_v17, %v1501_v16 }
  0x7a   :  { %6472 = vmatpush1.bf16.msra.mxu0 %v8447_v59 }
  0x7b   :  { %6474 = vmatprep.subr.bf16.mxu0 %v8451_v61 }
  0x7c   :  { %5434 = vmatmul.mubr.msk.f32.vlgmr.msra.gmra.mrb[32].mxu1 %vm115_vm0, %v8357_v20  ;;  %v1510_v20 = vld [vmem:[#allocation5 + $0xe8] sm:$0xff] }
  0x7d   :  { %1397 = vmatpush1.msra.mxu1 %v8248_v7  ;;  %1295 = vmatprep.mubr.f32.mxu1 %v9647_v1  ;;  %v8477_v7 = vpack.c.bf16 %v1492_v12, %v1489_v11 }
  0x7e   :  { %6476 = vmatpush1.bf16.msra.mxu0 %v8457_v4  ;;  %6482 = vmatprep.subr.bf16.mxu1 %v8459_v5 }
  0x7f   :  { %6478 = vmatprep.subr.bf16.mxu0 %v8462_v6 }
  0x80   :  { %5435 = vmatmul.mubr.msk.f32.gmra.mrb[34].mxu1 %vm115_vm0, %v8371_v22  ;;  %v8504_v22 = vpack.c.bf16 %v1510_v20, %v1507_v19 }
  0x81   :  { %1460 = vmatprep.mubr.f32.mxu1 %v9647_v1 }
  0x82   :  { %6480 = vmatpush1.bf16.msra.mxu0 %v8469_v10 }
  0x83   :  { %6514 = vmatprep.subr.bf16.mxu0 %v8361_v21 }
  0x84   :  { %5440 = vmatmul.mubr.msk.f32.vlgmr.msra.gmra.mrb[36].mxu1 %vm115_vm0, %v8385_v27  ;;  %v1522_v27 = vld [vmem:[#allocation5 + $0x148] sm:$0xff] }
  0x85   :  { %1601 = vmatmul.mubr.f32.vlgmr.msra.gmra.mrb[24].mxu0 %v9647_v1  ;;  %6484 = vmatpush3.bf16.msra.mxu1 %v8459_v5  ;;  %v8516_v30 = vpack.c.bf16 %v1522_v27, %v1519_v26 }
  0x86   :  { %1606 = vmatprep.mubr.f32.mxu0 %v9647_v1  ;;  %1466 = vmatprep.mubr.f32.mxu1 %v9647_v1 }
  0x87   :  { %6486 = vmatprep.subr.bf16.mxu1 %v8477_v7  ;;  %6516 = vmatpush1.bf16.msra.mxu0 %v8387_v28 }
  0x88   :  { %5441 = vmatmul.mubr.msk.f32.gmra.mrb[38].mxu1 %vm115_vm0, %v8403_v35  ;;  %6518 = vmatprep.subr.bf16.mxu0 %v8389_v29 }
  0x89   :  { %1607 = vmatmul.mubr.f32.gmra.mrb[26].mxu0 %v9647_v1  ;;  %6488 = vmatpush3.bf16.msra.mxu1 %v8477_v7 }
  0x8a   :  { %6490 = vmatprep.subr.bf16.mxu1 %v8486_v15  ;;  %5865 = vmatprep.mubr.f32.mxu1 %v9647_v1 }
  0x8b   :  { %6520 = vmatpush1.bf16.msra.mxu0 %v8398_v34  ;;  %1804 = vmatprep.mubr.f32.mxu0 %v9647_v1 }
  0x8c   :  { %6522 = vmatprep.subr.bf16.mxu0 %v8406_v36 }
  0x8d   :  { %6492 = vmatpush3.bf16.msra.mxu1 %v8486_v15 }
  0x8e   :  { %6494 = vmatprep.subr.bf16.mxu1 %v8496_v18 }
  0x8f   :  { %6524 = vmatpush1.bf16.msra.mxu0 %v8416_v41 }
  0x90   :  { %6526 = vmatprep.subr.bf16.mxu0 %v8420_v42 }
  0x91   :  { %6496 = vmatpush3.bf16.msra.mxu1 %v8496_v18 }
  0x92   :  { %6498 = vmatprep.subr.bf16.mxu1 %v8504_v22 }
  0x93   :  { %6528 = vmatpush1.bf16.msra.mxu0 %v8427_v47 }
  0x94   :  { %6530 = vmatprep.subr.bf16.mxu0 %v8431_v48 }
  0x95   :  { %6500 = vmatpush3.bf16.msra.mxu1 %v8504_v22 }
  0x96   :  { %6502 = vmatprep.subr.bf16.mxu1 %v8510_v25 }
  0x97   :  { %6532 = vmatpush1.bf16.msra.mxu0 %v8437_v53 }
  0x98   :  { %6534 = vmatprep.subr.bf16.mxu0 %v8440_v54 }
  0x99   :  { %6504 = vmatpush3.bf16.msra.mxu1 %v8510_v25 }
  0x9a   :  { %6506 = vmatprep.subr.bf16.mxu1 %v8516_v30 }
  0x9b   :  { %6536 = vmatpush1.bf16.msra.mxu0 %v8447_v59 }
  0x9c   :  { %6538 = vmatprep.subr.bf16.mxu0 %v8451_v61 }
  0x9d   :  { %6508 = vmatpush3.bf16.msra.mxu1 %v8516_v30 }
  0x9e   :  { %6510 = vmatprep.subr.bf16.mxu1 %v8522_v33 }
  0x9f   :  { %6540 = vmatpush1.bf16.msra.mxu0 %v8457_v4 }
  0xa0   :  { %6542 = vmatprep.subr.bf16.mxu0 %v8462_v6 }
  0xa1   :  { %6512 = vmatpush3.bf16.msra.mxu1 %v8522_v33 }
  0xa2   :  { %6546 = vmatprep.subr.bf16.mxu1 %v8459_v5 }
  0xa3   :  { %6544 = vmatpush1.bf16.msra.mxu0 %v8469_v10 }
  0xa4   :  { %5866 = vmatmul.mubr.f32.vlgmr.msra.gmra.mrb[40].mxu1 %v9647_v1  ;;  %6578 = vmatprep.subr.bf16.mxu0 %v8361_v21 }
  0xa5   :  { %6548 = vmatpush3.bf16.msra.mxu1 %v8459_v5 }
  0xa6   :  { %6550 = vmatprep.subr.bf16.mxu1 %v8477_v7 }
  0xa9   :  { %6552 = vmatpush3.bf16.msra.mxu1 %v8477_v7 }
  0xaa   :  { %6554 = vmatprep.subr.bf16.mxu1 %v8486_v15 }
  0xad   :  { %6556 = vmatpush3.bf16.msra.mxu1 %v8486_v15 }
  0xae   :  { %6558 = vmatprep.subr.bf16.mxu1 %v8496_v18 }
  0xb1   :  { %6560 = vmatpush3.bf16.msra.mxu1 %v8496_v18 }
  0xb2   :  { %6562 = vmatprep.subr.bf16.mxu1 %v8504_v22 }
  0xb5   :  { %6564 = vmatpush3.bf16.msra.mxu1 %v8504_v22 }
  0xb6   :  { %6566 = vmatprep.subr.bf16.mxu1 %v8510_v25 }
  0xb9   :  { %6568 = vmatpush3.bf16.msra.mxu1 %v8510_v25 }
  0xba   :  { %6570 = vmatprep.subr.bf16.mxu1 %v8516_v30 }
  0xbd   :  { %6572 = vmatpush3.bf16.msra.mxu1 %v8516_v30 }
  0xbe   :  { %6574 = vmatprep.subr.bf16.mxu1 %v8522_v33 }
  0xc1   :  { %6576 = vmatpush3.bf16.msra.mxu1 %v8522_v33 }
  0xc2   :  { %6610 = vmatprep.subr.bf16.mxu1 %v8459_v5 }
 0x10f   :  { %v8551_v35 = vpop.f32.mrb[0].mxu1 }
 0x110   :  { %v8553_v37 = vpop.f32.mrb[1].mxu1 }
 0x113   :  { %v8555_v38 = vpop.f32.mrb[2].mxu1 }
 0x114   :  { %v8557_v39 = vpop.f32.mrb[3].mxu1 }
 0x117   :  { %v8559_v40 = vpop.f32.mrb[4].mxu1 }
 0x118   :  { %v267_v43 = vpop.f32.mrb[5].mxu1 }
 0x119   :  { %v268_v63 = vadd.f32 %v267_v43, %v8580_v58 }
 0x11b   :  { %v8561_v45 = vpop.f32.mrb[6].mxu1 }
 0x11c   :  { %v273_v46 = vpop.f32.mrb[7].mxu1 }
 0x11d   :  { %v274_v9 = vadd.f32 %v273_v46, %v8580_v58 }
 0x11f   :  { %v8565_v50 = vpop.f32.mrb[8].mxu1 }
 0x120   :  { %v8567_v51 = vpop.f32.mrb[9].mxu1 }
 0x123   :  { %v8570_v55 = vpop.f32.mrb[10].mxu1 }
 0x124   :  { %v8577_v57 = vpop.f32.mrb[11].mxu1 }
 0x127   :  { %v8582_v60 = vpop.f32.mrb[12].mxu1 }
 0x128   :  { %v438_v62 = vpop.f32.mrb[13].mxu1 }
 0x129   :  { %v439_v0 = vadd.f32 %v438_v62, %v8580_v58 }
 0x12b   :  { %v453_v2 = vadd.f32 %v439_v0, %v268_v63  ;;  %v8586_v3 = vpop.f32.mrb[14].mxu1 }
 0x12c   :  { %v444_v8 = vpop.f32.mrb[15].mxu1 }
 0x12d   :  { %v445_v11 = vadd.f32 %v444_v8, %v8580_v58 }
 0x12f   :  { %v454_v12 = vadd.f32 %v445_v11, %v274_v9  ;;  %v8590_v13 = vpop.f32.mrb[16].mxu1 }
 0x130   :  { %v609_v14 = vpop.f32.mrb[17].mxu1 }
 0x131   :  { %v610_v16 = vadd.f32 %v609_v14, %v8580_v58 }
 0x133   :  { %v624_v17 = vadd.f32 %v610_v16, %v453_v2  ;;  %v8593_v19 = vpop.f32.mrb[18].mxu1 }
 0x134   :  { %v615_v20 = vpop.f32.mrb[19].mxu1 }
 0x135   :  { %v616_v23 = vadd.f32 %v615_v20, %v8580_v58 }
 0x137   :  { %v625_v24 = vadd.f32 %v616_v23, %v454_v12  ;;  %v8596_v26 = vpop.f32.mrb[20].mxu1 }
 0x138   :  { %v780_v27 = vpop.f32.mrb[21].mxu1 }
 0x139   :  { %v781_v31 = vadd.f32 %v780_v27, %v8580_v58 }
 0x13b   :  { %v795_v32 = vadd.f32 %v781_v31, %v624_v17  ;;  %v8599_v43 = vpop.f32.mrb[22].mxu1  ;;  %v9646_v31 = vsub.s32 0, %v8563_v49 }
 0x13c   :  { %v786_v44 = vpop.f32.mrb[23].mxu1 }
 0x13d   :  { %v787_v46 = vadd.f32 %v786_v44, %v8580_v58 }
 0x13f   :  { %v796_v52 = vadd.f32 %v787_v46, %v625_v24  ;;  %v8602_v62 = vpop.f32.mrb[24].mxu1  ;;  %v9649_v46 = vsub.s32 1, %v8563_v49 }
 0x140   :  { %v951_v63 = vpop.f32.mrb[25].mxu1 }
 0x141   :  { %v952_v0 = vadd.f32 %v951_v63, %v8580_v58 }
 0x143   :  { %v966_v2 = vadd.f32 %v952_v0, %v795_v32  ;;  %v8605_v8 = vpop.f32.mrb[26].mxu1  ;;  %v8622_v0 = vrot.slane %v8575_v56, %v9646_v31 }
 0x144   :  { %v957_v9 = vpop.f32.mrb[27].mxu1 }
 0x145   :  { %v958_v11 = vadd.f32 %v957_v9, %v8580_v58 }
 0x147   :  { %v967_v12 = vadd.f32 %v958_v11, %v796_v52  ;;  %v8608_v14 = vpop.f32.mrb[28].mxu1  ;;  %v8629_v11 = vrot.slane %v8575_v56, %v9649_v46 }
 0x148   :  { %9658 = vst [vmem:[#allocation13_spill] sm:$0xff] %v8608_v14  ;;  %v1122_v16 = vpop.f32.mrb[29].mxu1 }
 0x149   :  { %v1123_v17 = vadd.f32 %v1122_v16, %v8580_v58 }
 0x14b   :  { %v1137_v20 = vadd.f32 %v1123_v17, %v966_v2  ;;  %v8611_v23 = vpop.f32.mrb[30].mxu1  ;;  %v189_v17 = vadd.f32 %v8551_v35, %v8622_v0  ;;  %v197_v35 = vadd.f32 %v8557_v39, %v8629_v11 }
 0x14c   :  { %9659 = vst [vmem:[#allocation14_spill] sm:$0xff] %v8611_v23  ;;  %v1128_v24 = vpop.f32.mrb[31].mxu1 }
 0x14d   :  { %v1129_v27 = vadd.f32 %v1128_v24, %v8580_v58 }
 0x14f   :  { %v1138_v32 = vadd.f32 %v1129_v27, %v967_v12  ;;  %v8615_v44 = vpop.f32.mrb[32].mxu1 }
 0x150   :  { %9660 = vst [vmem:[#allocation15_spill] sm:$0xff] %v8615_v44  ;;  %v1293_v63 = vpop.f32.mrb[33].mxu1  ;;  %v195_v44 = vadd.f32 %v8555_v38, %v8622_v0 }
 0x151   :  { %v1294_v52 = vadd.f32 %v1293_v63, %v8580_v58  ;;  %v191_v63 = vadd.f32 %v8553_v37, %v8629_v11  ;;  %v5512_v37 = vld [vmem:[%s9634_s2] ss:$0 sm:$0xff] }
 0x153   :  { %v1308_v2 = vadd.f32 %v1294_v52, %v1137_v20  ;;  %v8624_v9 = vpop.f32.mrb[34].mxu1 }
 0x154   :  { %9661 = vst [vmem:[#allocation16_spill] sm:$0xff] %v8624_v9  ;;  %v1299_v12 = vpop.f32.mrb[35].mxu1 }
 0x155   :  { %v1300_v16 = vadd.f32 %v1299_v12, %v8580_v58 }
 0x157   :  { %v1309_v24 = vadd.f32 %v1300_v16, %v1138_v32  ;;  %v8634_v27 = vpop.f32.mrb[36].mxu1 }
 0x158   :  { %9662 = vst [vmem:[#allocation17_spill] sm:$0xff] %v8634_v27  ;;  %v1602_v20 = vpop.f32.mrb[24].mxu0  ;;  %v1464_v52 = vpop.f32.mrb[37].mxu1 }
 0x159   :  { %v1690_v31 = vadd.f32 %v1602_v20, %v189_v17  ;;  %v1604_v1 = vpop.f32.mrb[25].mxu0  ;;  %v1465_v9 = vadd.f32 %v1464_v52, %v8580_v58 }
 0x15a   :  { %v1706_v46 = vadd.f32 %v1604_v1, %v191_v63 }
 0x15b   :  { %v5443_v12 = vmul.f32 -1.442695, %v1690_v31  ;;  %v1479_v23 = vadd.f32 %v1465_v9, %v1308_v2  ;;  %v8641_v14 = vpop.f32.mrb[38].mxu1 }
 0x15c   :  { %9663 = vst [vmem:[#allocation18_spill] sm:$0xff] %v8641_v14  ;;  %v1608_v32 = vpop.f32.mrb[26].mxu0  ;;  %v1470_v16 = vpop.f32.mrb[39].mxu1 }
 0x15d   :  { %v5308_v17 = vmul.f32 0.125, %v1479_v23  ;;  %v1691_v20 = vadd.f32 %v1608_v32, %v195_v44  ;;  %v1610_v52 = vpop.f32.mrb[27].mxu0  ;;  %v1471_v1 = vadd.f32 %v1470_v16, %v8580_v58  ;;  %7673 = vpow2.f32 %v5443_v12  ;;  %v5361_v58 = vld [vmem:[%s9633_s1] sm:$0xff] }
 0x15e   :  { %v1707_v63 = vadd.f32 %v1610_v52, %v197_v35  ;;  %v5445_v23 = vmul.f32 -1.442695, %v1706_v46  ;;  %v9650_v32 = vsub.s32 2, %v8563_v49  ;;  %v8665_v46 = vld [vmem:[%s9640_s8] ss:$0 sm:$0xff] }
 0x15f   :  { %v8649_v38 = vadd.f32 %v5512_v37, %v5308_v17  ;;  %v5444_v31 = vmul.f32 -1.442695, %v1691_v20  ;;  %v1480_v2 = vadd.f32 %v1471_v1, %v1309_v24 }
 0x160   :  { %v5446_v14 = vmul.f32 -1.442695, %v1707_v63 }
 0x161   :  { %9664 = vst [vmem:[#allocation19_spill] sm:$0xff] %v8649_v38  ;;  %7675 = vpow2.f32 %v5444_v31  ;;  %v5309_v9 = vmul.f32 0.125, %v1480_v2  ;;  %5321 = vrot.lane.b32.xlu0 %v8649_v38, %s8091_s7 }
 0x162   :  { %7677 = vpow2.f32 %v5446_v14  ;;  %v8670_v14 = vrot.slane %v8575_v56, %v9650_v32 }
 0x163   :  { %v8653_v39 = vadd.f32 %v5512_v37, %v5309_v9  ;;  %7679 = vpow2.f32 %v5445_v23 }
 0x164   :  { %v272_v23 = vadd.f32 %v8561_v45, %v8670_v14 }
 0x165   :  { %5323 = vrot.lane.b32.xlu0 %v8653_v39, %s8091_s7 }
 0x167   :  { %v7674_v44 = vpop.eup %7673 }
 0x168   :  { %v1698_v12 = vadd.f32 1.0, %v7674_v44  ;;  %v266_v44 = vadd.f32 %v8559_v40, %v8670_v14  ;;  %v9665_v40 = vmov 0.0  }
 0x169   :  { %5365 = vrot.lane.b32.xlu0 %v5361_v58, %s8092_s14 }
 0x16b   :  { %v7676_v24 = vpop.eup %7675 }
 0x16c   :  { %v1699_v35 = vadd.f32 1.0, %v7676_v24  ;;  %v7678_v37 = vpop.eup %7677 }
 0x16d   :  { %v7680_v16 = vpop.eup %7679  ;;  %v1715_v17 = vadd.f32 1.0, %v7678_v37 }
 0x16e   :  { %7681 = vrcp.f32 %v1699_v35  ;;  %v1714_v20 = vadd.f32 1.0, %v7680_v16 }
 0x16f   :  { %7683 = vrcp.f32 %v1698_v12 }
 0x170   :  { %7685 = vrcp.f32 %v1715_v17 }
 0x171   :  { %7687 = vrcp.f32 %v1714_v20 }
 0x177   :  { %v5867_v52 = vpop.f32.mrb[40].mxu1 }
 0x178   :  { %v1723_v1 = vadd.f32 %v5867_v52, %v8665_v46  ;;  %v1679_v63 = vpop.f32.mrb[41].mxu1  ;;  %v7682_v31 = vpop.eup %7681 }
 0x179   :  { %v1722_v2 = vadd.f32 %v8665_v46, %v1679_v63  ;;  %v7684_v9 = vpop.eup %7683 }
 0x17a   :  { %v1725_v58 = vmul.f32 %v7682_v31, %v1723_v1  ;;  %v7686_v35 = vpop.eup %7685 }
 0x17b   :  { %v1724_v56 = vmul.f32 %v7684_v9, %v1722_v2  ;;  %v7688_v37 = vpop.eup %7687  ;;  %v1731_v16 = vsub.f32 1.0, %v7686_v35  ;;  %v1735_v27 = vmul.f32 0.0, %v7686_v35  ;;  %v5362_v2 = vld [vmem:[%s9633_s1 + $0x8] sm:$0xff]  ;;  %v360_v9 = vadd.f32 %v8565_v50, %v8622_v0 }
 0x17c   :  { %v1727_v24 = vadd.f32 %v1725_v58, %v272_v23  ;;  %v1730_v63 = vsub.f32 1.0, %v7688_v37  ;;  %v1734_v17 = vmul.f32 0.0, %v7688_v37  ;;  %v362_v23 = vadd.f32 %v8567_v51, %v8629_v11 }
 0x17d   :  { %v1726_v12 = vadd.f32 %v1724_v56, %v266_v44  ;;  %v366_v37 = vadd.f32 %v8570_v55, %v8622_v0 }
 0x17e   :  { %7689 = vtanh.f32 %v1727_v24 }
 0x17f   :  { %7691 = vtanh.f32 %v1726_v12 }
 0x188   :  { %v7690_v52 = vpop.eup %7689 }
 0x189   :  { %v7692_v32 = vpop.eup %7691  ;;  %v1733_v49 = vmul.f32 %v7690_v52, %v1731_v16  ;;  %v368_v52 = vadd.f32 %v8577_v57, %v8629_v11 }
 0x18a   :  { %v1732_v45 = vmul.f32 %v7692_v32, %v1730_v63 }
 0x18b   :  { %v8678_v1 = vadd.f32 %v1735_v27, %v1733_v49 }
 0x18c   :  { %v8680_v31 = vadd.f32 %v1734_v17, %v1732_v45 }
 0x18e   :  { %1805 = vmatmul.mubr.f32.vlgmr.msra.gmra.mrb[28].mxu0 %v8680_v31  ;;  %5900 = vmatprep.mubr.f32.mxu1 %v8680_v31 }
 0x18f   :  { %5901 = vmatmul.mubr.f32.vlgmr.msra.gmra.mrb[42].mxu1 %v8678_v1  ;;  %1810 = vmatprep.mubr.f32.mxu0 %v9665_v40 }
 0x190   :  { %6580 = vmatpush1.bf16.msra.mxu0 %v8387_v28  ;;  %6612 = vmatpush3.bf16.msra.mxu1 %v8459_v5 }
 0x191   :  { %6582 = vmatprep.subr.bf16.mxu0 %v8389_v29  ;;  %6614 = vmatprep.subr.bf16.mxu1 %v8477_v7 }
 0x192   :  { %1811 = vmatmul.mubr.f32.gmra.mrb[30].mxu0 %v8678_v1 }
 0x193   :  { %2008 = vmatprep.mubr.f32.mxu0 %v9665_v40 }
 0x194   :  { %6584 = vmatpush1.bf16.msra.mxu0 %v8398_v34  ;;  %6616 = vmatpush3.bf16.msra.mxu1 %v8477_v7 }
 0x195   :  { %6586 = vmatprep.subr.bf16.mxu0 %v8406_v36  ;;  %6618 = vmatprep.subr.bf16.mxu1 %v8486_v15 }
 0x198   :  { %6588 = vmatpush1.bf16.msra.mxu0 %v8416_v41  ;;  %6620 = vmatpush3.bf16.msra.mxu1 %v8486_v15 }
 0x199   :  { %6590 = vmatprep.subr.bf16.mxu0 %v8420_v42  ;;  %6622 = vmatprep.subr.bf16.mxu1 %v8496_v18 }
 0x19c   :  { %6592 = vmatpush1.bf16.msra.mxu0 %v8427_v47  ;;  %6624 = vmatpush3.bf16.msra.mxu1 %v8496_v18 }
 0x19d   :  { %6594 = vmatprep.subr.bf16.mxu0 %v8431_v48  ;;  %6626 = vmatprep.subr.bf16.mxu1 %v8504_v22 }
 0x1a0   :  { %6596 = vmatpush1.bf16.msra.mxu0 %v8437_v53  ;;  %6628 = vmatpush3.bf16.msra.mxu1 %v8504_v22 }
 0x1a1   :  { %6598 = vmatprep.subr.bf16.mxu0 %v8440_v54  ;;  %6630 = vmatprep.subr.bf16.mxu1 %v8510_v25 }
 0x1a4   :  { %6600 = vmatpush1.bf16.msra.mxu0 %v8447_v59  ;;  %6632 = vmatpush3.bf16.msra.mxu1 %v8510_v25 }
 0x1a5   :  { %6602 = vmatprep.subr.bf16.mxu0 %v8451_v61  ;;  %6634 = vmatprep.subr.bf16.mxu1 %v8516_v30 }
 0x1a8   :  { %6604 = vmatpush1.bf16.msra.mxu0 %v8457_v4  ;;  %6636 = vmatpush3.bf16.msra.mxu1 %v8516_v30 }
 0x1a9   :  { %6606 = vmatprep.subr.bf16.mxu0 %v8462_v6  ;;  %6638 = vmatprep.subr.bf16.mxu1 %v8522_v33 }
 0x1ac   :  { %6608 = vmatpush1.bf16.msra.mxu0 %v8469_v10  ;;  %6640 = vmatpush3.bf16.msra.mxu1 %v8522_v33 }
 0x1ad   :  { %6642 = vmatprep.subr.bf16.mxu0 %v8361_v21  ;;  %6674 = vmatprep.subr.bf16.mxu1 %v8459_v5 }
 0x1d3   :  { %v5322_v49 = vpop.permute.xlu0 %5321 }
 0x1d4   :  { %v8721_v27 = vmax.f32 %v8649_v38, %v5322_v49 }
 0x1d6   :  { %9666 = vst [vmem:[#allocation20_spill] sm:$0xff] %v8721_v27  ;;  %5337 = vrot.lane.b32.xlu1 %v8721_v27, %s8092_s14 }
 0x1d7   :  { %v5324_v32 = vpop.permute.xlu0 %5323 }
 0x1d8   :  { %v8726_v20 = vmax.f32 %v8653_v39, %v5324_v32 }
 0x1da   :  { %9667 = vst [vmem:[#allocation21_spill] sm:$0xff] %v8726_v20  ;;  %5339 = vrot.lane.b32.xlu1 %v8726_v20, %s8092_s14 }
 0x1de   :  { %5367 = vrot.lane.b32.xlu1 %v5362_v2, %s8092_s14 }
 0x261   :  { %v1806_v58 = vpop.f32.mrb[28].mxu0 }
 0x262   :  { %v1894_v44 = vadd.f32 %v1806_v58, %v360_v9  ;;  %v1808_v56 = vpop.f32.mrb[29].mxu0  ;;  %v5902_v24 = vpop.f32.mrb[42].mxu1 }
 0x263   :  { %v1910_v12 = vadd.f32 %v1808_v56, %v362_v23  ;;  %v1883_v35 = vpop.f32.mrb[43].mxu1 }
 0x264   :  { %v5447_v16 = vmul.f32 -1.442695, %v1894_v44  ;;  %v1926_v56 = vadd.f32 %v8665_v46, %v1883_v35 }
 0x265   :  { %v1812_v63 = vpop.f32.mrb[30].mxu0  ;;  %v5449_v51 = vmul.f32 -1.442695, %v1910_v12  ;;  %v437_v12 = vadd.f32 %v8582_v60, %v8670_v14 }
 0x266   :  { %7693 = vpow2.f32 %v5447_v16  ;;  %v1895_v45 = vadd.f32 %v1812_v63, %v366_v37  ;;  %v1814_v50 = vpop.f32.mrb[31].mxu0  ;;  %v1927_v63 = vadd.f32 %v5902_v24, %v8665_v46 }
 0x267   :  { %v1911_v17 = vadd.f32 %v1814_v50, %v368_v52 }
 0x268   :  { %v5448_v49 = vmul.f32 -1.442695, %v1895_v45 }
 0x269   :  { %v5450_v32 = vmul.f32 -1.442695, %v1911_v17  ;;  %v443_v17 = vadd.f32 %v8586_v3, %v8670_v14 }
 0x26a   :  { %7695 = vpow2.f32 %v5448_v49 }
 0x26b   :  { %7697 = vpow2.f32 %v5449_v51 }
 0x26c   :  { %7699 = vpow2.f32 %v5450_v32 }
 0x270   :  { %v7694_v2 = vpop.eup %7693 }
 0x271   :  { %v1902_v9 = vadd.f32 1.0, %v7694_v2 }
 0x273   :  { %7701 = vrcp.f32 %v1902_v9 }
 0x274   :  { %v7696_v23 = vpop.eup %7695 }
 0x275   :  { %v1903_v55 = vadd.f32 1.0, %v7696_v23  ;;  %v7698_v58 = vpop.eup %7697 }
 0x276   :  { %v7700_v44 = vpop.eup %7699  ;;  %v1918_v57 = vadd.f32 1.0, %v7698_v58 }
 0x277   :  { %7703 = vrcp.f32 %v1903_v55  ;;  %v1919_v16 = vadd.f32 1.0, %v7700_v44 }
 0x278   :  { %7705 = vrcp.f32 %v1918_v57 }
 0x279   :  { %7707 = vrcp.f32 %v1919_v16 }
 0x27d   :  { %v7702_v37 = vpop.eup %7701 }
 0x27e   :  { %v1928_v52 = vmul.f32 %v7702_v37, %v1926_v56 }
 0x280   :  { %v1930_v45 = vadd.f32 %v1928_v52, %v437_v12 }
 0x281   :  { %v7704_v50 = vpop.eup %7703 }
 0x282   :  { %7709 = vtanh.f32 %v1930_v45  ;;  %v1929_v49 = vmul.f32 %v7704_v50, %v1927_v63  ;;  %v7706_v35 = vpop.eup %7705 }
 0x283   :  { %v7708_v32 = vpop.eup %7707  ;;  %v1934_v2 = vsub.f32 1.0, %v7706_v35  ;;  %v1938_v60 = vmul.f32 %v7706_v35, %v8680_v31 }
 0x284   :  { %v1931_v51 = vadd.f32 %v1929_v49, %v443_v17  ;;  %v1935_v55 = vsub.f32 1.0, %v7708_v32  ;;  %v1939_v44 = vmul.f32 %v7708_v32, %v8678_v1 }
 0x286   :  { %7711 = vtanh.f32 %v1931_v51 }
 0x28c   :  { %v7710_v9 = vpop.eup %7709 }
 0x28d   :  { %v1936_v23 = vmul.f32 %v7710_v9, %v1934_v2 }
 0x28f   :  { %v8749_v58 = vadd.f32 %v1938_v60, %v1936_v23 }
 0x290   :  { %v7712_v24 = vpop.eup %7711 }
 0x291   :  { %2009 = vmatmul.mubr.f32.vlgmr.msra.gmra.mrb[0].mxu0 %v8749_v58  ;;  %5935 = vmatprep.mubr.f32.mxu1 %v8749_v58  ;;  %v1937_v3 = vmul.f32 %v7712_v24, %v1935_v55 }
 0x292   :  { %2014 = vmatprep.mubr.f32.mxu0 %v9665_v40  ;;  %6644 = vmatpush1.bf16.msra.mxu0 %v8387_v28 }
 0x293   :  { %v8756_v57 = vadd.f32 %v1939_v44, %v1937_v3  ;;  %6646 = vmatprep.subr.bf16.mxu0 %v8389_v29 }
 0x295   :  { %2015 = vmatmul.mubr.f32.gmra.mrb[2].mxu0 %v8756_v57  ;;  %5936 = vmatmul.mubr.f32.vlgmr.msra.gmra.mrb[44].mxu1 %v8756_v57 }
 0x296   :  { %6648 = vmatpush1.bf16.msra.mxu0 %v8398_v34  ;;  %6676 = vmatpush3.bf16.msra.mxu1 %v8459_v5 }
 0x297   :  { %6650 = vmatprep.subr.bf16.mxu0 %v8406_v36  ;;  %6678 = vmatprep.subr.bf16.mxu1 %v8477_v7 }
 0x298   :  { %2212 = vmatprep.mubr.f32.mxu0 %v9665_v40 }
 0x29a   :  { %6652 = vmatpush1.bf16.msra.mxu0 %v8416_v41  ;;  %6680 = vmatpush3.bf16.msra.mxu1 %v8477_v7 }
 0x29b   :  { %6654 = vmatprep.subr.bf16.mxu0 %v8420_v42  ;;  %6682 = vmatprep.subr.bf16.mxu1 %v8486_v15 }
 0x29e   :  { %6656 = vmatpush1.bf16.msra.mxu0 %v8427_v47  ;;  %6684 = vmatpush3.bf16.msra.mxu1 %v8486_v15 }
 0x29f   :  { %6658 = vmatprep.subr.bf16.mxu0 %v8431_v48  ;;  %6686 = vmatprep.subr.bf16.mxu1 %v8496_v18 }
 0x2a2   :  { %6660 = vmatpush1.bf16.msra.mxu0 %v8437_v53  ;;  %6688 = vmatpush3.bf16.msra.mxu1 %v8496_v18 }
 0x2a3   :  { %6662 = vmatprep.subr.bf16.mxu0 %v8440_v54  ;;  %6690 = vmatprep.subr.bf16.mxu1 %v8504_v22 }
 0x2a6   :  { %6664 = vmatpush1.bf16.msra.mxu0 %v8447_v59  ;;  %6692 = vmatpush3.bf16.msra.mxu1 %v8504_v22 }
 0x2a7   :  { %6666 = vmatprep.subr.bf16.mxu0 %v8451_v61  ;;  %6694 = vmatprep.subr.bf16.mxu1 %v8510_v25 }
 0x2aa   :  { %6668 = vmatpush1.bf16.msra.mxu0 %v8457_v4  ;;  %6696 = vmatpush3.bf16.msra.mxu1 %v8510_v25 }
 0x2ab   :  { %6670 = vmatprep.subr.bf16.mxu0 %v8462_v6  ;;  %6698 = vmatprep.subr.bf16.mxu1 %v8516_v30 }
 0x2ae   :  { %6672 = vmatpush1.bf16.msra.mxu0 %v8469_v10  ;;  %6700 = vmatpush3.bf16.msra.mxu1 %v8516_v30 }
 0x2af   :  { %6702 = vmatprep.subr.bf16.mxu1 %v8522_v33  ;;  %6706 = vmatprep.subr.bf16.mxu0 %v8361_v21 }
 0x2b2   :  { %6704 = vmatpush3.bf16.msra.mxu1 %v8522_v33 }
 0x2b3   :  { %6738 = vmatprep.subr.bf16.mxu1 %v8459_v5 }
 0x364   :  { %v2010_v56 = vpop.f32.mrb[0].mxu0 }
 0x365   :  { %v7553_v37 = vadd.f32 %v2010_v56, %v8622_v0  ;;  %v2012_v16 = vpop.f32.mrb[1].mxu0 }
 0x366   :  { %v7554_v52 = vadd.f32 %v2012_v16, %v8629_v11 }
 0x367   :  { %v5451_v12 = vmul.f32 -1.442695, %v7553_v37 }
 0x368   :  { %v2016_v63 = vpop.f32.mrb[2].mxu0  ;;  %v5937_v45 = vpop.f32.mrb[44].mxu1  ;;  %v5453_v32 = vmul.f32 -1.442695, %v7554_v52 }
 0x369   :  { %7713 = vpow2.f32 %v5451_v12  ;;  %v7555_v50 = vadd.f32 %v2016_v63, %v8622_v0  ;;  %v2018_v17 = vpop.f32.mrb[3].mxu0  ;;  %v2087_v49 = vpop.f32.mrb[45].mxu1  ;;  %v608_v12 = vadd.f32 %v8590_v13, %v8670_v14  ;;  %v2131_v63 = vadd.f32 %v5937_v45, %v8665_v46 }
 0x36a   :  { %v7556_v35 = vadd.f32 %v2018_v17, %v8629_v11  ;;  %v2130_v56 = vadd.f32 %v8665_v46, %v2087_v49 }
 0x36b   :  { %v5452_v51 = vmul.f32 -1.442695, %v7555_v50 }
 0x36c   :  { %v5454_v2 = vmul.f32 -1.442695, %v7556_v35 }
 0x36d   :  { %7715 = vpow2.f32 %v5452_v51  ;;  %v614_v51 = vadd.f32 %v8593_v19, %v8670_v14 }
 0x36e   :  { %7717 = vpow2.f32 %v5453_v32 }
 0x36f   :  { %7719 = vpow2.f32 %v5454_v2 }
 0x373   :  { %v7714_v9 = vpop.eup %7713 }
 0x374   :  { %v2106_v23 = vadd.f32 1.0, %v7714_v9 }
 0x376   :  { %7721 = vrcp.f32 %v2106_v23 }
 0x377   :  { %v7716_v60 = vpop.eup %7715 }
 0x378   :  { %v2107_v55 = vadd.f32 1.0, %v7716_v60  ;;  %v7718_v24 = vpop.eup %7717 }
 0x379   :  { %v7720_v3 = vpop.eup %7719  ;;  %v2122_v44 = vadd.f32 1.0, %v7718_v24 }
 0x37a   :  { %7723 = vrcp.f32 %v2107_v55  ;;  %v2123_v16 = vadd.f32 1.0, %v7720_v3 }
 0x37b   :  { %7725 = vrcp.f32 %v2122_v44 }
 0x37c   :  { %7727 = vrcp.f32 %v2123_v16 }
 0x380   :  { %v7722_v37 = vpop.eup %7721 }
 0x381   :  { %v2132_v52 = vmul.f32 %v7722_v37, %v2130_v56 }
 0x383   :  { %v2134_v50 = vadd.f32 %v2132_v52, %v608_v12 }
 0x384   :  { %v7724_v17 = vpop.eup %7723 }
 0x385   :  { %v2133_v35 = vmul.f32 %v7724_v17, %v2131_v63  ;;  %7729 = vtanh.f32 %v2134_v50  ;;  %v7726_v49 = vpop.eup %7725 }
 0x386   :  { %v7728_v2 = vpop.eup %7727  ;;  %v2138_v9 = vsub.f32 1.0, %v7726_v49  ;;  %v2142_v13 = vmul.f32 %v7726_v49, %v8749_v58 }
 0x387   :  { %v2135_v32 = vadd.f32 %v2133_v35, %v614_v51  ;;  %v2139_v55 = vsub.f32 1.0, %v7728_v2  ;;  %v2143_v3 = vmul.f32 %v7728_v2, %v8756_v57 }
 0x389   :  { %7731 = vtanh.f32 %v2135_v32 }
 0x38f   :  { %v7730_v23 = vpop.eup %7729 }
 0x390   :  { %v2140_v60 = vmul.f32 %v7730_v23, %v2138_v9 }
 0x392   :  { %v8803_v24 = vadd.f32 %v2142_v13, %v2140_v60 }
 0x393   :  { %v7732_v45 = vpop.eup %7731 }
 0x394   :  { %2213 = vmatmul.mubr.f32.vlgmr.msra.gmra.mrb[4].mxu0 %v8803_v24  ;;  %5970 = vmatprep.mubr.f32.mxu1 %v8803_v24  ;;  %v2141_v19 = vmul.f32 %v7732_v45, %v2139_v55 }
 0x395   :  { %2218 = vmatprep.mubr.f32.mxu0 %v9665_v40  ;;  %6708 = vmatpush1.bf16.msra.mxu0 %v8387_v28 }
 0x396   :  { %v8810_v44 = vadd.f32 %v2143_v3, %v2141_v19  ;;  %6710 = vmatprep.subr.bf16.mxu0 %v8389_v29 }
 0x398   :  { %2219 = vmatmul.mubr.f32.gmra.mrb[6].mxu0 %v8810_v44  ;;  %5971 = vmatmul.mubr.f32.vlgmr.msra.gmra.mrb[46].mxu1 %v8810_v44 }
 0x399   :  { %6712 = vmatpush1.bf16.msra.mxu0 %v8398_v34  ;;  %6740 = vmatpush3.bf16.msra.mxu1 %v8459_v5 }
 0x39a   :  { %6714 = vmatprep.subr.bf16.mxu0 %v8406_v36  ;;  %6742 = vmatprep.subr.bf16.mxu1 %v8477_v7 }
 0x39b   :  { %2416 = vmatprep.mubr.f32.mxu0 %v9665_v40 }
 0x39d   :  { %6716 = vmatpush1.bf16.msra.mxu0 %v8416_v41  ;;  %6744 = vmatpush3.bf16.msra.mxu1 %v8477_v7 }
 0x39e   :  { %6718 = vmatprep.subr.bf16.mxu0 %v8420_v42  ;;  %6746 = vmatprep.subr.bf16.mxu1 %v8486_v15 }
 0x3a1   :  { %6720 = vmatpush1.bf16.msra.mxu0 %v8427_v47  ;;  %6748 = vmatpush3.bf16.msra.mxu1 %v8486_v15 }
 0x3a2   :  { %6722 = vmatprep.subr.bf16.mxu0 %v8431_v48  ;;  %6750 = vmatprep.subr.bf16.mxu1 %v8496_v18 }
 0x3a5   :  { %6724 = vmatpush1.bf16.msra.mxu0 %v8437_v53  ;;  %6752 = vmatpush3.bf16.msra.mxu1 %v8496_v18 }
 0x3a6   :  { %6726 = vmatprep.subr.bf16.mxu0 %v8440_v54  ;;  %6754 = vmatprep.subr.bf16.mxu1 %v8504_v22 }
 0x3a9   :  { %6728 = vmatpush1.bf16.msra.mxu0 %v8447_v59  ;;  %6756 = vmatpush3.bf16.msra.mxu1 %v8504_v22 }
 0x3aa   :  { %6730 = vmatprep.subr.bf16.mxu0 %v8451_v61  ;;  %6758 = vmatprep.subr.bf16.mxu1 %v8510_v25 }
 0x3ad   :  { %6732 = vmatpush1.bf16.msra.mxu0 %v8457_v4  ;;  %6760 = vmatpush3.bf16.msra.mxu1 %v8510_v25 }
 0x3ae   :  { %6734 = vmatprep.subr.bf16.mxu0 %v8462_v6  ;;  %6762 = vmatprep.subr.bf16.mxu1 %v8516_v30 }
 0x3b1   :  { %6736 = vmatpush1.bf16.msra.mxu0 %v8469_v10  ;;  %6764 = vmatpush3.bf16.msra.mxu1 %v8516_v30 }
 0x3b2   :  { %6766 = vmatprep.subr.bf16.mxu1 %v8522_v33  ;;  %6770 = vmatprep.subr.bf16.mxu0 %v8361_v21 }
 0x3b5   :  { %6768 = vmatpush3.bf16.msra.mxu1 %v8522_v33 }
 0x3b6   :  { %6802 = vmatprep.subr.bf16.mxu1 %v8459_v5 }
 0x467   :  { %v2214_v56 = vpop.f32.mrb[4].mxu0 }
 0x468   :  { %v7557_v37 = vadd.f32 %v2214_v56, %v8622_v0  ;;  %v2216_v16 = vpop.f32.mrb[5].mxu0 }
 0x469   :  { %v7558_v52 = vadd.f32 %v2216_v16, %v8629_v11 }
 0x46a   :  { %v5455_v12 = vmul.f32 -1.442695, %v7557_v37 }
 0x46b   :  { %v2220_v63 = vpop.f32.mrb[6].mxu0  ;;  %v5972_v50 = vpop.f32.mrb[46].mxu1  ;;  %v5457_v2 = vmul.f32 -1.442695, %v7558_v52 }
 0x46c   :  { %7733 = vpow2.f32 %v5455_v12  ;;  %v7559_v17 = vadd.f32 %v2220_v63, %v8622_v0  ;;  %v2222_v51 = vpop.f32.mrb[7].mxu0  ;;  %v2291_v35 = vpop.f32.mrb[47].mxu1  ;;  %v779_v12 = vadd.f32 %v8596_v26, %v8670_v14  ;;  %v2335_v63 = vadd.f32 %v5972_v50, %v8665_v46 }
 0x46d   :  { %v7560_v49 = vadd.f32 %v2222_v51, %v8629_v11  ;;  %v2334_v56 = vadd.f32 %v8665_v46, %v2291_v35 }
 0x46e   :  { %v5456_v32 = vmul.f32 -1.442695, %v7559_v17 }
 0x46f   :  { %v5458_v9 = vmul.f32 -1.442695, %v7560_v49 }
 0x470   :  { %7735 = vpow2.f32 %v5456_v32  ;;  %v785_v32 = vadd.f32 %v8599_v43, %v8670_v14 }
 0x471   :  { %7737 = vpow2.f32 %v5457_v2 }
 0x472   :  { %7739 = vpow2.f32 %v5458_v9 }
 0x476   :  { %v7734_v23 = vpop.eup %7733 }
 0x477   :  { %v2310_v60 = vadd.f32 1.0, %v7734_v23 }
 0x479   :  { %7741 = vrcp.f32 %v2310_v60 }
 0x47a   :  { %v7736_v13 = vpop.eup %7735 }
 0x47b   :  { %v2311_v55 = vadd.f32 1.0, %v7736_v13  ;;  %v7738_v45 = vpop.eup %7737 }
 0x47c   :  { %v7740_v19 = vpop.eup %7739  ;;  %v2326_v3 = vadd.f32 1.0, %v7738_v45 }
 0x47d   :  { %7743 = vrcp.f32 %v2311_v55  ;;  %v2327_v16 = vadd.f32 1.0, %v7740_v19 }
 0x47e   :  { %7745 = vrcp.f32 %v2326_v3 }
 0x47f   :  { %7747 = vrcp.f32 %v2327_v16 }
 0x483   :  { %v7742_v37 = vpop.eup %7741 }
 0x484   :  { %v2336_v52 = vmul.f32 %v7742_v37, %v2334_v56 }
 0x486   :  { %v2338_v17 = vadd.f32 %v2336_v52, %v779_v12 }
 0x487   :  { %v7744_v51 = vpop.eup %7743 }
 0x488   :  { %v2337_v49 = vmul.f32 %v7744_v51, %v2335_v63  ;;  %7749 = vtanh.f32 %v2338_v17  ;;  %v7746_v35 = vpop.eup %7745 }
 0x489   :  { %v7748_v9 = vpop.eup %7747  ;;  %v2342_v23 = vsub.f32 1.0, %v7746_v35  ;;  %v2346_v26 = vmul.f32 %v7746_v35, %v8803_v24 }
 0x48a   :  { %v2339_v2 = vadd.f32 %v2337_v49, %v785_v32  ;;  %v2343_v55 = vsub.f32 1.0, %v7748_v9  ;;  %v2347_v19 = vmul.f32 %v7748_v9, %v8810_v44 }
 0x48c   :  { %7751 = vtanh.f32 %v2339_v2 }
 0x492   :  { %v7750_v60 = vpop.eup %7749 }
 0x493   :  { %v2344_v13 = vmul.f32 %v7750_v60, %v2342_v23 }
 0x495   :  { %v8857_v45 = vadd.f32 %v2346_v26, %v2344_v13 }
 0x496   :  { %v7752_v50 = vpop.eup %7751 }
 0x497   :  { %2417 = vmatmul.mubr.f32.vlgmr.msra.gmra.mrb[8].mxu0 %v8857_v45  ;;  %6005 = vmatprep.mubr.f32.mxu1 %v8857_v45  ;;  %v2345_v43 = vmul.f32 %v7752_v50, %v2343_v55 }
 0x498   :  { %2422 = vmatprep.mubr.f32.mxu0 %v9665_v40  ;;  %6772 = vmatpush1.bf16.msra.mxu0 %v8387_v28 }
 0x499   :  { %v8864_v3 = vadd.f32 %v2347_v19, %v2345_v43  ;;  %6774 = vmatprep.subr.bf16.mxu0 %v8389_v29 }
 0x49b   :  { %2423 = vmatmul.mubr.f32.gmra.mrb[10].mxu0 %v8864_v3  ;;  %6006 = vmatmul.mubr.f32.vlgmr.msra.gmra.mrb[48].mxu1 %v8864_v3 }
 0x49c   :  { %6776 = vmatpush1.bf16.msra.mxu0 %v8398_v34  ;;  %6804 = vmatpush3.bf16.msra.mxu1 %v8459_v5 }
 0x49d   :  { %6778 = vmatprep.subr.bf16.mxu0 %v8406_v36  ;;  %6806 = vmatprep.subr.bf16.mxu1 %v8477_v7 }
 0x49e   :  { %2620 = vmatprep.mubr.f32.mxu0 %v9665_v40 }
 0x4a0   :  { %6780 = vmatpush1.bf16.msra.mxu0 %v8416_v41  ;;  %6808 = vmatpush3.bf16.msra.mxu1 %v8477_v7 }
 0x4a1   :  { %6782 = vmatprep.subr.bf16.mxu0 %v8420_v42  ;;  %6810 = vmatprep.subr.bf16.mxu1 %v8486_v15 }
 0x4a4   :  { %6784 = vmatpush1.bf16.msra.mxu0 %v8427_v47  ;;  %6812 = vmatpush3.bf16.msra.mxu1 %v8486_v15 }
 0x4a5   :  { %6786 = vmatprep.subr.bf16.mxu0 %v8431_v48  ;;  %6814 = vmatprep.subr.bf16.mxu1 %v8496_v18 }
 0x4a8   :  { %6788 = vmatpush1.bf16.msra.mxu0 %v8437_v53  ;;  %6816 = vmatpush3.bf16.msra.mxu1 %v8496_v18 }
 0x4a9   :  { %6790 = vmatprep.subr.bf16.mxu0 %v8440_v54  ;;  %6818 = vmatprep.subr.bf16.mxu1 %v8504_v22 }
 0x4ac   :  { %6792 = vmatpush1.bf16.msra.mxu0 %v8447_v59  ;;  %6820 = vmatpush3.bf16.msra.mxu1 %v8504_v22 }
 0x4ad   :  { %6794 = vmatprep.subr.bf16.mxu0 %v8451_v61  ;;  %6822 = vmatprep.subr.bf16.mxu1 %v8510_v25 }
 0x4b0   :  { %6796 = vmatpush1.bf16.msra.mxu0 %v8457_v4  ;;  %6824 = vmatpush3.bf16.msra.mxu1 %v8510_v25 }
 0x4b1   :  { %6798 = vmatprep.subr.bf16.mxu0 %v8462_v6  ;;  %6826 = vmatprep.subr.bf16.mxu1 %v8516_v30 }
 0x4b4   :  { %6800 = vmatpush1.bf16.msra.mxu0 %v8469_v10  ;;  %6828 = vmatpush3.bf16.msra.mxu1 %v8516_v30 }
 0x4b5   :  { %6830 = vmatprep.subr.bf16.mxu1 %v8522_v33  ;;  %6834 = vmatprep.subr.bf16.mxu0 %v8361_v21 }
 0x4b8   :  { %6832 = vmatpush3.bf16.msra.mxu1 %v8522_v33 }
 0x4b9   :  { %6866 = vmatprep.subr.bf16.mxu1 %v8459_v5 }
 0x56a   :  { %v2418_v56 = vpop.f32.mrb[8].mxu0 }
 0x56b   :  { %v7561_v37 = vadd.f32 %v2418_v56, %v8622_v0  ;;  %v2420_v16 = vpop.f32.mrb[9].mxu0 }
 0x56c   :  { %v7562_v52 = vadd.f32 %v2420_v16, %v8629_v11 }
 0x56d   :  { %v5459_v12 = vmul.f32 -1.442695, %v7561_v37 }
 0x56e   :  { %v2424_v63 = vpop.f32.mrb[10].mxu0  ;;  %v6007_v17 = vpop.f32.mrb[48].mxu1  ;;  %v5461_v9 = vmul.f32 -1.442695, %v7562_v52 }
 0x56f   :  { %7753 = vpow2.f32 %v5459_v12  ;;  %v7563_v51 = vadd.f32 %v2424_v63, %v8622_v0  ;;  %v2426_v32 = vpop.f32.mrb[11].mxu0  ;;  %v2495_v49 = vpop.f32.mrb[49].mxu1  ;;  %v950_v12 = vadd.f32 %v8602_v62, %v8670_v14  ;;  %v2539_v63 = vadd.f32 %v6007_v17, %v8665_v46 }
 0x570   :  { %v7564_v35 = vadd.f32 %v2426_v32, %v8629_v11  ;;  %v2538_v56 = vadd.f32 %v8665_v46, %v2495_v49 }
 0x571   :  { %v5460_v2 = vmul.f32 -1.442695, %v7563_v51 }
 0x572   :  { %v5462_v23 = vmul.f32 -1.442695, %v7564_v35 }
 0x573   :  { %7755 = vpow2.f32 %v5460_v2  ;;  %v956_v2 = vadd.f32 %v8605_v8, %v8670_v14 }
 0x574   :  { %7757 = vpow2.f32 %v5461_v9 }
 0x575   :  { %7759 = vpow2.f32 %v5462_v23 }
 0x579   :  { %v7754_v60 = vpop.eup %7753 }
 0x57a   :  { %v2514_v13 = vadd.f32 1.0, %v7754_v60 }
 0x57c   :  { %7761 = vrcp.f32 %v2514_v13 }
 0x57d   :  { %v7756_v26 = vpop.eup %7755 }
 0x57e   :  { %v2515_v55 = vadd.f32 1.0, %v7756_v26  ;;  %v7758_v50 = vpop.eup %7757 }
 0x57f   :  { %v7760_v43 = vpop.eup %7759  ;;  %v2530_v19 = vadd.f32 1.0, %v7758_v50 }
 0x580   :  { %7763 = vrcp.f32 %v2515_v55  ;;  %v2531_v16 = vadd.f32 1.0, %v7760_v43 }
 0x581   :  { %7765 = vrcp.f32 %v2530_v19 }
 0x582   :  { %7767 = vrcp.f32 %v2531_v16 }
 0x586   :  { %v7762_v37 = vpop.eup %7761 }
 0x587   :  { %v2540_v52 = vmul.f32 %v7762_v37, %v2538_v56 }
 0x589   :  { %v2542_v51 = vadd.f32 %v2540_v52, %v950_v12 }
 0x58a   :  { %v7764_v32 = vpop.eup %7763 }
 0x58b   :  { %v2541_v35 = vmul.f32 %v7764_v32, %v2539_v63  ;;  %7769 = vtanh.f32 %v2542_v51  ;;  %v7766_v49 = vpop.eup %7765 }
 0x58c   :  { %v7768_v23 = vpop.eup %7767  ;;  %v2546_v60 = vsub.f32 1.0, %v7766_v49  ;;  %v2550_v62 = vmul.f32 %v7766_v49, %v8857_v45 }
 0x58d   :  { %v2543_v9 = vadd.f32 %v2541_v35, %v956_v2  ;;  %v2547_v55 = vsub.f32 1.0, %v7768_v23  ;;  %v2551_v43 = vmul.f32 %v7768_v23, %v8864_v3 }
 0x58f   :  { %7771 = vtanh.f32 %v2543_v9 }
 0x595   :  { %v7770_v13 = vpop.eup %7769 }
 0x596   :  { %v2548_v26 = vmul.f32 %v7770_v13, %v2546_v60 }
 0x598   :  { %v8911_v50 = vadd.f32 %v2550_v62, %v2548_v26 }
 0x599   :  { %v7772_v17 = vpop.eup %7771 }
 0x59a   :  { %2621 = vmatmul.mubr.f32.vlgmr.msra.gmra.mrb[12].mxu0 %v8911_v50  ;;  %6040 = vmatprep.mubr.f32.mxu1 %v8911_v50  ;;  %v2549_v8 = vmul.f32 %v7772_v17, %v2547_v55 }
 0x59b   :  { %2626 = vmatprep.mubr.f32.mxu0 %v9665_v40  ;;  %6836 = vmatpush1.bf16.msra.mxu0 %v8387_v28 }
 0x59c   :  { %v8918_v19 = vadd.f32 %v2551_v43, %v2549_v8  ;;  %6838 = vmatprep.subr.bf16.mxu0 %v8389_v29 }
 0x59e   :  { %2627 = vmatmul.mubr.f32.gmra.mrb[14].mxu0 %v8918_v19  ;;  %6041 = vmatmul.mubr.f32.vlgmr.msra.gmra.mrb[50].mxu1 %v8918_v19 }
 0x59f   :  { %6840 = vmatpush1.bf16.msra.mxu0 %v8398_v34  ;;  %6868 = vmatpush3.bf16.msra.mxu1 %v8459_v5 }
 0x5a0   :  { %6842 = vmatprep.subr.bf16.mxu0 %v8406_v36  ;;  %6870 = vmatprep.subr.bf16.mxu1 %v8477_v7 }
 0x5a1   :  { %2824 = vmatprep.mubr.f32.mxu0 %v9665_v40 }
 0x5a3   :  { %6844 = vmatpush1.bf16.msra.mxu0 %v8416_v41  ;;  %6872 = vmatpush3.bf16.msra.mxu1 %v8477_v7 }
 0x5a4   :  { %6846 = vmatprep.subr.bf16.mxu0 %v8420_v42  ;;  %6874 = vmatprep.subr.bf16.mxu1 %v8486_v15 }
 0x5a7   :  { %6848 = vmatpush1.bf16.msra.mxu0 %v8427_v47  ;;  %6876 = vmatpush3.bf16.msra.mxu1 %v8486_v15 }
 0x5a8   :  { %6850 = vmatprep.subr.bf16.mxu0 %v8431_v48  ;;  %6878 = vmatprep.subr.bf16.mxu1 %v8496_v18 }
 0x5ab   :  { %6852 = vmatpush1.bf16.msra.mxu0 %v8437_v53  ;;  %6880 = vmatpush3.bf16.msra.mxu1 %v8496_v18 }
 0x5ac   :  { %6854 = vmatprep.subr.bf16.mxu0 %v8440_v54  ;;  %6882 = vmatprep.subr.bf16.mxu1 %v8504_v22 }
 0x5af   :  { %6856 = vmatpush1.bf16.msra.mxu0 %v8447_v59  ;;  %6884 = vmatpush3.bf16.msra.mxu1 %v8504_v22 }
 0x5b0   :  { %6858 = vmatprep.subr.bf16.mxu0 %v8451_v61  ;;  %6886 = vmatprep.subr.bf16.mxu1 %v8510_v25 }
 0x5b3   :  { %6860 = vmatpush1.bf16.msra.mxu0 %v8457_v4  ;;  %6888 = vmatpush3.bf16.msra.mxu1 %v8510_v25 }
 0x5b4   :  { %6862 = vmatprep.subr.bf16.mxu0 %v8462_v6  ;;  %6890 = vmatprep.subr.bf16.mxu1 %v8516_v30 }
 0x5b7   :  { %6864 = vmatpush1.bf16.msra.mxu0 %v8469_v10  ;;  %6892 = vmatpush3.bf16.msra.mxu1 %v8516_v30 }
 0x5b8   :  { %6894 = vmatprep.subr.bf16.mxu1 %v8522_v33  ;;  %6898 = vmatprep.subr.bf16.mxu0 %v8361_v21 }
 0x5bb   :  { %6896 = vmatpush3.bf16.msra.mxu1 %v8522_v33 }
 0x5bc   :  { %6930 = vmatprep.subr.bf16.mxu1 %v8459_v5 }
 0x66d   :  { %v2622_v56 = vpop.f32.mrb[12].mxu0 }
 0x66e   :  { %v7565_v37 = vadd.f32 %v2622_v56, %v8622_v0  ;;  %v2624_v16 = vpop.f32.mrb[13].mxu0 }
 0x66f   :  { %v7566_v52 = vadd.f32 %v2624_v16, %v8629_v11  ;;  %v9668_v16 = vld [vmem:[#allocation13_spill] sm:$0xff] }
 0x670   :  { %v5463_v12 = vmul.f32 -1.442695, %v7565_v37 }
 0x671   :  { %v2628_v63 = vpop.f32.mrb[14].mxu0  ;;  %v6042_v51 = vpop.f32.mrb[50].mxu1  ;;  %v5465_v49 = vmul.f32 -1.442695, %v7566_v52 }
 0x672   :  { %7773 = vpow2.f32 %v5463_v12  ;;  %v7567_v32 = vadd.f32 %v2628_v63, %v8622_v0  ;;  %v2630_v2 = vpop.f32.mrb[15].mxu0  ;;  %v2699_v35 = vpop.f32.mrb[51].mxu1  ;;  %v1121_v12 = vadd.f32 %v9668_v16, %v8670_v14  ;;  %v2743_v63 = vadd.f32 %v6042_v51, %v8665_v46 }
 0x673   :  { %v7568_v21 = vadd.f32 %v2630_v2, %v8629_v11  ;;  %v2742_v43 = vadd.f32 %v8665_v46, %v2699_v35 }
 0x674   :  { %v5464_v9 = vmul.f32 -1.442695, %v7567_v32 }
 0x675   :  { %v5466_v23 = vmul.f32 -1.442695, %v7568_v21 }
 0x676   :  { %7775 = vpow2.f32 %v5464_v9  ;;  %v9669_v9 = vld [vmem:[#allocation14_spill] sm:$0xff] }
 0x677   :  { %7777 = vpow2.f32 %v5465_v49  ;;  %v1127_v21 = vadd.f32 %v9669_v9, %v8670_v14 }
 0x678   :  { %7779 = vpow2.f32 %v5466_v23 }
 0x67c   :  { %v7774_v60 = vpop.eup %7773 }
 0x67d   :  { %v2718_v13 = vadd.f32 1.0, %v7774_v60 }
 0x67f   :  { %7781 = vrcp.f32 %v2718_v13 }
 0x680   :  { %v7776_v26 = vpop.eup %7775 }
 0x681   :  { %v2719_v62 = vadd.f32 1.0, %v7776_v26  ;;  %v7778_v55 = vpop.eup %7777 }
 0x682   :  { %v7780_v17 = vpop.eup %7779  ;;  %v2734_v8 = vadd.f32 1.0, %v7778_v55 }
 0x683   :  { %7783 = vrcp.f32 %v2719_v62  ;;  %v2735_v37 = vadd.f32 1.0, %v7780_v17 }
 0x684   :  { %7785 = vrcp.f32 %v2734_v8 }
 0x685   :  { %7787 = vrcp.f32 %v2735_v37 }
 0x689   :  { %v7782_v56 = vpop.eup %7781 }
 0x68a   :  { %v2744_v52 = vmul.f32 %v7782_v56, %v2742_v43 }
 0x68c   :  { %v2746_v32 = vadd.f32 %v2744_v52, %v1121_v12 }
 0x68d   :  { %v7784_v2 = vpop.eup %7783 }
 0x68e   :  { %v2745_v49 = vmul.f32 %v7784_v2, %v2743_v63  ;;  %7789 = vtanh.f32 %v2746_v32  ;;  %v7786_v35 = vpop.eup %7785  ;;  %v9016_v63 = vld [vmem:[%s9640_s8] ss:$0 sm:$0xff] }
 0x68f   :  { %v7788_v60 = vpop.eup %7787  ;;  %v2750_v13 = vsub.f32 1.0, %v7786_v35  ;;  %v2754_v55 = vmul.f32 %v7786_v35, %v8911_v50 }
 0x690   :  { %v2747_v23 = vadd.f32 %v2745_v49, %v1127_v21  ;;  %v2751_v17 = vsub.f32 1.0, %v7788_v60  ;;  %v2755_v43 = vmul.f32 %v7788_v60, %v8918_v19  ;;  %v9670_v21 = vld [vmem:[#allocation15_spill] sm:$0xff] }
 0x691   :  { %v1292_v49 = vadd.f32 %v9670_v21, %v8670_v14  ;;  %v3185_v21 = vld [vmem:[#allocation7 + $0x88] sm:$0xff] }
 0x692   :  { %7791 = vtanh.f32 %v2747_v23 }
 0x698   :  { %v7790_v26 = vpop.eup %7789 }
 0x699   :  { %v2752_v62 = vmul.f32 %v7790_v26, %v2750_v13  ;;  %v9671_v26 = vld [vmem:[#allocation16_spill] sm:$0xff] }
 0x69b   :  { %v8965_v8 = vadd.f32 %v2754_v55, %v2752_v62  ;;  %v1298_v62 = vadd.f32 %v9671_v26, %v8670_v14  ;;  %v3193_v26 = vld [vmem:[#allocation7 + $0xc8] sm:$0xff] }
 0x69c   :  { %v7792_v46 = vpop.eup %7791 }
 0x69d   :  { %2825 = vmatmul.mubr.f32.vlgmr.msra.gmra.mrb[16].mxu0 %v8965_v8  ;;  %6075 = vmatprep.mubr.f32.mxu1 %v8965_v8  ;;  %v2753_v51 = vmul.f32 %v7792_v46, %v2751_v17 }
 0x69e   :  { %2830 = vmatprep.mubr.f32.mxu0 %v9665_v40  ;;  %6900 = vmatpush1.bf16.msra.mxu0 %v8387_v28  ;;  %v3169_v28 = vld [vmem:[#allocation7 + $0x8] sm:$0xff] }
 0x69f   :  { %v8972_v56 = vadd.f32 %v2755_v43, %v2753_v51  ;;  %6902 = vmatprep.subr.bf16.mxu0 %v8389_v29  ;;  %v3172_v29 = vld [vmem:[#allocation7 + $0x20] sm:$0xff] }
 0x6a1   :  { %2831 = vmatmul.mubr.f32.gmra.mrb[18].mxu0 %v8972_v56  ;;  %6076 = vmatmul.mubr.f32.vlgmr.msra.gmra.mrb[52].mxu1 %v8972_v56 }
 0x6a2   :  { %6904 = vmatpush1.bf16.msra.mxu0 %v8398_v34  ;;  %6932 = vmatpush3.bf16.msra.mxu1 %v8459_v5  ;;  %v6961_v34 = vpack.c.bf16 %v3172_v29, %v3169_v28  ;;  %v3168_v28 = vld [vmem:[#allocation7] sm:$0xff]  ;;  %v3171_v29 = vld [vmem:[#allocation7 + $0x18] sm:$0xff] }
 0x6a3   :  { %6906 = vmatprep.subr.bf16.mxu0 %v8406_v36  ;;  %6934 = vmatprep.subr.bf16.mxu1 %v8477_v7  ;;  %v3170_v36 = vld [vmem:[#allocation7 + $0x10] sm:$0xff] }
 0x6a4   :  { %3028 = vmatprep.mubr.f32.mxu0 %v9665_v40 }
 0x6a6   :  { %6908 = vmatpush1.bf16.msra.mxu0 %v8416_v41  ;;  %6936 = vmatpush3.bf16.msra.mxu1 %v8477_v7  ;;  %v3173_v41 = vld [vmem:[#allocation7 + $0x28] sm:$0xff] }
 0x6a7   :  { %6910 = vmatprep.subr.bf16.mxu0 %v8420_v42  ;;  %6938 = vmatprep.subr.bf16.mxu1 %v8486_v15  ;;  %v9006_v42 = vpack.c.bf16 %v3173_v41, %v3170_v36  ;;  %v3175_v36 = vld [vmem:[#allocation7 + $0x38] sm:$0xff]  ;;  %v3178_v41 = vld [vmem:[#allocation7 + $0x50] sm:$0xff] }
 0x6aa   :  { %6912 = vmatpush1.bf16.msra.mxu0 %v8427_v47  ;;  %6940 = vmatpush3.bf16.msra.mxu1 %v8486_v15 }
 0x6ab   :  { %6914 = vmatprep.subr.bf16.mxu0 %v8431_v48  ;;  %6942 = vmatprep.subr.bf16.mxu1 %v8496_v18 }
 0x6ae   :  { %6916 = vmatpush1.bf16.msra.mxu0 %v8437_v53  ;;  %6944 = vmatpush3.bf16.msra.mxu1 %v8496_v18 }
 0x6af   :  { %6918 = vmatprep.subr.bf16.mxu0 %v8440_v54  ;;  %6946 = vmatprep.subr.bf16.mxu1 %v8504_v22 }
 0x6b2   :  { %6920 = vmatpush1.bf16.msra.mxu0 %v8447_v59  ;;  %6948 = vmatpush3.bf16.msra.mxu1 %v8504_v22 }
 0x6b3   :  { %6922 = vmatprep.subr.bf16.mxu0 %v8451_v61  ;;  %6950 = vmatprep.subr.bf16.mxu1 %v8510_v25 }
 0x6b6   :  { %6924 = vmatpush1.bf16.msra.mxu0 %v8457_v4  ;;  %6952 = vmatpush3.bf16.msra.mxu1 %v8510_v25 }
 0x6b7   :  { %6926 = vmatprep.subr.bf16.mxu0 %v8462_v6  ;;  %6954 = vmatprep.subr.bf16.mxu1 %v8516_v30 }
 0x6ba   :  { %6928 = vmatpush1.bf16.msra.mxu0 %v8469_v10  ;;  %6956 = vmatpush3.bf16.msra.mxu1 %v8516_v30 }
 0x6bb   :  { %6958 = vmatprep.subr.bf16.mxu1 %v8522_v33  ;;  %6962 = vmatprep.subr.bf16.mxu0 %v6961_v34 }
 0x6be   :  { %6960 = vmatpush3.bf16.msra.mxu1 %v8522_v33 }
 0x6bf   :  { %6994 = vmatprep.subr.bf16.mxu1 %v9006_v42 }
 0x770   :  { %v2826_v47 = vpop.f32.mrb[16].mxu0 }
 0x771   :  { %v7569_v48 = vadd.f32 %v2826_v47, %v8622_v0  ;;  %v2828_v53 = vpop.f32.mrb[17].mxu0 }
 0x772   :  { %v7570_v59 = vadd.f32 %v2828_v53, %v8629_v11  ;;  %v6963_v53 = vpack.c.bf16 %v3171_v29, %v3168_v28  ;;  %v3195_v28 = vld [vmem:[#allocation7 + $0xd8] sm:$0xff] }
 0x773   :  { %v5467_v54 = vmul.f32 -1.442695, %v7569_v48  ;;  %v3199_v29 = vld [vmem:[#allocation7 + $0xf8] sm:$0xff] }
 0x774   :  { %v2832_v61 = vpop.f32.mrb[18].mxu0  ;;  %v6077_v4 = vpop.f32.mrb[52].mxu1  ;;  %v5469_v18 = vmul.f32 -1.442695, %v7570_v59 }
 0x775   :  { %7793 = vpow2.f32 %v5467_v54  ;;  %v7571_v5 = vadd.f32 %v2832_v61, %v8622_v0  ;;  %v2834_v6 = vpop.f32.mrb[19].mxu0  ;;  %v2903_v10 = vpop.f32.mrb[53].mxu1  ;;  %v2947_v35 = vadd.f32 %v9016_v63, %v6077_v4  ;;  %v6965_v61 = vpack.c.bf16 %v3178_v41, %v3175_v36  ;;  %v3174_v4 = vld [vmem:[#allocation7 + $0x30] sm:$0xff]  ;;  %v3197_v41 = vld [vmem:[#allocation7 + $0xe8] sm:$0xff] }
 0x776   :  { %v7572_v15 = vadd.f32 %v2834_v6, %v8629_v11  ;;  %v2946_v32 = vadd.f32 %v9016_v63, %v2903_v10  ;;  %v3181_v10 = vld [vmem:[#allocation7 + $0x68] sm:$0xff]  ;;  %v3194_v36 = vld [vmem:[#allocation7 + $0xd0] sm:$0xff] }
 0x777   :  { %v5468_v7 = vmul.f32 -1.442695, %v7571_v5  ;;  %v3177_v5 = vld [vmem:[#allocation7 + $0x48] sm:$0xff] }
 0x778   :  { %v5470_v22 = vmul.f32 -1.442695, %v7572_v15 }
 0x779   :  { %7795 = vpow2.f32 %v5468_v7  ;;  %v3184_v7 = vld [vmem:[#allocation7 + $0x80] sm:$0xff] }
 0x77a   :  { %7797 = vpow2.f32 %v5469_v18 }
 0x77b   :  { %7799 = vpow2.f32 %v5470_v22  ;;  %v3176_v22 = vld [vmem:[#allocation7 + $0x40] sm:$0xff] }
 0x77f   :  { %v7794_v25 = vpop.eup %7793 }
 0x780   :  { %v2922_v30 = vadd.f32 1.0, %v7794_v25  ;;  %v3179_v25 = vld [vmem:[#allocation7 + $0x58] sm:$0xff] }
 0x782   :  { %7801 = vrcp.f32 %v2922_v30  ;;  %v6967_v30 = vpack.c.bf16 %v3177_v5, %v3174_v4  ;;  %v3205_v4 = vld [vmem:[#allocation7 + $0x128] sm:$0xff]  ;;  %v3208_v5 = vld [vmem:[#allocation7 + $0x140] sm:$0xff] }
 0x783   :  { %v7796_v33 = vpop.eup %7795 }
 0x784   :  { %v2923_v37 = vadd.f32 1.0, %v7796_v33  ;;  %v7798_v16 = vpop.eup %7797 }
 0x785   :  { %v7800_v12 = vpop.eup %7799  ;;  %v2938_v52 = vadd.f32 1.0, %v7798_v16  ;;  %v3180_v16 = vld [vmem:[#allocation7 + $0x60] sm:$0xff] }
 0x786   :  { %7803 = vrcp.f32 %v2923_v37  ;;  %v2939_v9 = vadd.f32 1.0, %v7800_v12  ;;  %v6969_v37 = vpack.c.bf16 %v3184_v7, %v3181_v10  ;;  %v3183_v12 = vld [vmem:[#allocation7 + $0x78] sm:$0xff] }
 0x787   :  { %7805 = vrcp.f32 %v2938_v52  ;;  %v3187_v52 = vld [vmem:[#allocation7 + $0x98] sm:$0xff] }
 0x788   :  { %7807 = vrcp.f32 %v2939_v9  ;;  %v3182_v9 = vld [vmem:[#allocation7 + $0x70] sm:$0xff]  ;;  %v3203_v10 = vld [vmem:[#allocation7 + $0x118] sm:$0xff] }
 0x78c   :  { %v7802_v2 = vpop.eup %7801 }
 0x78d   :  { %v2948_v23 = vmul.f32 %v7802_v2, %v2946_v32  ;;  %v6997_v32 = vpack.c.bf16 %v3179_v25, %v3176_v22  ;;  %v3190_v2 = vld [vmem:[#allocation7 + $0xb0] sm:$0xff]  ;;  %v3204_v22 = vld [vmem:[#allocation7 + $0x120] sm:$0xff]  ;;  %v3207_v25 = vld [vmem:[#allocation7 + $0x138] sm:$0xff] }
 0x78f   :  { %v2950_v60 = vadd.f32 %v2948_v23, %v1292_v49  ;;  %v6971_v49 = vpack.c.bf16 %v3183_v12, %v3180_v16  ;;  %v6973_v23 = vpack.c.bf16 %v3190_v2, %v3187_v52  ;;  %v3206_v16 = vld [vmem:[#allocation7 + $0x130] sm:$0xff]  ;;  %v3209_v12 = vld [vmem:[#allocation7 + $0x148] sm:$0xff]  ;;  %v6987_v52 = vpack.c.bf16 %v3207_v25, %v3204_v22  ;;  %v3639_v25 = vld [vmem:[#allocation9 + $0x120] sm:$0xff] }
 0x790   :  { %v7804_v13 = vpop.eup %7803  ;;  %v7017_v2 = vpack.c.bf16 %v3209_v12, %v3206_v16  ;;  %v3605_v16 = vld [vmem:[#allocation9 + $0x10] sm:$0xff]  ;;  %v3608_v12 = vld [vmem:[#allocation9 + $0x28] sm:$0xff] }
 0x791   :  { %v2949_v55 = vmul.f32 %v7804_v13, %v2947_v35  ;;  %7809 = vtanh.f32 %v2950_v60  ;;  %v7806_v46 = vpop.eup %7805  ;;  %v7001_v35 = vpack.c.bf16 %v3185_v21, %v3182_v9  ;;  %v3186_v60 = vld [vmem:[#allocation7 + $0x90] sm:$0xff]  ;;  %v3189_v13 = vld [vmem:[#allocation7 + $0xa8] sm:$0xff] }
 0x792   :  { %v7808_v51 = vpop.eup %7807  ;;  %v2954_v43 = vsub.f32 1.0, %v7806_v46  ;;  %v2958_v48 = vmul.f32 %v7806_v46, %v8965_v8  ;;  %v6975_v46 = vpack.c.bf16 %v3189_v13, %v3186_v60  ;;  %v3210_v9 = vld [vmem:[#allocation7 + $0x150] sm:$0xff]  ;;  %v3213_v21 = vld [vmem:[#allocation7 + $0x168] sm:$0xff]  ;;  %v3607_v60 = vld [vmem:[#allocation9 + $0x20] sm:$0xff] }
 0x793   :  { %v2951_v17 = vadd.f32 %v2949_v55, %v1298_v62  ;;  %v2955_v54 = vsub.f32 1.0, %v7808_v51  ;;  %v2959_v18 = vmul.f32 %v7808_v51, %v8972_v56  ;;  %v3196_v62 = vld [vmem:[#allocation7 + $0xe0] sm:$0xff]  ;;  %v6991_v13 = vpack.c.bf16 %v3213_v21, %v3210_v9  ;;  %v3645_v9 = vld [vmem:[#allocation9 + $0x150] sm:$0xff] }
 0x794   :  { %v3188_v55 = vld [vmem:[#allocation7 + $0xa0] sm:$0xff] }
 0x795   :  { %7811 = vtanh.f32 %v2951_v17  ;;  %v3191_v17 = vld [vmem:[#allocation7 + $0xb8] sm:$0xff] }
 0x796   :  { %v7005_v51 = vpack.c.bf16 %v3191_v17, %v3188_v55  ;;  %v3603_v55 = vld [vmem:[#allocation9] sm:$0xff]  ;;  %v3606_v17 = vld [vmem:[#allocation9 + $0x18] sm:$0xff] }
 0x79b   :  { %v7810_v34 = vpop.eup %7809 }
 0x79c   :  { %v2956_v47 = vmul.f32 %v7810_v34, %v2954_v43  ;;  %v3192_v43 = vld [vmem:[#allocation7 + $0xc0] sm:$0xff]  ;;  %v3202_v34 = vld [vmem:[#allocation7 + $0x110] sm:$0xff] }
 0x79e   :  { %v9025_v59 = vadd.f32 %v2958_v48, %v2956_v47  ;;  %v6979_v47 = vpack.c.bf16 %v3195_v28, %v3192_v43  ;;  %v6981_v48 = vpack.c.bf16 %v3202_v34, %v3199_v29  ;;  %v3621_v28 = vld [vmem:[#allocation9 + $0x90] sm:$0xff]  ;;  %v3624_v29 = vld [vmem:[#allocation9 + $0xa8] sm:$0xff] }
 0x79f   :  { %v7812_v6 = vpop.eup %7811  ;;  %v9099_v34 = vpack.c.bf16 %v3624_v29, %v3621_v28  ;;  %v3644_v28 = vld [vmem:[#allocation9 + $0x148] sm:$0xff] }
 0x7a0   :  { %3029 = vmatmul.mubr.f32.vlgmr.msra.gmra.mrb[20].mxu0 %v9025_v59  ;;  %6110 = vmatprep.mubr.f32.mxu1 %v9025_v59  ;;  %v2957_v15 = vmul.f32 %v7812_v6, %v2955_v54  ;;  %v3198_v54 = vld [vmem:[#allocation7 + $0xf0] sm:$0xff]  ;;  %v3200_v6 = vld [vmem:[#allocation7 + $0x100] sm:$0xff] }
 0x7a1   :  { %6964 = vmatpush1.bf16.msra.mxu0 %v6963_v53  ;;  %3034 = vmatprep.mubr.f32.mxu0 %v9665_v40  ;;  %v7009_v53 = vpack.c.bf16 %v3197_v41, %v3194_v36  ;;  %v3628_v36 = vld [vmem:[#allocation9 + $0xc8] sm:$0xff]  ;;  %v3631_v41 = vld [vmem:[#allocation9 + $0xe0] sm:$0xff] }
 0x7a2   :  { %6966 = vmatprep.subr.bf16.mxu0 %v6965_v61  ;;  %v9031_v33 = vadd.f32 %v2959_v18, %v2957_v15  ;;  %v3201_v61 = vld [vmem:[#allocation7 + $0x108] sm:$0xff]  ;;  %v6985_v15 = vpack.c.bf16 %v3208_v5, %v3205_v4  ;;  %v7013_v18 = vpack.c.bf16 %v3203_v10, %v3200_v6  ;;  %v3633_v6 = vld [vmem:[#allocation9 + $0xf0] sm:$0xff] }
 0x7a3   :  { %v6983_v7 = vpack.c.bf16 %v3201_v61, %v3198_v54  ;;  %v3634_v54 = vld [vmem:[#allocation9 + $0xf8] sm:$0xff]  ;;  %v3637_v61 = vld [vmem:[#allocation9 + $0x110] sm:$0xff]  ;;  %v3636_v10 = vld [vmem:[#allocation9 + $0x108] sm:$0xff] }
 0x7a4   :  { %3035 = vmatmul.mubr.f32.gmra.mrb[22].mxu0 %v9031_v33  ;;  %6111 = vmatmul.mubr.f32.vlgmr.msra.gmra.mrb[54].mxu1 %v9031_v33  ;;  %v9107_v5 = vpack.c.bf16 %v3637_v61, %v3634_v54 }
 0x7a5   :  { %6968 = vmatpush1.bf16.msra.mxu0 %v6967_v30  ;;  %6996 = vmatpush3.bf16.msra.mxu1 %v9006_v42  ;;  %v6977_v42 = vpack.c.bf16 %v3196_v62, %v3193_v26  ;;  %v3211_v30 = vld [vmem:[#allocation7 + $0x158] sm:$0xff] }
 0x7a6   :  { %6145 = vmatprep.mubr.f32.mxu1 %v8680_v31  ;;  %6970 = vmatprep.subr.bf16.mxu0 %v6969_v37  ;;  %v3214_v37 = vld [vmem:[#allocation7 + $0x170] sm:$0xff] }
 0x7a7   :  { %6998 = vmatprep.subr.bf16.mxu1 %v6997_v32  ;;  %3313 = vmatprep.mubr.f32.mxu0 %v9665_v40 }
 0x7a9   :  { %6972 = vmatpush1.bf16.msra.mxu0 %v6971_v49  ;;  %7000 = vmatpush3.bf16.msra.mxu1 %v6997_v32  ;;  %v6989_v32 = vpack.c.bf16 %v3214_v37, %v3211_v30  ;;  %v3212_v49 = vld [vmem:[#allocation7 + $0x160] sm:$0xff]  ;;  %v3642_v30 = vld [vmem:[#allocation9 + $0x138] sm:$0xff] }
 0x7aa   :  { %6974 = vmatprep.subr.bf16.mxu0 %v6973_v23  ;;  %7002 = vmatprep.subr.bf16.mxu1 %v7001_v35  ;;  %v3215_v23 = vld [vmem:[#allocation7 + $0x178] sm:$0xff]  ;;  %v9117_v37 = vpack.c.bf16 %v3642_v30, %v3639_v25 }
 0x7ab   :  { %v7021_v26 = vpack.c.bf16 %v3215_v23, %v3212_v49  ;;  %v3648_v49 = vld [vmem:[#allocation9 + $0x168] sm:$0xff]  ;;  %v3611_v23 = vld [vmem:[#allocation9 + $0x40] sm:$0xff] }
 0x7ad   :  { %6976 = vmatpush1.bf16.msra.mxu0 %v6975_v46  ;;  %7004 = vmatpush3.bf16.msra.mxu1 %v7001_v35  ;;  %v3604_v35 = vld [vmem:[#allocation9 + $0x8] sm:$0xff]  ;;  %v9041_v46 = vpack.c.bf16 %v3606_v17, %v3603_v55 }
 0x7ae   :  { %6978 = vmatprep.subr.bf16.mxu0 %v6977_v42  ;;  %7006 = vmatprep.subr.bf16.mxu1 %v7005_v51  ;;  %v9038_v62 = vpack.c.bf16 %v3607_v60, %v3604_v35  ;;  %v3622_v42 = vld [vmem:[#allocation9 + $0x98] sm:$0xff]  ;;  %v9127_v60 = vpack.c.bf16 %v3648_v49, %v3645_v9  ;;  %v3620_v55 = vld [vmem:[#allocation9 + $0x88] sm:$0xff] }
 0x7af   :  { %v3614_v35 = vld [vmem:[#allocation9 + $0x58] sm:$0xff] }
 0x7b1   :  { %6980 = vmatpush1.bf16.msra.mxu0 %v6979_v47  ;;  %7008 = vmatpush3.bf16.msra.mxu1 %v7005_v51  ;;  %v3625_v51 = vld [vmem:[#allocation9 + $0xb0] sm:$0xff]  ;;  %v3627_v47 = vld [vmem:[#allocation9 + $0xc0] sm:$0xff] }
 0x7b2   :  { %6982 = vmatprep.subr.bf16.mxu0 %v6981_v48  ;;  %7010 = vmatprep.subr.bf16.mxu1 %v7009_v53  ;;  %v9097_v43 = vpack.c.bf16 %v3625_v51, %v3622_v42  ;;  %v9103_v48 = vpack.c.bf16 %v3631_v41, %v3628_v36  ;;  %v3641_v51 = vld [vmem:[#allocation9 + $0x130] sm:$0xff]  ;;  %v3647_v36 = vld [vmem:[#allocation9 + $0x160] sm:$0xff]  ;;  %v3650_v41 = vld [vmem:[#allocation9 + $0x178] sm:$0xff] }
 0x7b3   :  { %v9151_v29 = vpack.c.bf16 %v3644_v28, %v3641_v51 }
 0x7b5   :  { %6984 = vmatpush1.bf16.msra.mxu0 %v6983_v7  ;;  %7012 = vmatpush3.bf16.msra.mxu1 %v7009_v53  ;;  %v3630_v53 = vld [vmem:[#allocation9 + $0xd8] sm:$0xff]  ;;  %v9111_v7 = vpack.c.bf16 %v3636_v10, %v3633_v6 }
 0x7b6   :  { %6986 = vmatprep.subr.bf16.mxu0 %v6985_v15  ;;  %7014 = vmatprep.subr.bf16.mxu1 %v7013_v18  ;;  %v9105_v4 = vpack.c.bf16 %v3630_v53, %v3627_v47  ;;  %v3640_v15 = vld [vmem:[#allocation9 + $0x128] sm:$0xff]  ;;  %v9155_v47 = vpack.c.bf16 %v3650_v41, %v3647_v36  ;;  %v9673_v41 = vld [vmem:[#allocation18_spill] sm:$0xff] }
 0x7b9   :  { %6988 = vmatpush1.bf16.msra.mxu0 %v6987_v52  ;;  %7016 = vmatpush3.bf16.msra.mxu1 %v7013_v18  ;;  %v3643_v18 = vld [vmem:[#allocation9 + $0x140] sm:$0xff]  ;;  %v9120_v52 = vpack.c.bf16 %v3608_v12, %v3605_v16 }
 0x7ba   :  { %6990 = vmatprep.subr.bf16.mxu0 %v6989_v32  ;;  %7018 = vmatprep.subr.bf16.mxu1 %v7017_v2  ;;  %v9114_v22 = vpack.c.bf16 %v3643_v18, %v3640_v15  ;;  %v3646_v32 = vld [vmem:[#allocation9 + $0x158] sm:$0xff] }
 0x7bd   :  { %6992 = vmatpush1.bf16.msra.mxu0 %v6991_v13  ;;  %7020 = vmatpush3.bf16.msra.mxu1 %v7017_v2  ;;  %v3649_v2 = vld [vmem:[#allocation9 + $0x170] sm:$0xff]  ;;  %v9129_v13 = vpack.c.bf16 %v3614_v35, %v3611_v23 }
 0x7be   :  { %7022 = vmatprep.subr.bf16.mxu1 %v7021_v26  ;;  %7026 = vmatprep.subr.bf16.mxu0 %v9038_v62  ;;  %v9125_v21 = vpack.c.bf16 %v3649_v2, %v3646_v32 }
 0x7c0   :  { %3314 = vmatmul.mubr.f32.vlgmr.msra.gmra.mrb[32].mxu0 %v8680_v31  ;;  %v3613_v31 = vld [vmem:[#allocation9 + $0x50] sm:$0xff] }
 0x7c1   :  { %7024 = vmatpush3.bf16.msra.mxu1 %v7021_v26  ;;  %3319 = vmatprep.mubr.f32.mxu0 %v9665_v40  ;;  %v3617_v26 = vld [vmem:[#allocation9 + $0x70] sm:$0xff] }
 0x7c2   :  { %7028 = vmatpush1.bf16.msra.mxu0 %v9041_v46  ;;  %7058 = vmatprep.subr.bf16.mxu1 %v9120_v52  ;;  %v9135_v17 = vpack.c.bf16 %v3620_v55, %v3617_v26 }
 0x7c4   :  { %3320 = vmatmul.mubr.f32.gmra.mrb[34].mxu0 %v8678_v1  ;;  %6146 = vmatmul.mubr.f32.vlgmr.msra.gmra.mrb[56].mxu1 %v8678_v1  ;;  %v3610_v1 = vld [vmem:[#allocation9 + $0x38] sm:$0xff] }
 0x7c5   :  { %6148 = vmatprep.mubr.f32.mxu1 %v8749_v58  ;;  %3325 = vmatprep.mubr.f32.mxu0 %v9665_v40 }
 0x7c6   :  { %7060 = vmatpush3.bf16.msra.mxu1 %v9120_v52 }
 0x7c7   :  { %7062 = vmatprep.subr.bf16.mxu1 %v9129_v13 }
 0x7c8   :  { %3326 = vmatmul.mubr.f32.gmra.mrb[36].mxu0 %v8749_v58  ;;  %6149 = vmatmul.mubr.f32.gmra.mrb[58].mxu1 %v8756_v57  ;;  %v9085_v58 = vpack.c.bf16 %v3613_v31, %v3610_v1  ;;  %v3623_v1 = vld [vmem:[#allocation9 + $0xa0] sm:$0xff]  ;;  %v3626_v31 = vld [vmem:[#allocation9 + $0xb8] sm:$0xff] }
 0x7c9   :  { %6151 = vmatprep.mubr.f32.mxu1 %v8803_v24  ;;  %3331 = vmatprep.mubr.f32.mxu0 %v9665_v40 }
 0x7ca   :  { %7030 = vmatprep.subr.bf16.mxu0 %v9085_v58  ;;  %7064 = vmatpush3.bf16.msra.mxu1 %v9129_v13 }
 0x7cb   :  { %7066 = vmatprep.subr.bf16.mxu1 %v9135_v17 }
 0x7cc   :  { %3332 = vmatmul.mubr.f32.gmra.mrb[38].mxu0 %v8756_v57  ;;  %6152 = vmatmul.mubr.f32.gmra.mrb[60].mxu1 %v8810_v44  ;;  %v3609_v57 = vld [vmem:[#allocation9 + $0x30] sm:$0xff] }
 0x7cd   :  { %6154 = vmatprep.mubr.f32.mxu1 %v8857_v45  ;;  %3337 = vmatprep.mubr.f32.mxu0 %v9665_v40 }
 0x7ce   :  { %7068 = vmatpush3.bf16.msra.mxu1 %v9135_v17 }
 0x7d0   :  { %3338 = vmatmul.mubr.f32.gmra.mrb[40].mxu0 %v8803_v24  ;;  %6155 = vmatmul.mubr.f32.gmra.mrb[62].mxu1 %v8864_v3  ;;  %v3612_v24 = vld [vmem:[#allocation9 + $0x48] sm:$0xff] }
 0x7d1   :  { %6157 = vmatprep.mubr.f32.mxu1 %v8911_v50  ;;  %3343 = vmatprep.mubr.f32.mxu0 %v9665_v40 }
 0x7d4   :  { %3344 = vmatmul.mubr.f32.gmra.mrb[42].mxu0 %v8810_v44  ;;  %6158 = vmatmul.mubr.f32.gmra.mrb[64].mxu1 %v8918_v19  ;;  %v9087_v44 = vpack.c.bf16 %v3612_v24, %v3609_v57  ;;  %v9140_v57 = vpack.c.bf16 %v3626_v31, %v3623_v1  ;;  %v3629_v24 = vld [vmem:[#allocation9 + $0xd0] sm:$0xff] }
 0x7d5   :  { %6160 = vmatprep.mubr.f32.mxu1 %v8965_v8  ;;  %3349 = vmatprep.mubr.f32.mxu0 %v9665_v40 }
 0x7d6   :  { %7032 = vmatpush1.bf16.msra.mxu0 %v9087_v44  ;;  %7070 = vmatprep.subr.bf16.mxu1 %v9140_v57 }
 0x7d7   :  { %7072 = vmatpush3.bf16.msra.mxu1 %v9140_v57 }
 0x7d8   :  { %3350 = vmatmul.mubr.f32.gmra.mrb[44].mxu0 %v8857_v45  ;;  %6161 = vmatmul.mubr.f32.gmra.mrb[66].mxu1 %v8972_v56  ;;  %v3616_v45 = vld [vmem:[#allocation9 + $0x68] sm:$0xff] }
 0x7d9   :  { %6163 = vmatprep.mubr.f32.mxu1 %v9025_v59  ;;  %3355 = vmatprep.mubr.f32.mxu0 %v9665_v40 }
 0x7dc   :  { %3356 = vmatmul.mubr.f32.gmra.mrb[46].mxu0 %v8864_v3  ;;  %6164 = vmatmul.mubr.f32.gmra.mrb[68].mxu1 %v9031_v33  ;;  %v3619_v3 = vld [vmem:[#allocation9 + $0x80] sm:$0xff] }
 0x7dd   :  { %3361 = vmatprep.mubr.f32.mxu0 %v9665_v40 }
 0x7e0   :  { %3362 = vmatmul.mubr.f32.gmra.mrb[48].mxu0 %v8911_v50  ;;  %v9091_v50 = vpack.c.bf16 %v3619_v3, %v3616_v45  ;;  %v3632_v45 = vld [vmem:[#allocation9 + $0xe8] sm:$0xff]  ;;  %v3635_v3 = vld [vmem:[#allocation9 + $0x100] sm:$0xff] }
 0x7e1   :  { %3367 = vmatprep.mubr.f32.mxu0 %v9665_v40 }
 0x7e2   :  { %7034 = vmatprep.subr.bf16.mxu0 %v9091_v50 }
 0x7e4   :  { %3368 = vmatmul.mubr.f32.gmra.mrb[50].mxu0 %v8918_v19  ;;  %v3615_v19 = vld [vmem:[#allocation9 + $0x60] sm:$0xff] }
 0x7e5   :  { %3373 = vmatprep.mubr.f32.mxu0 %v9665_v40 }
 0x7e8   :  { %3374 = vmatmul.mubr.f32.gmra.mrb[52].mxu0 %v8965_v8  ;;  %v3618_v8 = vld [vmem:[#allocation9 + $0x78] sm:$0xff] }
 0x7e9   :  { %3379 = vmatprep.mubr.f32.mxu0 %v9665_v40 }
 0x7ec   :  { %3380 = vmatmul.mubr.f32.gmra.mrb[54].mxu0 %v8972_v56  ;;  %v9093_v56 = vpack.c.bf16 %v3618_v8, %v3615_v19  ;;  %v9144_v19 = vpack.c.bf16 %v3632_v45, %v3629_v24  ;;  %v3638_v8 = vld [vmem:[#allocation9 + $0x118] sm:$0xff] }
 0x7ed   :  { %3385 = vmatprep.mubr.f32.mxu0 %v9665_v40  ;;  %v9146_v42 = vpack.c.bf16 %v3638_v8, %v3635_v3 }
 0x7ee   :  { %7036 = vmatpush1.bf16.msra.mxu0 %v9093_v56  ;;  %7074 = vmatprep.subr.bf16.mxu1 %v9144_v19 }
 0x7ef   :  { %7038 = vmatprep.subr.bf16.mxu0 %v9097_v43  ;;  %7076 = vmatpush3.bf16.msra.mxu1 %v9144_v19 }
 0x7f0   :  { %3386 = vmatmul.mubr.f32.gmra.mrb[56].mxu0 %v9025_v59  ;;  %7078 = vmatprep.subr.bf16.mxu1 %v9146_v42 }
 0x7f1   :  { %3391 = vmatprep.mubr.f32.mxu0 %v9665_v40 }
 0x7f2   :  { %7040 = vmatpush1.bf16.msra.mxu0 %v9099_v34 }
 0x7f3   :  { %7042 = vmatprep.subr.bf16.mxu0 %v9103_v48  ;;  %7080 = vmatpush3.bf16.msra.mxu1 %v9146_v42 }
 0x7f4   :  { %3392 = vmatmul.mubr.f32.gmra.mrb[58].mxu0 %v9031_v33  ;;  %7082 = vmatprep.subr.bf16.mxu1 %v9151_v29 }
 0x7f5   :  { %3397 = vmatprep.mubr.f32.mxu0 %v9665_v40 }
 0x7f6   :  { %7044 = vmatpush1.bf16.msra.mxu0 %v9105_v4 }
 0x7f7   :  { %7046 = vmatprep.subr.bf16.mxu0 %v9107_v5  ;;  %7084 = vmatpush3.bf16.msra.mxu1 %v9151_v29 }
 0x7f8   :  { %7086 = vmatprep.subr.bf16.mxu1 %v9155_v47 }
 0x7fa   :  { %7048 = vmatpush1.bf16.msra.mxu0 %v9111_v7 }
 0x7fb   :  { %7050 = vmatprep.subr.bf16.mxu0 %v9114_v22  ;;  %7088 = vmatpush3.bf16.msra.mxu1 %v9155_v47 }
 0x7fc   :  { %7122 = vmatprep.subr.bf16.mxu1 %v9120_v52 }
 0x7fe   :  { %7052 = vmatpush1.bf16.msra.mxu0 %v9117_v37 }
 0x7ff   :  { %7054 = vmatprep.subr.bf16.mxu0 %v9125_v21 }
 0x802   :  { %7056 = vmatpush1.bf16.msra.mxu0 %v9127_v60 }
 0x803   :  { %7090 = vmatprep.subr.bf16.mxu0 %v9038_v62 }
 0x873   :  { %v3030_v53 = vpop.f32.mrb[20].mxu0 }
 0x874   :  { %v7573_v54 = vadd.f32 %v3030_v53, %v8622_v0  ;;  %v3032_v61 = vpop.f32.mrb[21].mxu0  ;;  %v1469_v53 = vadd.f32 %v9673_v41, %v8670_v14 }
 0x875   :  { %v7574_v10 = vadd.f32 %v3032_v61, %v8629_v11 }
 0x876   :  { %v5471_v6 = vmul.f32 -1.442695, %v7573_v54 }
 0x877   :  { %v3036_v15 = vpop.f32.mrb[22].mxu0  ;;  %v6112_v18 = vpop.f32.mrb[54].mxu1  ;;  %v5473_v2 = vmul.f32 -1.442695, %v7574_v10 }
 0x878   :  { %7813 = vpow2.f32 %v5471_v6  ;;  %v7575_v25 = vadd.f32 %v3036_v15, %v8622_v0  ;;  %v3038_v30 = vpop.f32.mrb[23].mxu0  ;;  %v3107_v16 = vpop.f32.mrb[55].mxu1  ;;  %v3151_v51 = vadd.f32 %v9016_v63, %v6112_v18 }
 0x879   :  { %v7576_v32 = vadd.f32 %v3038_v30, %v8629_v11  ;;  %v3150_v0 = vadd.f32 %v9016_v63, %v3107_v16  ;;  %v9672_v11 = vld [vmem:[#allocation17_spill] sm:$0xff] }
 0x87a   :  { %v5472_v12 = vmul.f32 -1.442695, %v7575_v25  ;;  %v1463_v3 = vadd.f32 %v9672_v11, %v8670_v14 }
 0x87b   :  { %v5474_v9 = vmul.f32 -1.442695, %v7576_v32 }
 0x87c   :  { %7815 = vpow2.f32 %v5472_v12 }
 0x87d   :  { %7817 = vpow2.f32 %v5473_v2 }
 0x87e   :  { %7819 = vpow2.f32 %v5474_v9 }
 0x882   :  { %v7814_v49 = vpop.eup %7813 }
 0x883   :  { %v3126_v23 = vadd.f32 1.0, %v7814_v49 }
 0x885   :  { %7821 = vrcp.f32 %v3126_v23 }
 0x886   :  { %v7816_v35 = vpop.eup %7815 }
 0x887   :  { %v3127_v26 = vadd.f32 1.0, %v7816_v35  ;;  %v7818_v55 = vpop.eup %7817 }
 0x888   :  { %v7820_v1 = vpop.eup %7819  ;;  %v3142_v31 = vadd.f32 1.0, %v7818_v55 }
 0x889   :  { %7823 = vrcp.f32 %v3127_v26  ;;  %v3143_v45 = vadd.f32 1.0, %v7820_v1 }
 0x88a   :  { %7825 = vrcp.f32 %v3142_v31 }
 0x88b   :  { %7827 = vrcp.f32 %v3143_v45 }
 0x88f   :  { %v7822_v24 = vpop.eup %7821 }
 0x890   :  { %v3152_v8 = vmul.f32 %v7822_v24, %v3150_v0 }
 0x892   :  { %v3154_v28 = vadd.f32 %v3152_v8, %v1463_v3  ;;  %v3216_v3 = vld [vmem:[%s9642_s10] sm:$0x7] }
 0x893   :  { %v7824_v36 = vpop.eup %7823 }
 0x894   :  { %v3153_v54 = vmul.f32 %v7824_v36, %v3151_v51  ;;  %7829 = vtanh.f32 %v3154_v28  ;;  %v7826_v15 = vpop.eup %7825  ;;  %v9674_v28 = vld [vmem:[#allocation12_spill] sm:$0xff] }
 0x895   :  { %v7828_v63 = vpop.eup %7827  ;;  %v3158_v18 = vsub.f32 1.0, %v7826_v15  ;;  %v3162_v14 = vmul.f32 %v7826_v15, %v9025_v59  ;;  %v9675_v36 = vsub.s32 0, %v9674_v28 }
 0x896   :  { %v3155_v61 = vadd.f32 %v3153_v54, %v1469_v53  ;;  %v3159_v49 = vsub.f32 1.0, %v7828_v63  ;;  %v3163_v55 = vmul.f32 %v7828_v63, %v9031_v33  ;;  %v9676_v54 = vsub.s32 1, %v9674_v28 }
 0x897   :  { %v9171_v6 = vpop.f32.mrb[56].mxu1  ;;  %v9250_v41 = vrot.slane %v3216_v3, %v9675_v36 }
 0x898   :  { %7831 = vtanh.f32 %v3155_v61  ;;  %v9173_v10 = vpop.f32.mrb[57].mxu1  ;;  %v9254_v61 = vrot.slane %v3216_v3, %v9676_v54 }
 0x89b   :  { %v9175_v25 = vpop.f32.mrb[58].mxu1 }
 0x89c   :  { %v9177_v30 = vpop.f32.mrb[59].mxu1 }
 0x89e   :  { %v7830_v16 = vpop.eup %7829 }
 0x89f   :  { %v9179_v12 = vpop.f32.mrb[60].mxu1  ;;  %v3160_v32 = vmul.f32 %v7830_v16, %v3158_v18 }
 0x8a0   :  { %v9182_v2 = vpop.f32.mrb[61].mxu1 }
 0x8a1   :  { %v3164_v9 = vadd.f32 %v3162_v14, %v3160_v32 }
 0x8a2   :  { %v7832_v23 = vpop.eup %7831 }
 0x8a3   :  { %v9184_v35 = vpop.f32.mrb[62].mxu1  ;;  %3398 = vmatmul.mubr.f32.gmra.mrb[60].mxu0 %v3164_v9  ;;  %6166 = vmatprep.mubr.f32.mxu1 %v3164_v9  ;;  %v3161_v26 = vmul.f32 %v7832_v23, %v3159_v49 }
 0x8a4   :  { %v9187_v1 = vpop.f32.mrb[63].mxu1  ;;  %3403 = vmatprep.mubr.f32.mxu0 %v9665_v40 }
 0x8a5   :  { %v3165_v31 = vadd.f32 %v3163_v55, %v3161_v26 }
 0x8a7   :  { %v9190_v0 = vpop.f32.mrb[64].mxu1  ;;  %3404 = vmatmul.mubr.f32.gmra.mrb[62].mxu0 %v3165_v31  ;;  %6167 = vmatmul.mubr.f32.gmra.mrb[70].mxu1 %v3165_v31 }
 0x8a8   :  { %v9192_v59 = vpop.f32.mrb[65].mxu1  ;;  %3722 = vmatprep.mubr.f32.mxu0 %v9665_v40  ;;  %6201 = vmatprep.mubr.f32.mxu1 %v9665_v40 }
 0x8ab   :  { %v9196_v24 = vpop.f32.mrb[66].mxu1  ;;  %3723 = vmatmul.mubr.f32.vlgmr.msra.gmra.mrb[32].mxu0 %v9665_v40  ;;  %6202 = vmatmul.mubr.f32.vlgmr.msra.gmra.mrb[72].mxu1 %v9665_v40 }
 0x8ac   :  { %v9200_v33 = vpop.f32.mrb[67].mxu1  ;;  %3728 = vmatprep.mubr.f32.mxu0 %v9665_v40  ;;  %7092 = vmatpush1.bf16.msra.mxu0 %v9041_v46 }
 0x8ad   :  { %7094 = vmatprep.subr.bf16.mxu0 %v9085_v58  ;;  %7124 = vmatpush3.bf16.msra.mxu1 %v9120_v52 }
 0x8ae   :  { %7126 = vmatprep.subr.bf16.mxu1 %v9129_v13 }
 0x8af   :  { %v9207_v45 = vpop.f32.mrb[68].mxu1  ;;  %3729 = vmatmul.mubr.f32.gmra.mrb[34].mxu0 %v9665_v40 }
 0x8b0   :  { %v9210_v11 = vpop.f32.mrb[69].mxu1  ;;  %7096 = vmatpush1.bf16.msra.mxu0 %v9087_v44  ;;  %3924 = vmatprep.mubr.f32.mxu0 %v9665_v40 }
 0x8b1   :  { %7098 = vmatprep.subr.bf16.mxu0 %v9091_v50  ;;  %7128 = vmatpush3.bf16.msra.mxu1 %v9129_v13 }
 0x8b2   :  { %7130 = vmatprep.subr.bf16.mxu1 %v9135_v17 }
 0x8b4   :  { %7100 = vmatpush1.bf16.msra.mxu0 %v9093_v56 }
 0x8b5   :  { %7102 = vmatprep.subr.bf16.mxu0 %v9097_v43  ;;  %7132 = vmatpush3.bf16.msra.mxu1 %v9135_v17 }
 0x8b6   :  { %7134 = vmatprep.subr.bf16.mxu1 %v9140_v57 }
 0x8b8   :  { %7104 = vmatpush1.bf16.msra.mxu0 %v9099_v34 }
 0x8b9   :  { %7106 = vmatprep.subr.bf16.mxu0 %v9103_v48  ;;  %7136 = vmatpush3.bf16.msra.mxu1 %v9140_v57 }
 0x8ba   :  { %7138 = vmatprep.subr.bf16.mxu1 %v9144_v19 }
 0x8bc   :  { %7108 = vmatpush1.bf16.msra.mxu0 %v9105_v4 }
 0x8bd   :  { %7110 = vmatprep.subr.bf16.mxu0 %v9107_v5  ;;  %7140 = vmatpush3.bf16.msra.mxu1 %v9144_v19 }
 0x8be   :  { %7142 = vmatprep.subr.bf16.mxu1 %v9146_v42 }
 0x8c0   :  { %7112 = vmatpush1.bf16.msra.mxu0 %v9111_v7 }
 0x8c1   :  { %7114 = vmatprep.subr.bf16.mxu0 %v9114_v22  ;;  %7144 = vmatpush3.bf16.msra.mxu1 %v9146_v42 }
 0x8c2   :  { %7146 = vmatprep.subr.bf16.mxu1 %v9151_v29 }
 0x8c4   :  { %7116 = vmatpush1.bf16.msra.mxu0 %v9117_v37 }
 0x8c5   :  { %7118 = vmatprep.subr.bf16.mxu0 %v9125_v21  ;;  %7148 = vmatpush3.bf16.msra.mxu1 %v9151_v29 }
 0x8c6   :  { %7150 = vmatprep.subr.bf16.mxu1 %v9155_v47 }
 0x8c8   :  { %7120 = vmatpush1.bf16.msra.mxu0 %v9127_v60 }
 0x8c9   :  { %7152 = vmatpush3.bf16.msra.mxu1 %v9155_v47  ;;  %7154 = vmatprep.subr.bf16.mxu0 %v9038_v62 }
 0x8ca   :  { %7186 = vmatprep.subr.bf16.mxu1 %v9120_v52 }
 0x97a   :  { %v9244_v8 = vpop.f32.mrb[70].mxu1 }
 0x97b   :  { %v9246_v51 = vpop.f32.mrb[71].mxu1 }
 0x97e   :  { %v3724_v53 = vpop.f32.mrb[32].mxu0  ;;  %v6203_v15 = vpop.f32.mrb[72].mxu1 }
 0x97f   :  { %v7577_v63 = vadd.f32 %v3724_v53, %v9250_v41  ;;  %v3726_v18 = vpop.f32.mrb[33].mxu0  ;;  %v3801_v16 = vpop.f32.mrb[73].mxu1 }
 0x980   :  { %v7578_v14 = vadd.f32 %v3726_v18, %v9254_v61  ;;  %v9263_v18 = vld [vmem:[%s9644_s12] ss:$0 sm:$0xff] }
 0x981   :  { %v5476_v32 = vmul.f32 -1.442695, %v7577_v63 }
 0x982   :  { %v3730_v9 = vpop.f32.mrb[34].mxu0  ;;  %v5478_v31 = vmul.f32 -1.442695, %v7578_v14 }
 0x983   :  { %7833 = vpow2.f32 %v5476_v32  ;;  %v7579_v49 = vadd.f32 %v3730_v9, %v9250_v41  ;;  %v3732_v23 = vpop.f32.mrb[35].mxu0  ;;  %v9677_v9 = vsub.s32 2, %v9674_v28 }
 0x984   :  { %v7580_v55 = vadd.f32 %v3732_v23, %v9254_v61  ;;  %v3844_v23 = vadd.f32 %v9263_v18, %v3801_v16 }
 0x985   :  { %v5477_v26 = vmul.f32 -1.442695, %v7579_v49  ;;  %v9267_v14 = vrot.slane %v3216_v3, %v9677_v9 }
 0x986   :  { %v5479_v36 = vmul.f32 -1.442695, %v7580_v55 }
 0x987   :  { %7835 = vpow2.f32 %v5477_v26  ;;  %v3482_v28 = vadd.f32 %v9171_v6, %v9267_v14 }
 0x988   :  { %7837 = vpow2.f32 %v5478_v31 }
 0x989   :  { %7839 = vpow2.f32 %v5479_v36  ;;  %v3845_v36 = vadd.f32 %v6203_v15, %v9263_v18 }
 0x98d   :  { %v7834_v54 = vpop.eup %7833 }
 0x98e   :  { %v3820_v53 = vadd.f32 1.0, %v7834_v54 }
 0x990   :  { %7841 = vrcp.f32 %v3820_v53 }
 0x991   :  { %v7836_v20 = vpop.eup %7835 }
 0x992   :  { %v3821_v63 = vadd.f32 1.0, %v7836_v20  ;;  %v7838_v27 = vpop.eup %7837  ;;  %v3477_v20 = vadd.f32 %v9173_v10, %v9267_v14 }
 0x993   :  { %v7840_v32 = vpop.eup %7839  ;;  %v3836_v49 = vadd.f32 1.0, %v7838_v27 }
 0x994   :  { %7843 = vrcp.f32 %v3821_v63  ;;  %v3837_v55 = vadd.f32 1.0, %v7840_v32 }
 0x995   :  { %7845 = vrcp.f32 %v3836_v49 }
 0x996   :  { %7847 = vrcp.f32 %v3837_v55 }
 0x99a   :  { %v7842_v26 = vpop.eup %7841 }
 0x99b   :  { %v3846_v31 = vmul.f32 %v7842_v26, %v3844_v23 }
 0x99d   :  { %v3848_v54 = vadd.f32 %v3846_v31, %v3477_v20 }
 0x99e   :  { %v7844_v53 = vpop.eup %7843 }
 0x99f   :  { %v3847_v3 = vmul.f32 %v7844_v53, %v3845_v36  ;;  %7849 = vtanh.f32 %v3848_v54  ;;  %v7846_v16 = vpop.eup %7845 }
 0x9a0   :  { %v7848_v63 = vpop.eup %7847  ;;  %v3852_v32 = vsub.f32 1.0, %v7846_v16  ;;  %v3856_v10 = vmul.f32 0.0, %v7846_v16 }
 0x9a1   :  { %v3849_v27 = vadd.f32 %v3847_v3, %v3482_v28  ;;  %v3853_v23 = vsub.f32 1.0, %v7848_v63  ;;  %v3857_v6 = vmul.f32 0.0, %v7848_v63 }
 0x9a3   :  { %7851 = vtanh.f32 %v3849_v27 }
 0x9a9   :  { %v7850_v9 = vpop.eup %7849 }
 0x9aa   :  { %v3854_v38 = vmul.f32 %v7850_v9, %v3852_v32 }
 0x9ac   :  { %v9275_v49 = vadd.f32 %v3856_v10, %v3854_v38 }
 0x9ad   :  { %v7852_v15 = vpop.eup %7851 }
 0x9ae   :  { %3925 = vmatmul.mubr.f32.vlgmr.msra.gmra.mrb[36].mxu0 %v9275_v49  ;;  %6236 = vmatprep.mubr.f32.mxu1 %v9275_v49  ;;  %v3855_v26 = vmul.f32 %v7852_v15, %v3853_v23 }
 0x9af   :  { %3930 = vmatprep.mubr.f32.mxu0 %v9665_v40  ;;  %7156 = vmatpush1.bf16.msra.mxu0 %v9041_v46 }
 0x9b0   :  { %v9281_v55 = vadd.f32 %v3857_v6, %v3855_v26  ;;  %7158 = vmatprep.subr.bf16.mxu0 %v9085_v58 }
 0x9b2   :  { %3931 = vmatmul.mubr.f32.gmra.mrb[38].mxu0 %v9281_v55  ;;  %6237 = vmatmul.mubr.f32.vlgmr.msra.gmra.mrb[74].mxu1 %v9281_v55 }
 0x9b3   :  { %7160 = vmatpush1.bf16.msra.mxu0 %v9087_v44  ;;  %7188 = vmatpush3.bf16.msra.mxu1 %v9120_v52 }
 0x9b4   :  { %7162 = vmatprep.subr.bf16.mxu0 %v9091_v50  ;;  %7190 = vmatprep.subr.bf16.mxu1 %v9129_v13 }
 0x9b5   :  { %4126 = vmatprep.mubr.f32.mxu0 %v9665_v40 }
 0x9b7   :  { %7164 = vmatpush1.bf16.msra.mxu0 %v9093_v56  ;;  %7192 = vmatpush3.bf16.msra.mxu1 %v9129_v13 }
 0x9b8   :  { %7166 = vmatprep.subr.bf16.mxu0 %v9097_v43  ;;  %7194 = vmatprep.subr.bf16.mxu1 %v9135_v17 }
 0x9bb   :  { %7168 = vmatpush1.bf16.msra.mxu0 %v9099_v34  ;;  %7196 = vmatpush3.bf16.msra.mxu1 %v9135_v17 }
 0x9bc   :  { %7170 = vmatprep.subr.bf16.mxu0 %v9103_v48  ;;  %7198 = vmatprep.subr.bf16.mxu1 %v9140_v57 }
 0x9bf   :  { %7172 = vmatpush1.bf16.msra.mxu0 %v9105_v4  ;;  %7200 = vmatpush3.bf16.msra.mxu1 %v9140_v57 }
 0x9c0   :  { %7174 = vmatprep.subr.bf16.mxu0 %v9107_v5  ;;  %7202 = vmatprep.subr.bf16.mxu1 %v9144_v19 }
 0x9c3   :  { %7176 = vmatpush1.bf16.msra.mxu0 %v9111_v7  ;;  %7204 = vmatpush3.bf16.msra.mxu1 %v9144_v19 }
 0x9c4   :  { %7178 = vmatprep.subr.bf16.mxu0 %v9114_v22  ;;  %7206 = vmatprep.subr.bf16.mxu1 %v9146_v42 }
 0x9c7   :  { %7180 = vmatpush1.bf16.msra.mxu0 %v9117_v37  ;;  %7208 = vmatpush3.bf16.msra.mxu1 %v9146_v42 }
 0x9c8   :  { %7182 = vmatprep.subr.bf16.mxu0 %v9125_v21  ;;  %7210 = vmatprep.subr.bf16.mxu1 %v9151_v29 }
 0x9cb   :  { %7184 = vmatpush1.bf16.msra.mxu0 %v9127_v60  ;;  %7212 = vmatpush3.bf16.msra.mxu1 %v9151_v29 }
 0x9cc   :  { %7214 = vmatprep.subr.bf16.mxu1 %v9155_v47  ;;  %7218 = vmatprep.subr.bf16.mxu0 %v9038_v62 }
 0x9cf   :  { %7216 = vmatpush3.bf16.msra.mxu1 %v9155_v47 }
 0x9d0   :  { %7250 = vmatprep.subr.bf16.mxu1 %v9120_v52 }
 0xa81   :  { %v3926_v38 = vpop.f32.mrb[36].mxu0 }
 0xa82   :  { %v7581_v20 = vadd.f32 %v3926_v38, %v9250_v41  ;;  %v3928_v31 = vpop.f32.mrb[37].mxu0 }
 0xa83   :  { %v7582_v54 = vadd.f32 %v3928_v31, %v9254_v61 }
 0xa84   :  { %v5480_v36 = vmul.f32 -1.442695, %v7581_v20 }
 0xa85   :  { %v3932_v53 = vpop.f32.mrb[38].mxu0  ;;  %v6238_v28 = vpop.f32.mrb[74].mxu1  ;;  %v5482_v9 = vmul.f32 -1.442695, %v7582_v54  ;;  %v3487_v54 = vadd.f32 %v9177_v30, %v9267_v14 }
 0xa86   :  { %7853 = vpow2.f32 %v5480_v36  ;;  %v7583_v3 = vadd.f32 %v3932_v53, %v9250_v41  ;;  %v3934_v27 = vpop.f32.mrb[39].mxu0  ;;  %v4003_v16 = vpop.f32.mrb[75].mxu1 }
 0xa87   :  { %v7584_v32 = vadd.f32 %v3934_v27, %v9254_v61  ;;  %v4046_v36 = vadd.f32 %v9263_v18, %v4003_v16 }
 0xa88   :  { %v5481_v63 = vmul.f32 -1.442695, %v7583_v3 }
 0xa89   :  { %v5483_v10 = vmul.f32 -1.442695, %v7584_v32 }
 0xa8a   :  { %7855 = vpow2.f32 %v5481_v63  ;;  %v4047_v63 = vadd.f32 %v6238_v28, %v9263_v18 }
 0xa8b   :  { %7857 = vpow2.f32 %v5482_v9 }
 0xa8c   :  { %7859 = vpow2.f32 %v5483_v10  ;;  %v3492_v10 = vadd.f32 %v9175_v25, %v9267_v14 }
 0xa90   :  { %v7854_v23 = vpop.eup %7853 }
 0xa91   :  { %v4022_v15 = vadd.f32 1.0, %v7854_v23 }
 0xa93   :  { %7861 = vrcp.f32 %v4022_v15 }
 0xa94   :  { %v7856_v26 = vpop.eup %7855 }
 0xa95   :  { %v4023_v6 = vadd.f32 1.0, %v7856_v26  ;;  %v7858_v38 = vpop.eup %7857 }
 0xa96   :  { %v7860_v20 = vpop.eup %7859  ;;  %v4038_v31 = vadd.f32 1.0, %v7858_v38 }
 0xa97   :  { %7863 = vrcp.f32 %v4023_v6  ;;  %v4039_v3 = vadd.f32 1.0, %v7860_v20 }
 0xa98   :  { %7865 = vrcp.f32 %v4038_v31 }
 0xa99   :  { %7867 = vrcp.f32 %v4039_v3 }
 0xa9d   :  { %v7862_v53 = vpop.eup %7861 }
 0xa9e   :  { %v4048_v27 = vmul.f32 %v7862_v53, %v4046_v36 }
 0xaa0   :  { %v4050_v32 = vadd.f32 %v4048_v27, %v3487_v54 }
 0xaa1   :  { %v7864_v9 = vpop.eup %7863 }
 0xaa2   :  { %v4049_v23 = vmul.f32 %v7864_v9, %v4047_v63  ;;  %7869 = vtanh.f32 %v4050_v32  ;;  %v7866_v16 = vpop.eup %7865 }
 0xaa3   :  { %v7868_v26 = vpop.eup %7867  ;;  %v4054_v6 = vsub.f32 1.0, %v7866_v16  ;;  %v4058_v30 = vmul.f32 %v7866_v16, %v9275_v49 }
 0xaa4   :  { %v4051_v15 = vadd.f32 %v4049_v23, %v3492_v10  ;;  %v4055_v28 = vsub.f32 1.0, %v7868_v26  ;;  %v4059_v53 = vmul.f32 %v7868_v26, %v9281_v55 }
 0xaa6   :  { %7871 = vtanh.f32 %v4051_v15 }
 0xaac   :  { %v7870_v38 = vpop.eup %7869 }
 0xaad   :  { %v4056_v20 = vmul.f32 %v7870_v38, %v4054_v6 }
 0xaaf   :  { %v9328_v31 = vadd.f32 %v4058_v30, %v4056_v20 }
 0xab0   :  { %v7872_v36 = vpop.eup %7871 }
 0xab1   :  { %4127 = vmatmul.mubr.f32.vlgmr.msra.gmra.mrb[40].mxu0 %v9328_v31  ;;  %6271 = vmatprep.mubr.f32.mxu1 %v9328_v31  ;;  %v4057_v25 = vmul.f32 %v7872_v36, %v4055_v28 }
 0xab2   :  { %4132 = vmatprep.mubr.f32.mxu0 %v9665_v40  ;;  %7220 = vmatpush1.bf16.msra.mxu0 %v9041_v46 }
 0xab3   :  { %v9335_v3 = vadd.f32 %v4059_v53, %v4057_v25  ;;  %7222 = vmatprep.subr.bf16.mxu0 %v9085_v58 }
 0xab5   :  { %4133 = vmatmul.mubr.f32.gmra.mrb[42].mxu0 %v9335_v3  ;;  %6272 = vmatmul.mubr.f32.vlgmr.msra.gmra.mrb[76].mxu1 %v9335_v3 }
 0xab6   :  { %7224 = vmatpush1.bf16.msra.mxu0 %v9087_v44  ;;  %7252 = vmatpush3.bf16.msra.mxu1 %v9120_v52 }
 0xab7   :  { %7226 = vmatprep.subr.bf16.mxu0 %v9091_v50  ;;  %7254 = vmatprep.subr.bf16.mxu1 %v9129_v13 }
 0xab8   :  { %4328 = vmatprep.mubr.f32.mxu0 %v9665_v40 }
 0xaba   :  { %7228 = vmatpush1.bf16.msra.mxu0 %v9093_v56  ;;  %7256 = vmatpush3.bf16.msra.mxu1 %v9129_v13 }
 0xabb   :  { %7230 = vmatprep.subr.bf16.mxu0 %v9097_v43  ;;  %7258 = vmatprep.subr.bf16.mxu1 %v9135_v17 }
 0xabe   :  { %7232 = vmatpush1.bf16.msra.mxu0 %v9099_v34  ;;  %7260 = vmatpush3.bf16.msra.mxu1 %v9135_v17 }
 0xabf   :  { %7234 = vmatprep.subr.bf16.mxu0 %v9103_v48  ;;  %7262 = vmatprep.subr.bf16.mxu1 %v9140_v57 }
 0xac2   :  { %7236 = vmatpush1.bf16.msra.mxu0 %v9105_v4  ;;  %7264 = vmatpush3.bf16.msra.mxu1 %v9140_v57 }
 0xac3   :  { %7238 = vmatprep.subr.bf16.mxu0 %v9107_v5  ;;  %7266 = vmatprep.subr.bf16.mxu1 %v9144_v19 }
 0xac6   :  { %7240 = vmatpush1.bf16.msra.mxu0 %v9111_v7  ;;  %7268 = vmatpush3.bf16.msra.mxu1 %v9144_v19 }
 0xac7   :  { %7242 = vmatprep.subr.bf16.mxu0 %v9114_v22  ;;  %7270 = vmatprep.subr.bf16.mxu1 %v9146_v42 }
 0xaca   :  { %7244 = vmatpush1.bf16.msra.mxu0 %v9117_v37  ;;  %7272 = vmatpush3.bf16.msra.mxu1 %v9146_v42 }
 0xacb   :  { %7246 = vmatprep.subr.bf16.mxu0 %v9125_v21  ;;  %7274 = vmatprep.subr.bf16.mxu1 %v9151_v29 }
 0xace   :  { %7248 = vmatpush1.bf16.msra.mxu0 %v9127_v60  ;;  %7276 = vmatpush3.bf16.msra.mxu1 %v9151_v29 }
 0xacf   :  { %7278 = vmatprep.subr.bf16.mxu1 %v9155_v47  ;;  %7282 = vmatprep.subr.bf16.mxu0 %v9038_v62 }
 0xad2   :  { %7280 = vmatpush3.bf16.msra.mxu1 %v9155_v47 }
 0xad3   :  { %7314 = vmatprep.subr.bf16.mxu1 %v9120_v52 }
 0xb84   :  { %v4128_v49 = vpop.f32.mrb[40].mxu0 }
 0xb85   :  { %v7585_v55 = vadd.f32 %v4128_v49, %v9250_v41  ;;  %v4130_v54 = vpop.f32.mrb[41].mxu0 }
 0xb86   :  { %v7586_v63 = vadd.f32 %v4130_v54, %v9254_v61 }
 0xb87   :  { %v5484_v27 = vmul.f32 -1.442695, %v7585_v55 }
 0xb88   :  { %v4134_v32 = vpop.f32.mrb[42].mxu0  ;;  %v6273_v9 = vpop.f32.mrb[76].mxu1  ;;  %v5486_v6 = vmul.f32 -1.442695, %v7586_v63  ;;  %v3497_v63 = vadd.f32 %v9182_v2, %v9267_v14 }
 0xb89   :  { %7873 = vpow2.f32 %v5484_v27  ;;  %v7587_v10 = vadd.f32 %v4134_v32, %v9250_v41  ;;  %v4136_v23 = vpop.f32.mrb[43].mxu0  ;;  %v4205_v15 = vpop.f32.mrb[77].mxu1 }
 0xb8a   :  { %v7588_v26 = vadd.f32 %v4136_v23, %v9254_v61  ;;  %v4248_v55 = vadd.f32 %v9263_v18, %v4205_v15 }
 0xb8b   :  { %v5485_v16 = vmul.f32 -1.442695, %v7587_v10  ;;  %v4249_v10 = vadd.f32 %v6273_v9, %v9263_v18 }
 0xb8c   :  { %v5487_v38 = vmul.f32 -1.442695, %v7588_v26  ;;  %v3502_v26 = vadd.f32 %v9179_v12, %v9267_v14 }
 0xb8d   :  { %7875 = vpow2.f32 %v5485_v16 }
 0xb8e   :  { %7877 = vpow2.f32 %v5486_v6 }
 0xb8f   :  { %7879 = vpow2.f32 %v5487_v38 }
 0xb93   :  { %v7874_v20 = vpop.eup %7873 }
 0xb94   :  { %v4224_v30 = vadd.f32 1.0, %v7874_v20 }
 0xb96   :  { %7881 = vrcp.f32 %v4224_v30 }
 0xb97   :  { %v7876_v28 = vpop.eup %7875 }
 0xb98   :  { %v4225_v36 = vadd.f32 1.0, %v7876_v28  ;;  %v7878_v25 = vpop.eup %7877 }
 0xb99   :  { %v7880_v53 = vpop.eup %7879  ;;  %v4240_v49 = vadd.f32 1.0, %v7878_v25 }
 0xb9a   :  { %7883 = vrcp.f32 %v4225_v36  ;;  %v4241_v27 = vadd.f32 1.0, %v7880_v53 }
 0xb9b   :  { %7885 = vrcp.f32 %v4240_v49 }
 0xb9c   :  { %7887 = vrcp.f32 %v4241_v27 }
 0xba0   :  { %v7882_v54 = vpop.eup %7881 }
 0xba1   :  { %v4250_v32 = vmul.f32 %v7882_v54, %v4248_v55 }
 0xba3   :  { %v4252_v23 = vadd.f32 %v4250_v32, %v3497_v63 }
 0xba4   :  { %v7884_v16 = vpop.eup %7883 }
 0xba5   :  { %v4251_v6 = vmul.f32 %v7884_v16, %v4249_v10  ;;  %7889 = vtanh.f32 %v4252_v23  ;;  %v7886_v15 = vpop.eup %7885 }
 0xba6   :  { %v7888_v20 = vpop.eup %7887  ;;  %v4256_v30 = vsub.f32 1.0, %v7886_v15  ;;  %v4260_v2 = vmul.f32 %v7886_v15, %v9328_v31 }
 0xba7   :  { %v4253_v38 = vadd.f32 %v4251_v6, %v3502_v26  ;;  %v4257_v9 = vsub.f32 1.0, %v7888_v20  ;;  %v4261_v49 = vmul.f32 %v7888_v20, %v9335_v3 }
 0xba9   :  { %7891 = vtanh.f32 %v4253_v38 }
 0xbaf   :  { %v7890_v28 = vpop.eup %7889 }
 0xbb0   :  { %v4258_v36 = vmul.f32 %v7890_v28, %v4256_v30 }
 0xbb2   :  { %v9382_v25 = vadd.f32 %v4260_v2, %v4258_v36 }
 0xbb3   :  { %v7892_v53 = vpop.eup %7891 }
 0xbb4   :  { %4329 = vmatmul.mubr.f32.vlgmr.msra.gmra.mrb[44].mxu0 %v9382_v25  ;;  %6306 = vmatprep.mubr.f32.mxu1 %v9382_v25  ;;  %v4259_v12 = vmul.f32 %v7892_v53, %v4257_v9 }
 0xbb5   :  { %4334 = vmatprep.mubr.f32.mxu0 %v9665_v40  ;;  %7284 = vmatpush1.bf16.msra.mxu0 %v9041_v46 }
 0xbb6   :  { %v9389_v55 = vadd.f32 %v4261_v49, %v4259_v12  ;;  %7286 = vmatprep.subr.bf16.mxu0 %v9085_v58 }
 0xbb8   :  { %4335 = vmatmul.mubr.f32.gmra.mrb[46].mxu0 %v9389_v55  ;;  %6307 = vmatmul.mubr.f32.vlgmr.msra.gmra.mrb[78].mxu1 %v9389_v55 }
 0xbb9   :  { %7288 = vmatpush1.bf16.msra.mxu0 %v9087_v44  ;;  %7316 = vmatpush3.bf16.msra.mxu1 %v9120_v52 }
 0xbba   :  { %7290 = vmatprep.subr.bf16.mxu0 %v9091_v50  ;;  %7318 = vmatprep.subr.bf16.mxu1 %v9129_v13 }
 0xbbb   :  { %4530 = vmatprep.mubr.f32.mxu0 %v9665_v40 }
 0xbbd   :  { %7292 = vmatpush1.bf16.msra.mxu0 %v9093_v56  ;;  %7320 = vmatpush3.bf16.msra.mxu1 %v9129_v13 }
 0xbbe   :  { %7294 = vmatprep.subr.bf16.mxu0 %v9097_v43  ;;  %7322 = vmatprep.subr.bf16.mxu1 %v9135_v17 }
 0xbc1   :  { %7296 = vmatpush1.bf16.msra.mxu0 %v9099_v34  ;;  %7324 = vmatpush3.bf16.msra.mxu1 %v9135_v17 }
 0xbc2   :  { %7298 = vmatprep.subr.bf16.mxu0 %v9103_v48  ;;  %7326 = vmatprep.subr.bf16.mxu1 %v9140_v57 }
 0xbc5   :  { %7300 = vmatpush1.bf16.msra.mxu0 %v9105_v4  ;;  %7328 = vmatpush3.bf16.msra.mxu1 %v9140_v57 }
 0xbc6   :  { %7302 = vmatprep.subr.bf16.mxu0 %v9107_v5  ;;  %7330 = vmatprep.subr.bf16.mxu1 %v9144_v19 }
 0xbc9   :  { %7304 = vmatpush1.bf16.msra.mxu0 %v9111_v7  ;;  %7332 = vmatpush3.bf16.msra.mxu1 %v9144_v19 }
 0xbca   :  { %7306 = vmatprep.subr.bf16.mxu0 %v9114_v22  ;;  %7334 = vmatprep.subr.bf16.mxu1 %v9146_v42 }
 0xbcd   :  { %7308 = vmatpush1.bf16.msra.mxu0 %v9117_v37  ;;  %7336 = vmatpush3.bf16.msra.mxu1 %v9146_v42 }
 0xbce   :  { %7310 = vmatprep.subr.bf16.mxu0 %v9125_v21  ;;  %7338 = vmatprep.subr.bf16.mxu1 %v9151_v29 }
 0xbd1   :  { %7312 = vmatpush1.bf16.msra.mxu0 %v9127_v60  ;;  %7340 = vmatpush3.bf16.msra.mxu1 %v9151_v29 }
 0xbd2   :  { %7342 = vmatprep.subr.bf16.mxu1 %v9155_v47  ;;  %7346 = vmatprep.subr.bf16.mxu0 %v9038_v62 }
 0xbd5   :  { %7344 = vmatpush3.bf16.msra.mxu1 %v9155_v47 }
 0xbd6   :  { %7378 = vmatprep.subr.bf16.mxu1 %v9120_v52 }
 0xc87   :  { %v4330_v31 = vpop.f32.mrb[44].mxu0 }
 0xc88   :  { %v7589_v3 = vadd.f32 %v4330_v31, %v9250_v41  ;;  %v4332_v54 = vpop.f32.mrb[45].mxu0 }
 0xc89   :  { %v7590_v63 = vadd.f32 %v4332_v54, %v9254_v61  ;;  %v3507_v54 = vadd.f32 %v9187_v1, %v9267_v14 }
 0xc8a   :  { %v5488_v27 = vmul.f32 -1.442695, %v7589_v3 }
 0xc8b   :  { %v4336_v32 = vpop.f32.mrb[46].mxu0  ;;  %v6308_v10 = vpop.f32.mrb[78].mxu1  ;;  %v5490_v15 = vmul.f32 -1.442695, %v7590_v63 }
 0xc8c   :  { %7893 = vpow2.f32 %v5488_v27  ;;  %v7591_v23 = vadd.f32 %v4336_v32, %v9250_v41  ;;  %v4338_v16 = vpop.f32.mrb[47].mxu0  ;;  %v4407_v26 = vpop.f32.mrb[79].mxu1  ;;  %v4451_v63 = vadd.f32 %v6308_v10, %v9263_v18 }
 0xc8d   :  { %v7592_v38 = vadd.f32 %v4338_v16, %v9254_v61  ;;  %v4450_v49 = vadd.f32 %v9263_v18, %v4407_v26  ;;  %v3512_v16 = vadd.f32 %v9184_v35, %v9267_v14 }
 0xc8e   :  { %v5489_v6 = vmul.f32 -1.442695, %v7591_v23 }
 0xc8f   :  { %v5491_v20 = vmul.f32 -1.442695, %v7592_v38 }
 0xc90   :  { %7895 = vpow2.f32 %v5489_v6 }
 0xc91   :  { %7897 = vpow2.f32 %v5490_v15 }
 0xc92   :  { %7899 = vpow2.f32 %v5491_v20 }
 0xc96   :  { %v7894_v30 = vpop.eup %7893 }
 0xc97   :  { %v4426_v28 = vadd.f32 1.0, %v7894_v30 }
 0xc99   :  { %7901 = vrcp.f32 %v4426_v28 }
 0xc9a   :  { %v7896_v36 = vpop.eup %7895 }
 0xc9b   :  { %v4427_v2 = vadd.f32 1.0, %v7896_v36  ;;  %v7898_v9 = vpop.eup %7897 }
 0xc9c   :  { %v7900_v53 = vpop.eup %7899  ;;  %v4442_v12 = vadd.f32 1.0, %v7898_v9 }
 0xc9d   :  { %7903 = vrcp.f32 %v4427_v2  ;;  %v4443_v3 = vadd.f32 1.0, %v7900_v53 }
 0xc9e   :  { %7905 = vrcp.f32 %v4442_v12 }
 0xc9f   :  { %7907 = vrcp.f32 %v4443_v3 }
 0xca3   :  { %v7902_v31 = vpop.eup %7901 }
 0xca4   :  { %v4452_v27 = vmul.f32 %v7902_v31, %v4450_v49 }
 0xca6   :  { %v4454_v32 = vadd.f32 %v4452_v27, %v3507_v54 }
 0xca7   :  { %v7904_v23 = vpop.eup %7903 }
 0xca8   :  { %v4453_v6 = vmul.f32 %v7904_v23, %v4451_v63  ;;  %7909 = vtanh.f32 %v4454_v32  ;;  %v7906_v26 = vpop.eup %7905 }
 0xca9   :  { %v7908_v15 = vpop.eup %7907  ;;  %v4458_v20 = vsub.f32 1.0, %v7906_v26  ;;  %v4462_v1 = vmul.f32 %v7906_v26, %v9382_v25 }
 0xcaa   :  { %v4455_v38 = vadd.f32 %v4453_v6, %v3512_v16  ;;  %v4459_v10 = vsub.f32 1.0, %v7908_v15  ;;  %v4463_v9 = vmul.f32 %v7908_v15, %v9389_v55 }
 0xcac   :  { %7911 = vtanh.f32 %v4455_v38 }
 0xcb2   :  { %v7910_v30 = vpop.eup %7909 }
 0xcb3   :  { %v4460_v28 = vmul.f32 %v7910_v30, %v4458_v20 }
 0xcb5   :  { %v9436_v36 = vadd.f32 %v4462_v1, %v4460_v28 }
 0xcb6   :  { %v7912_v2 = vpop.eup %7911 }
 0xcb7   :  { %4531 = vmatmul.mubr.f32.vlgmr.msra.gmra.mrb[48].mxu0 %v9436_v36  ;;  %6341 = vmatprep.mubr.f32.mxu1 %v9436_v36  ;;  %v4461_v35 = vmul.f32 %v7912_v2, %v4459_v10 }
 0xcb8   :  { %4536 = vmatprep.mubr.f32.mxu0 %v9665_v40  ;;  %7348 = vmatpush1.bf16.msra.mxu0 %v9041_v46 }
 0xcb9   :  { %v9443_v53 = vadd.f32 %v4463_v9, %v4461_v35  ;;  %7350 = vmatprep.subr.bf16.mxu0 %v9085_v58 }
 0xcbb   :  { %4537 = vmatmul.mubr.f32.gmra.mrb[50].mxu0 %v9443_v53  ;;  %6342 = vmatmul.mubr.f32.vlgmr.msra.gmra.mrb[80].mxu1 %v9443_v53 }
 0xcbc   :  { %7352 = vmatpush1.bf16.msra.mxu0 %v9087_v44  ;;  %7380 = vmatpush3.bf16.msra.mxu1 %v9120_v52 }
 0xcbd   :  { %7354 = vmatprep.subr.bf16.mxu0 %v9091_v50  ;;  %7382 = vmatprep.subr.bf16.mxu1 %v9129_v13 }
 0xcbe   :  { %4732 = vmatprep.mubr.f32.mxu0 %v9665_v40 }
 0xcc0   :  { %7356 = vmatpush1.bf16.msra.mxu0 %v9093_v56  ;;  %7384 = vmatpush3.bf16.msra.mxu1 %v9129_v13 }
 0xcc1   :  { %7358 = vmatprep.subr.bf16.mxu0 %v9097_v43  ;;  %7386 = vmatprep.subr.bf16.mxu1 %v9135_v17 }
 0xcc4   :  { %7360 = vmatpush1.bf16.msra.mxu0 %v9099_v34  ;;  %7388 = vmatpush3.bf16.msra.mxu1 %v9135_v17 }
 0xcc5   :  { %7362 = vmatprep.subr.bf16.mxu0 %v9103_v48  ;;  %7390 = vmatprep.subr.bf16.mxu1 %v9140_v57 }
 0xcc8   :  { %7364 = vmatpush1.bf16.msra.mxu0 %v9105_v4  ;;  %7392 = vmatpush3.bf16.msra.mxu1 %v9140_v57 }
 0xcc9   :  { %7366 = vmatprep.subr.bf16.mxu0 %v9107_v5  ;;  %7394 = vmatprep.subr.bf16.mxu1 %v9144_v19 }
 0xccc   :  { %7368 = vmatpush1.bf16.msra.mxu0 %v9111_v7  ;;  %7396 = vmatpush3.bf16.msra.mxu1 %v9144_v19 }
 0xccd   :  { %7370 = vmatprep.subr.bf16.mxu0 %v9114_v22  ;;  %7398 = vmatprep.subr.bf16.mxu1 %v9146_v42 }
 0xcd0   :  { %7372 = vmatpush1.bf16.msra.mxu0 %v9117_v37  ;;  %7400 = vmatpush3.bf16.msra.mxu1 %v9146_v42 }
 0xcd1   :  { %7374 = vmatprep.subr.bf16.mxu0 %v9125_v21  ;;  %7402 = vmatprep.subr.bf16.mxu1 %v9151_v29 }
 0xcd4   :  { %7376 = vmatpush1.bf16.msra.mxu0 %v9127_v60  ;;  %7404 = vmatpush3.bf16.msra.mxu1 %v9151_v29 }
 0xcd5   :  { %7406 = vmatprep.subr.bf16.mxu1 %v9155_v47  ;;  %7410 = vmatprep.subr.bf16.mxu0 %v9038_v62 }
 0xcd8   :  { %7408 = vmatpush3.bf16.msra.mxu1 %v9155_v47 }
 0xcd9   :  { %7442 = vmatprep.subr.bf16.mxu1 %v9120_v52 }
 0xd8a   :  { %v4532_v25 = vpop.f32.mrb[48].mxu0 }
 0xd8b   :  { %v7593_v55 = vadd.f32 %v4532_v25, %v9250_v41  ;;  %v4534_v12 = vpop.f32.mrb[49].mxu0  ;;  %v3517_v25 = vadd.f32 %v9192_v59, %v9267_v14 }
 0xd8c   :  { %v7594_v31 = vadd.f32 %v4534_v12, %v9254_v61 }
 0xd8d   :  { %v5492_v49 = vmul.f32 -1.442695, %v7593_v55 }
 0xd8e   :  { %v4538_v3 = vpop.f32.mrb[50].mxu0  ;;  %v6343_v54 = vpop.f32.mrb[80].mxu1  ;;  %v5494_v6 = vmul.f32 -1.442695, %v7594_v31 }
 0xd8f   :  { %7913 = vpow2.f32 %v5492_v49  ;;  %v7595_v27 = vadd.f32 %v4538_v3, %v9250_v41  ;;  %v4540_v63 = vpop.f32.mrb[51].mxu0  ;;  %v4609_v32 = vpop.f32.mrb[81].mxu1  ;;  %v4653_v12 = vadd.f32 %v6343_v54, %v9263_v18  ;;  %v3522_v3 = vadd.f32 %v9190_v0, %v9267_v14 }
 0xd90   :  { %v7596_v16 = vadd.f32 %v4540_v63, %v9254_v61  ;;  %v4652_v2 = vadd.f32 %v9263_v18, %v4609_v32 }
 0xd91   :  { %v5493_v23 = vmul.f32 -1.442695, %v7595_v27 }
 0xd92   :  { %v5495_v38 = vmul.f32 -1.442695, %v7596_v16 }
 0xd93   :  { %7915 = vpow2.f32 %v5493_v23 }
 0xd94   :  { %7917 = vpow2.f32 %v5494_v6 }
 0xd95   :  { %7919 = vpow2.f32 %v5495_v38 }
 0xd99   :  { %v7914_v26 = vpop.eup %7913 }
 0xd9a   :  { %v4628_v15 = vadd.f32 1.0, %v7914_v26 }
 0xd9c   :  { %7921 = vrcp.f32 %v4628_v15 }
 0xd9d   :  { %v7916_v20 = vpop.eup %7915 }
 0xd9e   :  { %v4629_v30 = vadd.f32 1.0, %v7916_v20  ;;  %v7918_v28 = vpop.eup %7917 }
 0xd9f   :  { %v7920_v1 = vpop.eup %7919  ;;  %v4644_v10 = vadd.f32 1.0, %v7918_v28 }
 0xda0   :  { %7923 = vrcp.f32 %v4629_v30  ;;  %v4645_v9 = vadd.f32 1.0, %v7920_v1 }
 0xda1   :  { %7925 = vrcp.f32 %v4644_v10 }
 0xda2   :  { %7927 = vrcp.f32 %v4645_v9 }
 0xda6   :  { %v7922_v35 = vpop.eup %7921 }
 0xda7   :  { %v4654_v55 = vmul.f32 %v7922_v35, %v4652_v2 }
 0xda9   :  { %v4656_v49 = vadd.f32 %v4654_v55, %v3517_v25 }
 0xdaa   :  { %v7924_v31 = vpop.eup %7923 }
 0xdab   :  { %v4655_v27 = vmul.f32 %v7924_v31, %v4653_v12  ;;  %7929 = vtanh.f32 %v4656_v49  ;;  %v7926_v32 = vpop.eup %7925 }
 0xdac   :  { %v7928_v23 = vpop.eup %7927  ;;  %v4660_v16 = vsub.f32 1.0, %v7926_v32  ;;  %v4664_v59 = vmul.f32 %v7926_v32, %v9436_v36 }
 0xdad   :  { %v4657_v63 = vadd.f32 %v4655_v27, %v3522_v3  ;;  %v4661_v54 = vsub.f32 1.0, %v7928_v23  ;;  %v4665_v20 = vmul.f32 %v7928_v23, %v9443_v53 }
 0xdaf   :  { %7931 = vtanh.f32 %v4657_v63 }
 0xdb5   :  { %v7930_v6 = vpop.eup %7929 }
 0xdb6   :  { %v4662_v38 = vmul.f32 %v7930_v6, %v4660_v16 }
 0xdb8   :  { %v9490_v26 = vadd.f32 %v4664_v59, %v4662_v38 }
 0xdb9   :  { %v7932_v15 = vpop.eup %7931 }
 0xdba   :  { %4733 = vmatmul.mubr.f32.vlgmr.msra.gmra.mrb[52].mxu0 %v9490_v26  ;;  %6376 = vmatprep.mubr.f32.mxu1 %v9490_v26  ;;  %v4663_v0 = vmul.f32 %v7932_v15, %v4661_v54  ;;  %v3527_v15 = vadd.f32 %v9200_v33, %v9267_v14 }
 0xdbb   :  { %4738 = vmatprep.mubr.f32.mxu0 %v9665_v40  ;;  %7412 = vmatpush1.bf16.msra.mxu0 %v9041_v46 }
 0xdbc   :  { %v9497_v30 = vadd.f32 %v4665_v20, %v4663_v0  ;;  %7414 = vmatprep.subr.bf16.mxu0 %v9085_v58 }
 0xdbe   :  { %4739 = vmatmul.mubr.f32.gmra.mrb[54].mxu0 %v9497_v30  ;;  %6377 = vmatmul.mubr.f32.vlgmr.msra.gmra.mrb[82].mxu1 %v9497_v30 }
 0xdbf   :  { %7416 = vmatpush1.bf16.msra.mxu0 %v9087_v44  ;;  %7444 = vmatpush3.bf16.msra.mxu1 %v9120_v52 }
 0xdc0   :  { %7418 = vmatprep.subr.bf16.mxu0 %v9091_v50  ;;  %7446 = vmatprep.subr.bf16.mxu1 %v9129_v13 }
 0xdc1   :  { %4934 = vmatprep.mubr.f32.mxu0 %v9665_v40 }
 0xdc3   :  { %7420 = vmatpush1.bf16.msra.mxu0 %v9093_v56  ;;  %7448 = vmatpush3.bf16.msra.mxu1 %v9129_v13 }
 0xdc4   :  { %7422 = vmatprep.subr.bf16.mxu0 %v9097_v43  ;;  %7450 = vmatprep.subr.bf16.mxu1 %v9135_v17 }
 0xdc7   :  { %7424 = vmatpush1.bf16.msra.mxu0 %v9099_v34  ;;  %7452 = vmatpush3.bf16.msra.mxu1 %v9135_v17 }
 0xdc8   :  { %7426 = vmatprep.subr.bf16.mxu0 %v9103_v48  ;;  %7454 = vmatprep.subr.bf16.mxu1 %v9140_v57 }
 0xdcb   :  { %7428 = vmatpush1.bf16.msra.mxu0 %v9105_v4  ;;  %7456 = vmatpush3.bf16.msra.mxu1 %v9140_v57 }
 0xdcc   :  { %7430 = vmatprep.subr.bf16.mxu0 %v9107_v5  ;;  %7458 = vmatprep.subr.bf16.mxu1 %v9144_v19 }
 0xdcf   :  { %7432 = vmatpush1.bf16.msra.mxu0 %v9111_v7  ;;  %7460 = vmatpush3.bf16.msra.mxu1 %v9144_v19 }
 0xdd0   :  { %7434 = vmatprep.subr.bf16.mxu0 %v9114_v22  ;;  %7462 = vmatprep.subr.bf16.mxu1 %v9146_v42 }
 0xdd3   :  { %7436 = vmatpush1.bf16.msra.mxu0 %v9117_v37  ;;  %7464 = vmatpush3.bf16.msra.mxu1 %v9146_v42 }
 0xdd4   :  { %7438 = vmatprep.subr.bf16.mxu0 %v9125_v21  ;;  %7466 = vmatprep.subr.bf16.mxu1 %v9151_v29 }
 0xdd7   :  { %7440 = vmatpush1.bf16.msra.mxu0 %v9127_v60  ;;  %7468 = vmatpush3.bf16.msra.mxu1 %v9151_v29 }
 0xdd8   :  { %7470 = vmatprep.subr.bf16.mxu1 %v9155_v47  ;;  %7474 = vmatprep.subr.bf16.mxu0 %v9038_v62 }
 0xddb   :  { %7472 = vmatpush3.bf16.msra.mxu1 %v9155_v47 }
 0xddc   :  { %7506 = vmatprep.subr.bf16.mxu1 %v9120_v52 }
 0xe8d   :  { %v4734_v36 = vpop.f32.mrb[52].mxu0 }
 0xe8e   :  { %v7597_v53 = vadd.f32 %v4734_v36, %v9250_v41  ;;  %v4736_v28 = vpop.f32.mrb[53].mxu0 }
 0xe8f   :  { %v7598_v10 = vadd.f32 %v4736_v28, %v9254_v61  ;;  %v3532_v28 = vadd.f32 %v9196_v24, %v9267_v14 }
 0xe90   :  { %v5496_v1 = vmul.f32 -1.442695, %v7597_v53 }
 0xe91   :  { %v4740_v2 = vpop.f32.mrb[54].mxu0  ;;  %v6378_v35 = vpop.f32.mrb[82].mxu1  ;;  %v5498_v49 = vmul.f32 -1.442695, %v7598_v10 }
 0xe92   :  { %7933 = vpow2.f32 %v5496_v1  ;;  %v7599_v9 = vadd.f32 %v4740_v2, %v9250_v41  ;;  %v4742_v25 = vpop.f32.mrb[55].mxu0  ;;  %v4811_v55 = vpop.f32.mrb[83].mxu1  ;;  %v4855_v20 = vadd.f32 %v6378_v35, %v9263_v18 }
 0xe93   :  { %v7600_v62 = vadd.f32 %v4742_v25, %v9254_v61  ;;  %v4854_v38 = vadd.f32 %v9263_v18, %v4811_v55 }
 0xe94   :  { %v5497_v12 = vmul.f32 -1.442695, %v7599_v9 }
 0xe95   :  { %v5499_v31 = vmul.f32 -1.442695, %v7600_v62 }
 0xe96   :  { %7935 = vpow2.f32 %v5497_v12 }
 0xe97   :  { %7937 = vpow2.f32 %v5498_v49 }
 0xe98   :  { %7939 = vpow2.f32 %v5499_v31 }
 0xe9c   :  { %v7934_v3 = vpop.eup %7933 }
 0xe9d   :  { %v4830_v27 = vadd.f32 1.0, %v7934_v3  ;;  %v3537_v3 = vadd.f32 %v9210_v11, %v9267_v14 }
 0xe9f   :  { %7941 = vrcp.f32 %v4830_v27 }
 0xea0   :  { %v7936_v63 = vpop.eup %7935 }
 0xea1   :  { %v4831_v32 = vadd.f32 1.0, %v7936_v63  ;;  %v7938_v23 = vpop.eup %7937 }
 0xea2   :  { %v7940_v16 = vpop.eup %7939  ;;  %v4846_v6 = vadd.f32 1.0, %v7938_v23 }
 0xea3   :  { %7943 = vrcp.f32 %v4831_v32  ;;  %v4847_v54 = vadd.f32 1.0, %v7940_v16  ;;  %v3542_v16 = vadd.f32 %v9207_v45, %v9267_v14 }
 0xea4   :  { %7945 = vrcp.f32 %v4846_v6 }
 0xea5   :  { %7947 = vrcp.f32 %v4847_v54 }
 0xea9   :  { %v7942_v59 = vpop.eup %7941 }
 0xeaa   :  { %v4856_v0 = vmul.f32 %v7942_v59, %v4854_v38 }
 0xeac   :  { %v4858_v36 = vadd.f32 %v4856_v0, %v3527_v15 }
 0xead   :  { %v7944_v53 = vpop.eup %7943 }
 0xeae   :  { %v4857_v1 = vmul.f32 %v7944_v53, %v4855_v20  ;;  %7949 = vtanh.f32 %v4858_v36  ;;  %v7946_v2 = vpop.eup %7945 }
 0xeaf   :  { %v7948_v9 = vpop.eup %7947  ;;  %v4862_v25 = vsub.f32 1.0, %v7946_v2  ;;  %v4866_v33 = vmul.f32 %v7946_v2, %v9490_v26 }
 0xeb0   :  { %v4859_v10 = vadd.f32 %v4857_v1, %v3532_v28  ;;  %v4863_v18 = vsub.f32 1.0, %v7948_v9  ;;  %v4867_v49 = vmul.f32 %v7948_v9, %v9497_v30 }
 0xeb2   :  { %7951 = vtanh.f32 %v4859_v10 }
 0xeb8   :  { %v7950_v55 = vpop.eup %7949 }
 0xeb9   :  { %v4864_v12 = vmul.f32 %v7950_v55, %v4862_v25 }
 0xebb   :  { %v9544_v62 = vadd.f32 %v4866_v33, %v4864_v12 }
 0xebc   :  { %v7952_v35 = vpop.eup %7951 }
 0xebd   :  { %4935 = vmatmul.mubr.f32.vlgmr.msra.gmra.mrb[56].mxu0 %v9544_v62  ;;  %6411 = vmatprep.mubr.f32.mxu1 %v9544_v62  ;;  %v4865_v24 = vmul.f32 %v7952_v35, %v4863_v18 }
 0xebe   :  { %4940 = vmatprep.mubr.f32.mxu0 %v9665_v40  ;;  %7476 = vmatpush1.bf16.msra.mxu0 %v9041_v46 }
 0xebf   :  { %v9551_v31 = vadd.f32 %v4867_v49, %v4865_v24  ;;  %7478 = vmatprep.subr.bf16.mxu0 %v9085_v58 }
 0xec1   :  { %4941 = vmatmul.mubr.f32.gmra.mrb[58].mxu0 %v9551_v31  ;;  %6412 = vmatmul.mubr.f32.vlgmr.msra.gmra.mrb[84].mxu1 %v9551_v31 }
 0xec2   :  { %7480 = vmatpush1.bf16.msra.mxu0 %v9087_v44  ;;  %7508 = vmatpush3.bf16.msra.mxu1 %v9120_v52 }
 0xec3   :  { %7482 = vmatprep.subr.bf16.mxu0 %v9091_v50  ;;  %7510 = vmatprep.subr.bf16.mxu1 %v9129_v13 }
 0xec4   :  { %5136 = vmatprep.mubr.f32.mxu0 %v9665_v40 }
 0xec6   :  { %7484 = vmatpush1.bf16.msra.mxu0 %v9093_v56  ;;  %7512 = vmatpush3.bf16.msra.mxu1 %v9129_v13 }
 0xec7   :  { %7486 = vmatprep.subr.bf16.mxu0 %v9097_v43  ;;  %7514 = vmatprep.subr.bf16.mxu1 %v9135_v17 }
 0xeca   :  { %7488 = vmatpush1.bf16.msra.mxu0 %v9099_v34  ;;  %7516 = vmatpush3.bf16.msra.mxu1 %v9135_v17 }
 0xecb   :  { %7490 = vmatprep.subr.bf16.mxu0 %v9103_v48  ;;  %7518 = vmatprep.subr.bf16.mxu1 %v9140_v57 }
 0xece   :  { %7492 = vmatpush1.bf16.msra.mxu0 %v9105_v4  ;;  %7520 = vmatpush3.bf16.msra.mxu1 %v9140_v57 }
 0xecf   :  { %7494 = vmatprep.subr.bf16.mxu0 %v9107_v5  ;;  %7522 = vmatprep.subr.bf16.mxu1 %v9144_v19 }
 0xed2   :  { %7496 = vmatpush1.bf16.msra.mxu0 %v9111_v7  ;;  %7524 = vmatpush3.bf16.msra.mxu1 %v9144_v19 }
 0xed3   :  { %7498 = vmatprep.subr.bf16.mxu0 %v9114_v22  ;;  %7526 = vmatprep.subr.bf16.mxu1 %v9146_v42 }
 0xed6   :  { %7500 = vmatpush1.bf16.msra.mxu0 %v9117_v37  ;;  %7528 = vmatpush3.bf16.msra.mxu1 %v9146_v42 }
 0xed7   :  { %7502 = vmatprep.subr.bf16.mxu0 %v9125_v21  ;;  %7530 = vmatprep.subr.bf16.mxu1 %v9151_v29 }
 0xeda   :  { %7504 = vmatpush1.bf16.msra.mxu0 %v9127_v60  ;;  %7532 = vmatpush3.bf16.msra.mxu1 %v9151_v29  ;;  %v9592_v29 = vld [vmem:[%s9644_s12] ss:$0 sm:$0xff] }
 0xedb   :  { %7534 = vmatprep.subr.bf16.mxu1 %v9155_v47 }
 0xede   :  { %7536 = vmatpush3.bf16.msra.mxu1 %v9155_v47 }
 0xf90   :  { %v4936_v46 = vpop.f32.mrb[56].mxu0 }
 0xf91   :  { %v7601_v58 = vadd.f32 %v4936_v46, %v9250_v41  ;;  %v4938_v44 = vpop.f32.mrb[57].mxu0 }
 0xf92   :  { %v7602_v56 = vadd.f32 %v4938_v44, %v9254_v61 }
 0xf93   :  { %v5500_v50 = vmul.f32 -1.442695, %v7601_v58 }
 0xf94   :  { %v4942_v43 = vpop.f32.mrb[58].mxu0  ;;  %v6413_v34 = vpop.f32.mrb[84].mxu1  ;;  %v5502_v37 = vmul.f32 -1.442695, %v7602_v56 }
 0xf95   :  { %7953 = vpow2.f32 %v5500_v50  ;;  %v7603_v48 = vadd.f32 %v4942_v43, %v9250_v41  ;;  %v4944_v4 = vpop.f32.mrb[59].mxu0  ;;  %v5013_v5 = vpop.f32.mrb[85].mxu1  ;;  %v5057_v63 = vadd.f32 %v9592_v29, %v6413_v34 }
 0xf96   :  { %v7604_v22 = vadd.f32 %v4944_v4, %v9254_v61  ;;  %v5056_v47 = vadd.f32 %v9592_v29, %v5013_v5 }
 0xf97   :  { %v5501_v7 = vmul.f32 -1.442695, %v7603_v48 }
 0xf98   :  { %v5503_v52 = vmul.f32 -1.442695, %v7604_v22 }
 0xf99   :  { %7955 = vpow2.f32 %v5501_v7 }
 0xf9a   :  { %7957 = vpow2.f32 %v5502_v37 }
 0xf9b   :  { %7959 = vpow2.f32 %v5503_v52 }
 0xf9f   :  { %v7954_v21 = vpop.eup %7953 }
 0xfa0   :  { %v5032_v60 = vadd.f32 1.0, %v7954_v21  ;;  %v3552_v21 = vadd.f32 %v9244_v8, %v9267_v14 }
 0xfa2   :  { %7961 = vrcp.f32 %v5032_v60 }
 0xfa3   :  { %v7956_v13 = vpop.eup %7955 }
 0xfa4   :  { %v5033_v17 = vadd.f32 1.0, %v7956_v13  ;;  %v7958_v57 = vpop.eup %7957 }
 0xfa5   :  { %v7960_v19 = vpop.eup %7959  ;;  %v5048_v42 = vadd.f32 1.0, %v7958_v57 }
 0xfa6   :  { %7963 = vrcp.f32 %v5033_v17  ;;  %v5049_v30 = vadd.f32 1.0, %v7960_v19 }
 0xfa7   :  { %7965 = vrcp.f32 %v5048_v42 }
 0xfa8   :  { %7967 = vrcp.f32 %v5049_v30 }
 0xfac   :  { %v7962_v26 = vpop.eup %7961 }
 0xfad   :  { %v5058_v27 = vmul.f32 %v7962_v26, %v5056_v47  ;;  %v5338_v47 = vpop.permute.xlu1 %5337 }
 0xfaf   :  { %v5060_v32 = vadd.f32 %v5058_v27, %v3537_v3 }
 0xfb0   :  { %v7964_v23 = vpop.eup %7963 }
 0xfb1   :  { %v5059_v6 = vmul.f32 %v7964_v23, %v5057_v63  ;;  %7969 = vtanh.f32 %v5060_v32  ;;  %v7966_v59 = vpop.eup %7965  ;;  %v5340_v32 = vpop.permute.xlu1 %5339 }
 0xfb2   :  { %v7968_v54 = vpop.eup %7967  ;;  %v5064_v15 = vsub.f32 1.0, %v7966_v59  ;;  %v5068_v11 = vmul.f32 %v7966_v59, %v9544_v62 }
 0xfb3   :  { %v5061_v38 = vadd.f32 %v5059_v6, %v3542_v16  ;;  %v5065_v53 = vsub.f32 1.0, %v7968_v54  ;;  %v5069_v10 = vmul.f32 %v7968_v54, %v9551_v31  ;;  %v5344_v16 = vsub.f32 %v8653_v39, %v5340_v32 }
 0xfb5   :  { %7971 = vtanh.f32 %v5061_v38  ;;  %v9678_v38 = vld [vmem:[#allocation19_spill] sm:$0xff]  ;;  %v5347_v54 = vmul.f32 1.442695, %v5344_v16 }
 0xfb6   :  { %v5343_v59 = vsub.f32 %v9678_v38, %v5338_v47 }
 0xfbb   :  { %v7970_v0 = vpop.eup %7969 }
 0xfbc   :  { %v5066_v20 = vmul.f32 %v7970_v0, %v5064_v15  ;;  %v5345_v15 = vmul.f32 1.442695, %v5343_v59 }
 0xfbe   :  { %v5070_v36 = vadd.f32 %v5068_v11, %v5066_v20  ;;  %v5368_v20 = vpop.permute.xlu1 %5367 }
 0xfbf   :  { %v7972_v28 = vpop.eup %7971 }
 0xfc0   :  { %5137 = vmatmul.mubr.f32.vlgmr.msra.gmra.mrb[60].mxu0 %v5070_v36  ;;  %6446 = vmatprep.mubr.f32.mxu1 %v5070_v36  ;;  %v5067_v1 = vmul.f32 %v7972_v28, %v5065_v53 }
 0xfc1   :  { %5142 = vmatprep.mubr.f32.mxu0 %v9665_v40 }
 0xfc2   :  { %v5071_v45 = vadd.f32 %v5069_v10, %v5067_v1  ;;  %v9679_v1 = vld [vmem:[#allocation20_spill] sm:$0xff] }
 0xfc3   :  { %v5329_v10 = vsub.f32 %v9678_v38, %v9679_v1 }
 0xfc4   :  { %5143 = vmatmul.mubr.f32.gmra.mrb[62].mxu0 %v5071_v45  ;;  %6447 = vmatmul.mubr.f32.vlgmr.msra.gmra.mrb[86].mxu1 %v5071_v45 }
0x1093   :  { %v5138_v2 = vpop.f32.mrb[60].mxu0 }
0x1094   :  { %v7605_v9 = vadd.f32 %v5138_v2, %v9250_v41  ;;  %v5140_v25 = vpop.f32.mrb[61].mxu0 }
0x1095   :  { %v7606_v12 = vadd.f32 %v5140_v25, %v9254_v61  ;;  %v5331_v25 = vmul.f32 1.442695, %v5329_v10 }
0x1096   :  { %v5504_v55 = vmul.f32 -1.442695, %v7605_v9 }
0x1097   :  { %v5144_v33 = vpop.f32.mrb[62].mxu0  ;;  %v6448_v62 = vpop.f32.mrb[86].mxu1  ;;  %v5506_v31 = vmul.f32 -1.442695, %v7606_v12 }
0x1098   :  { %7973 = vpow2.f32 %v5504_v55  ;;  %v7607_v18 = vadd.f32 %v5144_v33, %v9250_v41  ;;  %v5146_v35 = vpop.f32.mrb[63].mxu0  ;;  %v5215_v24 = vpop.f32.mrb[87].mxu1  ;;  %v5259_v22 = vadd.f32 %v9592_v29, %v6448_v62  ;;  %v9680_v55 = vld [vmem:[#allocation21_spill] sm:$0xff] }
0x1099   :  { %v7608_v40 = vadd.f32 %v5146_v35, %v9254_v61  ;;  %v5258_v41 = vadd.f32 %v9592_v29, %v5215_v24  ;;  %v3547_v61 = vadd.f32 %v9246_v51, %v9267_v14  ;;  %v5508_v29 = vld [vmem:[%s9635_s3] ss:$0 sm:$0xff]  ;;  %v5330_v12 = vsub.f32 %v8653_v39, %v9680_v55 }
0x109a   :  { %v5505_v49 = vmul.f32 -1.442695, %v7607_v18 }
0x109b   :  { %v5507_v46 = vmul.f32 -1.442695, %v7608_v40  ;;  %v5333_v35 = vmul.f32 1.442695, %v5330_v12 }
0x109c   :  { %7975 = vpow2.f32 %v5505_v49 }
0x109d   :  { %7977 = vpow2.f32 %v5506_v31 }
0x109e   :  { %7979 = vpow2.f32 %v5507_v46 }
0x10a2   :  { %v7974_v58 = vpop.eup %7973 }
0x10a3   :  { %v5234_v44 = vadd.f32 1.0, %v7974_v58 }
0x10a5   :  { %7981 = vrcp.f32 %v5234_v44 }
0x10a6   :  { %v7976_v50 = vpop.eup %7975 }
0x10a7   :  { %v5235_v56 = vadd.f32 1.0, %v7976_v50  ;;  %v7978_v43 = vpop.eup %7977 }
0x10a8   :  { %v7980_v34 = vpop.eup %7979  ;;  %v5250_v48 = vadd.f32 1.0, %v7978_v43 }
0x10a9   :  { %7983 = vrcp.f32 %v5235_v56  ;;  %v5251_v5 = vadd.f32 1.0, %v7980_v34 }
0x10aa   :  { %7985 = vrcp.f32 %v5250_v48 }
0x10ab   :  { %7987 = vrcp.f32 %v5251_v5 }
0x10af   :  { %v7982_v4 = vpop.eup %7981 }
0x10b0   :  { %v5260_v7 = vmul.f32 %v7982_v4, %v5258_v41 }
0x10b2   :  { %v5262_v37 = vadd.f32 %v5260_v7, %v3547_v61 }
0x10b3   :  { %v7984_v52 = vpop.eup %7983 }
0x10b4   :  { %v5261_v60 = vmul.f32 %v7984_v52, %v5259_v22  ;;  %7989 = vtanh.f32 %v5262_v37  ;;  %v7986_v17 = vpop.eup %7985 }
0x10b5   :  { %v7988_v57 = vpop.eup %7987  ;;  %v5266_v19 = vsub.f32 1.0, %v7986_v17  ;;  %v5270_v26 = vmul.f32 %v7986_v17, %v5070_v36  ;;  %v5366_v36 = vpop.permute.xlu0 %5365 }
0x10b6   :  { %v5263_v13 = vadd.f32 %v5261_v60, %v3552_v21  ;;  %v5267_v3 = vsub.f32 1.0, %v7988_v57  ;;  %v5271_v14 = vmul.f32 %v7988_v57, %v5071_v45  ;;  %v5509_v45 = vld [vmem:[#allocation4] ss:$0 sm:$0xff] }
0x10b8   :  { %7991 = vtanh.f32 %v5263_v13 }
0x10b9   :  { %7993 = vpow2.f32 %v5347_v54 }
0x10ba   :  { %7995 = vpow2.f32 %v5345_v15 }
0x10be   :  { %v7990_v42 = vpop.eup %7989 }
0x10bf   :  { %v5268_v51 = vmul.f32 %v7990_v42, %v5266_v19 }
0x10c1   :  { %v5272_v30 = vadd.f32 %v5270_v26, %v5268_v51 }
0x10c2   :  { %v7992_v27 = vpop.eup %7991 }
0x10c3   :  { %v5281_v63 = vmul.f32 %v5508_v29, %v5272_v30  ;;  %v5269_v8 = vmul.f32 %v7992_v27, %v5267_v3  ;;  %v7994_v0 = vpop.eup %7993 }
0x10c4   :  { %v7996_v11 = vpop.eup %7995  ;;  %v5372_v53 = vmul.f32 %v7994_v0, %v5368_v20 }
0x10c5   :  { %5283 = vadd.xlane.f32.xlu0 %v5281_v63  ;;  %v5273_v23 = vadd.f32 %v5271_v14, %v5269_v8  ;;  %v5371_v28 = vmul.f32 %v7996_v11, %v5366_v36 }
0x10c7   :  { %v5282_v6 = vmul.f32 %v5508_v29, %v5273_v23 }
0x10c9   :  { %5285 = vadd.xlane.f32.xlu1 %v5282_v6 }
0x10da   :  { %5353 = vrot.lane.b32.xlu1 %v7994_v0, %s8091_s7 }
0x10db   :  { %5351 = vrot.lane.b32.xlu0 %v7996_v11, %s8091_s7 }
0x10de   :  { %5377 = vrot.lane.b32.xlu1 %v5372_v53, %s8091_s7 }
0x10df   :  { %5375 = vrot.lane.b32.xlu0 %v5371_v28, %s8091_s7 }
0x1152   :  { %v5284_v2 = vpop.xlane.xlu0 %5283 }
0x1153   :  { %v5294_v9 = vadd.f32 %v5509_v45, %v5284_v2 }
0x1155   :  { %v5510_v33 = vmul.f32 -1.442695, %v5294_v9 }
0x1156   :  { %v5286_v62 = vpop.xlane.xlu1 %5285  ;;  %v5352_v49 = vpop.permute.xlu0 %5351 }
0x1157   :  { %7997 = vpow2.f32 %v5510_v33  ;;  %v5295_v18 = vadd.f32 %v5509_v45, %v5286_v62 }
0x1158   :  { %7999 = vpow2.f32 %v5331_v25 }
0x1159   :  { %v5511_v24 = vmul.f32 -1.442695, %v5295_v18 }
0x115a   :  { %v5354_v50 = vpop.permute.xlu1 %5353  ;;  %v5376_v41 = vpop.permute.xlu0 %5375 }
0x115b   :  { %8001 = vpow2.f32 %v5511_v24 }
0x115c   :  { %8003 = vpow2.f32 %v5333_v35 }
0x115e   :  { %v5378_v37 = vpop.permute.xlu1 %5377 }
0x1161   :  { %v7998_v40 = vpop.eup %7997 }
0x1162   :  { %v8000_v31 = vpop.eup %7999  ;;  %v5302_v46 = vadd.f32 1.0, %v7998_v40 }
0x1163   :  { %v5357_v58 = vadd.f32 %v8000_v31, %v5352_v49 }
0x1164   :  { %8005 = vrcp.f32 %v5302_v46 }
0x1165   :  { %v8002_v44 = vpop.eup %8001  ;;  %8007 = vrcp.f32 %v5357_v58 }
0x1166   :  { %v5303_v56 = vadd.f32 1.0, %v8002_v44  ;;  %v8004_v43 = vpop.eup %8003 }
0x1167   :  { %v5358_v39 = vadd.f32 %v8004_v43, %v5354_v50 }
0x1168   :  { %8009 = vrcp.f32 %v5303_v56 }
0x1169   :  { %8011 = vrcp.f32 %v5358_v39 }
0x116e   :  { %v8006_v34 = vpop.eup %8005 }
0x116f   :  { %v5359_v48 = vmul.f32 %v8006_v34, %v8000_v31  ;;  %v8008_v4 = vpop.eup %8007 }
0x1171   :  { %v5381_v5 = vadd.f32 %v5376_v41, %v5359_v48 }
0x1172   :  { %v8010_v61 = vpop.eup %8009 }
0x1173   :  { %v5384_v7 = vmul.f32 %v8008_v4, %v5381_v5  ;;  %v5360_v22 = vmul.f32 %v8010_v61, %v8004_v43  ;;  %v8012_v21 = vpop.eup %8011 }
0x1175   :  { %5388 = vst.msk [vmem:[%s9645_s13] sm:$0xff] %vm5387_vm1, %v5384_v7  ;;  %v5382_v52 = vadd.f32 %v5378_v37, %v5360_v22 }
0x1177   :  { %v5386_v60 = vmul.f32 %v8012_v21, %v5382_v52 }
0x1179   :  { %5389 = vst.msk [vmem:[%s9645_s13 + $0x8] sm:$0xff] %vm5387_vm1, %v5386_v60 }
0x117a   :  { %5394 = vsyncpa [#allocation6], 1 }
0x117b   :  { %5395 = vsyncpa [#allocation8], 1 }

</bundles_post_ra>
